<compile_context>
chip_gen: v7x
topology: tpu7x:2x2x1
jax: 0.10.0
libtpu: 0.0.40
codegen_flags: <defaults>
</compile_context>

<pallas_src>
import numpy as np
import jax
import jax.numpy as jnp
from jax import lax
from jax.experimental import pallas as pl
from jax.experimental.pallas import tpu as pltpu

_T_CHUNK = 8   # GRU timesteps per grid step (fully unrolled)


def _round_up(x, m):
    return ((x + m - 1) // m) * m


def _tpu_budget():
    """Per-generation tile / scoped-VMEM budget."""
    vmem_cap = 64 * 1024 * 1024
    try:
        vmem_cap = int(pltpu.get_tpu_info().vmem_capacity_bytes)
    except Exception:
        pass
    if vmem_cap >= 96 * 1024 * 1024:        # v5e / v6e class (128 MiB VMEM)
        return dict(vmem_limit=80 * 2**20, gcn_t=512, gcn_td_cap=2048,
                    gru_rb=256, logit_tn=1024)
    # v7x class: 64 MiB VMEM per TensorCore -> keep the budget tight
    return dict(vmem_limit=44 * 2**20, gcn_t=256, gcn_td_cap=1024,
                gru_rb=256, logit_tn=512)


_BUDGET = _tpu_budget()


# ----------------------------------------------------------------------------
# LightGCN layer: Y = G @ E and ACC += Y fused, batched over graphs,
# accumulator aliased in place.
# ----------------------------------------------------------------------------

def _gcn_layer_kernel(g_ref, e_ref, acc_in_ref, y_ref, acc_out_ref, scr_ref):
    @pl.when(pl.program_id(3) == 0)
    def _init():
        scr_ref[...] = jnp.zeros_like(scr_ref)

    scr_ref[...] += jnp.dot(g_ref[0], e_ref[0],
                            preferred_element_type=jnp.float32)

    @pl.when(pl.program_id(3) == pl.num_programs(3) - 1)
    def _done():
        y = scr_ref[...]
        y_ref[0] = y.astype(y_ref.dtype)
        acc_out_ref[0] = acc_in_ref[0] + y


def pallas_gcn_layer(g, e, acc, tm, tn, tk, budget):
    """g: (Gn,Mp,Mp) bf16, e: (Gn,Mp,Dp) bf16, acc: (Gn,Mp,Dp) f32."""
    Gn, Mp, _ = g.shape
    Dp = e.shape[2]
    grid = (Gn, Mp // tm, Dp // tn, Mp // tk)
    return pl.pallas_call(
        _gcn_layer_kernel,
        out_shape=(jax.ShapeDtypeStruct((Gn, Mp, Dp), jnp.bfloat16),
                   jax.ShapeDtypeStruct((Gn, Mp, Dp), jnp.float32)),
        grid=grid,
        in_specs=[pl.BlockSpec((1, tm, tk), lambda gi, i, j, k: (gi, i, k)),
                  pl.BlockSpec((1, tk, tn), lambda gi, i, j, k: (gi, k, j)),
                  pl.BlockSpec((1, tm, tn), lambda gi, i, j, k: (gi, i, j))],
        out_specs=(pl.BlockSpec((1, tm, tn), lambda gi, i, j, k: (gi, i, j)),
                   pl.BlockSpec((1, tm, tn), lambda gi, i, j, k: (gi, i, j))),
        scratch_shapes=[pltpu.VMEM((tm, tn), jnp.float32)],
        input_output_aliases={2: 1},          # acc updated in place
        compiler_params=pltpu.CompilerParams(
            dimension_semantics=("parallel", "parallel", "parallel",
                                 "arbitrary"),
            vmem_limit_bytes=budget["vmem_limit"]),
    )(g, e, acc)


def lightgcn_multi(graphs_stacked, all_emb, n_layers, budget):
    """self.computer() for all graphs at once.  Returns (Gn, M, D) f32."""
    Gn, M, _ = graphs_stacked.shape
    D = all_emb.shape[1]
    t = min(budget["gcn_t"], _round_up(M, 128))       # row == contraction tile
    td = min(budget["gcn_td_cap"], _round_up(D, 128))  # full D when it fits
    Mp, Dp = _round_up(M, t), _round_up(D, td)
    g_p = jnp.pad(graphs_stacked,
                  ((0, 0), (0, Mp - M), (0, Mp - M))).astype(jnp.bfloat16)
    e0 = jnp.pad(all_emb, ((0, Mp - M), (0, Dp - D)))
    acc = jnp.broadcast_to(e0[None], (Gn, Mp, Dp))
    cur = acc.astype(jnp.bfloat16)
    for _ in range(n_layers):
        cur, acc = pallas_gcn_layer(g_p, cur, acc, t, td, t, budget)
    return acc[:, :M, :D] / float(n_layers + 1)


# ----------------------------------------------------------------------------
# Fused interest-split + GRU input projection, written directly time-major.
# xi[t, k, b, :] = gathered[t, b, :] @ (W_interest_k @ W_i) + (b_i + b_h[rz])
# ----------------------------------------------------------------------------

def _inproj_kernel(x_ref, w_ref, b_ref, o_ref):
    tt, bb, dp = x_ref.shape
    g3 = w_ref.shape[2]
    x = x_ref[...].reshape(tt * bb, dp)                         # merge majors
    y = jnp.dot(x, w_ref[0], preferred_element_type=jnp.float32) + b_ref[...]
    o_ref[...] = y.reshape(tt, 1, bb, g3).astype(o_ref.dtype)


def pallas_interest_inproj(x_tm, w_comb, bias, bb, budget):
    """x_tm: (Tp, Bp, Dp) bf16 time-major embeddings; w_comb: (K, Dp, 3hp)
    bf16; bias: (1, 3hp) f32.  Returns xi: (Tp, K, Bp, 3hp) bf16."""
    Tp, Bp, Dp = x_tm.shape
    K, _, G3 = w_comb.shape
    tt = _T_CHUNK
    return pl.pallas_call(
        _inproj_kernel,
        out_shape=jax.ShapeDtypeStruct((Tp, K, Bp, G3), jnp.bfloat16),
        grid=(K, Bp // bb, Tp // tt),
        in_specs=[pl.BlockSpec((tt, bb, Dp), lambda k, i, t: (t, i, 0)),
                  pl.BlockSpec((1, Dp, G3), lambda k, i, t: (k, 0, 0)),
                  pl.BlockSpec((1, G3), lambda k, i, t: (0, 0))],
        out_specs=pl.BlockSpec((tt, 1, bb, G3), lambda k, i, t: (t, k, i, 0)),
        compiler_params=pltpu.CompilerParams(
            dimension_semantics=("parallel", "parallel", "parallel"),
            vmem_limit_bytes=budget["vmem_limit"]),
    )(x_tm, w_comb, bias)


# ----------------------------------------------------------------------------
# GRU recurrence: bf16 hidden matmul, fused (H,3H) weights, only the hidden
# state at step (len-1) is kept and written out (no per-timestep writeback).
# ----------------------------------------------------------------------------

def _make_gru_last_kernel(hp, t_chunk):
    def kernel(len_ref, xi_ref, wh_ref, bh_ref, o_ref, h_ref, last_ref):
        t_blk = pl.program_id(1)

        @pl.when(t_blk == 0)
        def _init():
            h_ref[...] = jnp.zeros_like(h_ref)
            last_ref[...] = jnp.zeros_like(last_ref)

        wh = wh_ref[...]                         # (hp, 3hp) bf16, hoisted
        bh = bh_ref[...]                         # (1, 3hp) f32 (n-gate bias)
        gather_t = len_ref[...] - 1              # (rb, 1) int32
        t0 = t_blk * t_chunk

        def step(s, carry):
            h, out = carry
            xi = xi_ref[s].astype(jnp.float32)                  # (rb, 3hp)
            gh = jnp.dot(h.astype(jnp.bfloat16), wh,
                         preferred_element_type=jnp.float32) + bh
            r = jax.nn.sigmoid(xi[:, :hp] + gh[:, :hp])
            z = jax.nn.sigmoid(xi[:, hp:2 * hp] + gh[:, hp:2 * hp])
            n = jnp.tanh(xi[:, 2 * hp:] + r * gh[:, 2 * hp:])
            h = (1.0 - z) * n + z * h
            # keep only the state at step len-1 (zero-length rows stay zero)
            out = jnp.where(gather_t == t0 + s, h, out)
            return h, out

        h, out = lax.fori_loop(0, t_chunk, step,
                               (h_ref[...], last_ref[...]), unroll=True)
        h_ref[...] = h
        last_ref[...] = out

        @pl.when(t_blk == pl.num_programs(1) - 1)
        def _done():
            o_ref[...] = last_ref[...]

    return kernel


def pallas_gru_last(xi, wh, bh, lens_rows, hp, rb, t_chunk, budget):
    """xi: (Tp, rows_p, 3hp) bf16 time-major (input projection already
    applied).  Returns the hidden state at step len-1: (rows_p, hp) f32."""
    Tp, rows_p, g3 = xi.shape
    grid = (rows_p // rb, Tp // t_chunk)
    return pl.pallas_call(
        _make_gru_last_kernel(hp, t_chunk),
        out_shape=jax.ShapeDtypeStruct((rows_p, hp), jnp.float32),
        grid=grid,
        in_specs=[pl.BlockSpec((rb, 1), lambda i, t: (i, 0)),
                  pl.BlockSpec((t_chunk, rb, g3), lambda i, t: (t, i, 0)),
                  pl.BlockSpec((hp, g3), lambda i, t: (0, 0)),
                  pl.BlockSpec((1, g3), lambda i, t: (0, 0))],
        out_specs=pl.BlockSpec((rb, hp), lambda i, t: (i, 0)),
        scratch_shapes=[pltpu.VMEM((rb, hp), jnp.float32),   # running h
                        pltpu.VMEM((rb, hp), jnp.float32)],  # h at len-1
        compiler_params=pltpu.CompilerParams(
            dimension_semantics=("parallel", "arbitrary"),
            vmem_limit_bytes=budget["vmem_limit"]),
    )(lens_rows, xi, wh, bh)


# ----------------------------------------------------------------------------
# Logits: one batched bf16 matmul against the item table per branch, item
# tiles on the outer grid axis (item table read once), fused sigmoid.
# ----------------------------------------------------------------------------

def _logits_kernel(vb_ref, vi_ref, it_ref, bl_ref, il_ref, lg_ref):
    it = it_ref[...]                                     # (tn, hp) bf16
    dn = (((1,), (1,)), ((), ()))                        # contract on hidden
    bl = lax.dot_general(vb_ref[...], it, dn,
                         preferred_element_type=jnp.float32)
    il = lax.dot_general(vi_ref[...], it, dn,
                         preferred_element_type=jnp.float32)
    bl_ref[...] = bl
    il_ref[...] = il
    lg_ref[...] = jax.nn.sigmoid(bl + il)


def pallas_logits(v_b, v_i, items, hp, budget):
    """v_b/v_i: (B, hp) merged interest vectors; items: (N, H).
    Returns (basket_logits, item_logits, sigmoid(sum)) each (B, N) f32."""
    B = v_b.shape[0]
    N, Dit = items.shape
    tn = min(budget["logit_tn"], _round_up(N, 128))
    Np = _round_up(N, tn)
    bb = min(256, _round_up(B, 8))
    Bp = _round_up(B, bb)
    vb = jnp.pad(v_b, ((0, Bp - B), (0, 0))).astype(jnp.bfloat16)
    vi = jnp.pad(v_i, ((0, Bp - B), (0, 0))).astype(jnp.bfloat16)
    it = jnp.pad(items, ((0, Np - N), (0, hp - Dit))).astype(jnp.bfloat16)
    outs = pl.pallas_call(
        _logits_kernel,
        out_shape=tuple(jax.ShapeDtypeStruct((Bp, Np), jnp.float32)
                        for _ in range(3)),
        grid=(Np // tn, Bp // bb),
        in_specs=[pl.BlockSpec((bb, hp), lambda j, i: (i, 0)),
                  pl.BlockSpec((bb, hp), lambda j, i: (i, 0)),
                  pl.BlockSpec((tn, hp), lambda j, i: (j, 0))],
        out_specs=tuple(pl.BlockSpec((bb, tn), lambda j, i: (i, j))
                        for _ in range(3)),
        compiler_params=pltpu.CompilerParams(
            dimension_semantics=("parallel", "parallel"),
            vmem_limit_bytes=budget["vmem_limit"]),
    )(vb, vi, it)
    bl, il, lg = [o[:B, :N] for o in outs]
    return bl, il, lg


# ----------------------------------------------------------------------------
# Parameter fusion (tiny, done once per forward in JAX)
# ----------------------------------------------------------------------------

def fuse_gru_hidden(p, H, hp):
    """Fused hidden weights (hp, 3hp) bf16 and n-gate hidden bias (1, 3hp)."""
    def pc(w):
        return jnp.pad(w, ((0, 0), (0, hp - H)))
    wh = jnp.concatenate([pc(p['whr']), pc(p['whz']), pc(p['whn'])], axis=1)
    wh = jnp.pad(wh, ((0, hp - H), (0, 0))).astype(jnp.bfloat16)
    z1 = jnp.zeros((1, hp), jnp.float32)
    bh = jnp.concatenate([z1, z1, pc(p['bhn'])], axis=1)
    return wh, bh


def build_interest_inproj(w_interest_t, p, K, H, hp, Dp):
    """Fold the interest Linear's k-th (D,D) slice through the GRU input
    weights: w_comb[k] = W_k @ [Wir|Wiz|Win]; bias = [bir+bhr|biz+bhz|bin]."""
    def pc(w):
        return jnp.pad(w, ((0, 0), (0, hp - H)))
    wi = jnp.concatenate([pc(p['wir']), pc(p['wiz']), pc(p['win'])], axis=1)
    bi = jnp.concatenate([pc(p['bir'] + p['bhr']),
                          pc(p['biz'] + p['bhz']),
                          pc(p['bin'])], axis=1)
    # reference reshape is (B,T,D,K): interest k takes columns d*K + k
    wk = jnp.stack([w_interest_t[:, k::K] for k in range(K)], axis=0)  # (K,D,D)
    w_comb = jnp.einsum('kde,ef->kdf', wk, wi)                          # (K,D,3hp)
    w_comb = jnp.pad(w_comb, ((0, 0), (0, Dp - w_comb.shape[1]), (0, 0)))
    return w_comb.astype(jnp.bfloat16), bi


# ----------------------------------------------------------------------------
# Sequence pipeline and interest merge (glue around the kernels)
# ----------------------------------------------------------------------------

def seq_pipeline(emb_table, seq, seq_len, w_comb, bias_i, wh, bh, K, hp,
                 budget):
    """gather -> fused interest/input projection (time-major) -> GRU.
    Returns the hidden state at step len-1 per (interest, batch): (K,B,hp)."""
    B, T = seq.shape
    Dp = w_comb.shape[1]
    rb = min(budget["gru_rb"], _round_up(B, 8))
    Bp = _round_up(B, rb)
    Tp = _round_up(T, _T_CHUNK)

    gathered = emb_table[jnp.transpose(seq)]                 # (T, B, D) glue
    D = gathered.shape[-1]
    gathered = jnp.pad(gathered,
                       ((0, Tp - T), (0, Bp - B), (0, Dp - D)))
    gathered = gathered.astype(jnp.bfloat16)

    xi = pallas_interest_inproj(gathered, w_comb, bias_i, rb, budget)
    xi = xi.reshape(Tp, K * Bp, xi.shape[-1])                # free reshape

    lens = jnp.pad(seq_len.astype(jnp.int32), (0, Bp - B))
    lens_rows = jnp.tile(lens, K).reshape(K * Bp, 1)

    h_last = pallas_gru_last(xi, wh, bh, lens_rows, hp, rb, _T_CHUNK, budget)
    return h_last.reshape(K, Bp, hp)[:, :B, :]


def _merge_vector(e, w_merge):
    """Fold interest self-attention + merge Linear into one per-batch vector.
    logits[b,n] = sum_k' c[b,k'] * (e[b,k'] . item[n])  with
    c[b,k'] = sum_k softmax(e e^T)[b,k',k] * w[k].  Tiny: O(B*K^2*H)."""
    s = jnp.einsum('bkh,blh->bkl', e, e)
    a = jax.nn.softmax(s, axis=-1)
    c = jnp.einsum('bkl,l->bk', a, w_merge[0])
    return jnp.einsum('bk,bkh->bh', c, e)                    # (B, hp)


# ----------------------------------------------------------------------------
# HapCL forward
# ----------------------------------------------------------------------------

def hapcl_forward(params, graphs, bseq, bseq_len, item_seq, item_seq_len,
                  n_layers, n_interest, num_baskets, run_type='train'):
    H = params['gru_basket']['whr'].shape[0]    # gru_latent_dim (== gcn dim)
    D = params['emb_basket'].shape[1]
    hp = _round_up(H, 128)
    Dp = _round_up(D, 128)
    K = n_interest

    all_emb = jnp.concatenate([params['emb_basket'], params['emb_item']],
                              axis=0)
    if run_type == 'train':
        g_stack = jnp.stack([graphs['orig'], graphs['pos'], graphs['neg']],
                            axis=0)
    else:
        g_stack = graphs['orig'][None]
    light = lightgcn_multi(g_stack, all_emb, n_layers, _BUDGET)   # (Gn, M, D)
    baskets = light[0, :num_baskets]
    items = light[0, num_baskets:]

    wh_b, bh_b = fuse_gru_hidden(params['gru_basket'], H, hp)
    wh_i, bh_i = fuse_gru_hidden(params['gru_item'], H, hp)
    wcomb_b, bi_b = build_interest_inproj(params['w_bseq_interest_t'],
                                          params['gru_basket'], K, H, hp, Dp)
    wcomb_i, bi_i = build_interest_inproj(params['w_iseq_interest_t'],
                                          params['gru_item'], K, H, hp, Dp)

    # ----- basket-sequence branch -----
    hb = seq_pipeline(baskets, bseq, bseq_len, wcomb_b, bi_b, wh_b, bh_b,
                      K, hp, _BUDGET)                         # (K, B, hp)
    e_b = jnp.transpose(hb, (1, 0, 2))                        # (B, K, hp)

    # ----- item-sequence branch -----
    hi = seq_pipeline(items, item_seq, item_seq_len, wcomb_i, bi_i, wh_i,
                      bh_i, K, hp, _BUDGET)
    e_i = jnp.transpose(hi, (1, 0, 2))                        # (B, K, hp)

    v_b = _merge_vector(e_b, params['merge_basket'])          # (B, hp)
    v_i = _merge_vector(e_i, params['merge_item'])
    basket_logits, item_logits, logits = pallas_logits(v_b, v_i, items, hp,
                                                       _BUDGET)

    if run_type != 'train':
        return logits

    pos_baskets = light[1, :num_baskets]
    neg_baskets = light[2, :num_baskets]

    def cl_branch(basket_table):
        h = seq_pipeline(basket_table, bseq, bseq_len, wcomb_b, bi_b, wh_b,
                         bh_b, K, hp, _BUDGET)                # (K, B, hp)
        kbh = h[..., :H]                                      # (K, B, H)
        return jnp.transpose(kbh, (1, 2, 0)).reshape(kbh.shape[1], -1)

    batch_pos_bseq_emb = cl_branch(pos_baskets)
    batch_neg_bseq_emb = cl_branch(neg_baskets)
    batch_bseq_flat = jnp.transpose(e_b[..., :H], (0, 2, 1)).reshape(
        e_b.shape[0], -1)                                     # (B, H*K)

    return (logits, batch_pos_bseq_emb, batch_neg_bseq_emb,
            batch_bseq_flat, item_logits, basket_logits)


# ----------------------------------------------------------------------------
# Deterministic parameter / synthetic-dataset setup + driver
# ----------------------------------------------------------------------------

if __name__ == "__main__":
    # config (gru_latent_dim must equal gcn_latent_dim for the logit matmuls)
    NUM_BASKETS = 16
    NUM_ITEMS = 32
    D = 32            # gcn_latent_dim == gru_latent_dim
    K_INTEREST = 2    # n_interest
    N_GCN_LAYERS = 2
    B = 2             # batch
    T_B = 8           # basket-sequence length (padded)
    # TODO(synk): gru_num_layers fixed to 1 (nn.GRU inter-layer dropout is a
    # no-op for a single layer); dataset/graph construction and augment() are
    # host-side preprocessing, not part of the forward pass.

    key = jax.random.PRNGKey(0)
    ks = jax.random.split(key, 32)
    M_ALL = NUM_BASKETS + NUM_ITEMS

    def uniform(k, shape, scale):
        return jax.random.uniform(k, shape, jnp.float32, -scale, scale)

    s_h = 1.0 / np.sqrt(D)

    def make_gru(keys):
        names = ['wir', 'wiz', 'win', 'whr', 'whz', 'whn',
                 'bir', 'biz', 'bin', 'bhr', 'bhz', 'bhn']
        p = {}
        for i, nm in enumerate(names):
            if nm.startswith('w'):
                p[nm] = uniform(keys[i], (D, D), s_h)     # stored pre-transposed
            else:
                p[nm] = uniform(keys[i], (1, D), s_h)
        return p

    emb_basket = jax.random.normal(ks[0], (NUM_BASKETS, D), jnp.float32) * 0.1
    emb_basket = emb_basket.at[0].set(0.0)                # padding_idx=0
    emb_item = jax.random.normal(ks[1], (NUM_ITEMS, D), jnp.float32) * 0.1
    emb_item = emb_item.at[0].set(0.0)

    params = {
        'emb_basket': emb_basket,
        'emb_item': emb_item,
        # nn.Linear(D, K*D, bias=False) weights, stored transposed (D, K*D)
        'w_bseq_interest_t': uniform(ks[2], (D, K_INTEREST * D), s_h),
        'w_iseq_interest_t': uniform(ks[3], (D, K_INTEREST * D), s_h),
        # nn.Linear(K, 1, bias=False) weights, stored as (1, K)
        'merge_basket': uniform(ks[4], (1, K_INTEREST),
                                1.0 / np.sqrt(K_INTEREST)),
        'merge_item': uniform(ks[5], (1, K_INTEREST),
                              1.0 / np.sqrt(K_INTEREST)),
        'gru_basket': make_gru(jax.random.split(ks[6], 12)),
        'gru_item': make_gru(jax.random.split(ks[7], 12)),
    }

    # synthetic normalized dense graphs (stand-ins for the sparse LightGCN graphs)
    def make_graph(k):
        g = jnp.abs(jax.random.normal(k, (M_ALL, M_ALL), jnp.float32))
        return g / jnp.sum(g, axis=1, keepdims=True)

    graphs = {'orig': make_graph(ks[8]), 'pos': make_graph(ks[9]),
              'neg': make_graph(ks[10])}

    # synthetic basket sequences (padded with 0) and their lengths
    bseq_np = np.array([[3, 5, 2, 7, 0, 0, 0, 0],
                        [1, 4, 6, 2, 8, 0, 0, 0]], dtype=np.int32)
    bseq_len_np = np.array([4, 5], dtype=np.int32)
    assert bseq_np.shape == (B, T_B)

    # synthetic id2basket_dict: each basket id maps to 2 deterministic item ids
    id2basket = {bid: [((2 * bid) % (NUM_ITEMS - 1)) + 1,
                       ((3 * bid) % (NUM_ITEMS - 1)) + 1]
                 for bid in range(1, NUM_BASKETS)}

    # build item_seq / item_seq_len (pad_sequence equivalent, host side)
    item_lists, item_lens = [], []
    for row in bseq_np:
        its = []
        for bid in row:
            if int(bid) != 0:
                its += id2basket[int(bid)]
        item_lists.append(its)
        item_lens.append(len(its))
    T_I = max(item_lens)
    item_seq_np = np.zeros((B, T_I), dtype=np.int32)
    for i, its in enumerate(item_lists):
        item_seq_np[i, :len(its)] = np.array(its, dtype=np.int32)
    item_seq_len_np = np.array(item_lens, dtype=np.int32)

    bseq = jnp.asarray(bseq_np)
    bseq_len = jnp.asarray(bseq_len_np)
    item_seq = jnp.asarray(item_seq_np)
    item_seq_len = jnp.asarray(item_seq_len_np)

    fwd = jax.jit(hapcl_forward,
                  static_argnames=('n_layers', 'n_interest', 'num_baskets',
                                   'run_type'))
    outs = fwd(params, graphs, bseq, bseq_len, item_seq, item_seq_len,
               n_layers=N_GCN_LAYERS, n_interest=K_INTEREST,
               num_baskets=NUM_BASKETS, run_type='train')
    outs = jax.block_until_ready(outs)

    (logits, pos_emb, neg_emb, bseq_emb, item_logits, basket_logits) = outs
    assert logits.shape == (B, NUM_ITEMS)
    assert pos_emb.shape == (B, D * K_INTEREST)
    assert neg_emb.shape == (B, D * K_INTEREST)
    assert bseq_emb.shape == (B, D * K_INTEREST)
    assert item_logits.shape == (B, NUM_ITEMS)
    assert basket_logits.shape == (B, NUM_ITEMS)
    assert bool(jnp.all(jnp.isfinite(logits)))
    assert bool(jnp.all((logits >= 0.0) & (logits <= 1.0)))

    print("KERNEL_OK")
</pallas_src>

<mosaic_0001>
module attributes {stable_mosaic.version = 11 : i64} {
  func.func @_gcn_layer_kernel(%arg0: i32, %arg1: i32, %arg2: i32, %arg3: i32, %arg4: memref<1x128x128xbf16, #tpu.memory_space<vmem>>, %arg5: memref<1x128x128xbf16, #tpu.memory_space<vmem>>, %arg6: memref<1x128x128xf32, #tpu.memory_space<vmem>>, %arg7: memref<1x128x128xbf16, #tpu.memory_space<vmem>>, %arg8: memref<1x128x128xf32, #tpu.memory_space<vmem>>, %arg9: memref<128x128xf32, #tpu.memory_space<vmem>>) attributes {dimension_semantics = [#tpu.dimension_semantics<parallel>, #tpu.dimension_semantics<parallel>, #tpu.dimension_semantics<parallel>, #tpu.dimension_semantics<arbitrary>], iteration_bounds = array<i64: 3, 1, 1, 1>, scalar_prefetch = 0 : i64, scratch_operands = 1 : i64, tpu.core_type = #tpu.core_type<tc>, window_params = [{transform_indices = @transform_0, window_bounds = array<i64: 1, 128, 128>}, {transform_indices = @transform_1, window_bounds = array<i64: 1, 128, 128>}, {transform_indices = @transform_2, window_bounds = array<i64: 1, 128, 128>}, {transform_indices = @transform_3, window_bounds = array<i64: 1, 128, 128>}, {transform_indices = @transform_4, window_bounds = array<i64: 1, 128, 128>}]} {
    %c0_i32 = arith.constant 0 : i32
    %0 = arith.cmpi eq, %arg3, %c0_i32 : i32
    %1 = arith.extui %0 : i1 to i32
    %c0_i32_0 = arith.constant 0 : i32
    %2 = arith.cmpi ne, %1, %c0_i32_0 : i32
    scf.if %2 {
      %cst_12 = arith.constant 0.000000e+00 : f32
      %14 = vector.broadcast %cst_12 : f32 to vector<128x128xf32>
      %c0_13 = arith.constant 0 : index
      %c0_14 = arith.constant 0 : index
      %15 = vector.load %arg9[%c0_13, %c0_14] : memref<128x128xf32, #tpu.memory_space<vmem>>, vector<128x128xf32>
      tpu.vector_store %arg9[%c0_13, %c0_14], %14 {strides = array<i32>} : memref<128x128xf32, #tpu.memory_space<vmem>>, vector<128x128xf32>,
    } else {
    }
    %c0 = arith.constant 0 : index
    %c0_1 = arith.constant 0 : index
    %3 = vector.load %arg9[%c0, %c0_1] : memref<128x128xf32, #tpu.memory_space<vmem>>, vector<128x128xf32>
    %c0_2 = arith.constant 0 : index
    %c0_3 = arith.constant 0 : index
    %c0_4 = arith.constant 0 : index
    %4 = vector.load %arg4[%c0_2, %c0_3, %c0_4] : memref<1x128x128xbf16, #tpu.memory_space<vmem>>, vector<1x128x128xbf16>
    %5 = vector.shape_cast %4 : vector<1x128x128xbf16> to vector<128x128xbf16>
    %c0_5 = arith.constant 0 : index
    %c0_6 = arith.constant 0 : index
    %c0_7 = arith.constant 0 : index
    %6 = vector.load %arg5[%c0_5, %c0_6, %c0_7] : memref<1x128x128xbf16, #tpu.memory_space<vmem>>, vector<1x128x128xbf16>
    %7 = vector.shape_cast %6 : vector<1x128x128xbf16> to vector<128x128xbf16>
    %cst = arith.constant dense<0.000000e+00> : vector<128x128xf32>
    %8 = tpu.matmul %5, %7, %cst {dimension_numbers = #tpu.dot_dimension_numbers<[1], [0], [0], [1], [0, 0, 1, 1], [], []>} : vector<128x128xbf16>, vector<128x128xbf16>, vector<128x128xf32> -> vector<128x128xf32>
    %9 = arith.addf %3, %8 : vector<128x128xf32>
    %c0_8 = arith.constant 0 : index
    %c0_9 = arith.constant 0 : index
    %10 = vector.load %arg9[%c0_8, %c0_9] : memref<128x128xf32, #tpu.memory_space<vmem>>, vector<128x128xf32>
    tpu.vector_store %arg9[%c0_8, %c0_9], %9 {strides = array<i32>} : memref<128x128xf32, #tpu.memory_space<vmem>>, vector<128x128xf32>,
    %c0_i32_10 = arith.constant 0 : i32
    %11 = arith.cmpi eq, %arg3, %c0_i32_10 : i32
    %12 = arith.extui %11 : i1 to i32
    %c0_i32_11 = arith.constant 0 : i32
    %13 = arith.cmpi ne, %12, %c0_i32_11 : i32
    scf.if %13 {
      %c0_12 = arith.constant 0 : index
      %c0_13 = arith.constant 0 : index
      %14 = vector.load %arg9[%c0_12, %c0_13] : memref<128x128xf32, #tpu.memory_space<vmem>>, vector<128x128xf32>
      %15 = arith.truncf %14 : vector<128x128xf32> to vector<128x128xbf16>
      %c0_14 = arith.constant 0 : index
      %c0_15 = arith.constant 0 : index
      %c0_16 = arith.constant 0 : index
      %16 = vector.load %arg7[%c0_14, %c0_15, %c0_16] : memref<1x128x128xbf16, #tpu.memory_space<vmem>>, vector<1x128x128xbf16>
      %17 = vector.shape_cast %16 : vector<1x128x128xbf16> to vector<128x128xbf16>
      %18 = vector.shape_cast %15 : vector<128x128xbf16> to vector<1x128x128xbf16>
      tpu.vector_store %arg7[%c0_14, %c0_15, %c0_16], %18 {strides = array<i32>} : memref<1x128x128xbf16, #tpu.memory_space<vmem>>, vector<1x128x128xbf16>,
      %c0_17 = arith.constant 0 : index
      %c0_18 = arith.constant 0 : index
      %c0_19 = arith.constant 0 : index
      %19 = vector.load %arg6[%c0_17, %c0_18, %c0_19] : memref<1x128x128xf32, #tpu.memory_space<vmem>>, vector<1x128x128xf32>
      %20 = vector.shape_cast %19 : vector<1x128x128xf32> to vector<128x128xf32>
      %21 = arith.addf %20, %14 : vector<128x128xf32>
      %c0_20 = arith.constant 0 : index
      %c0_21 = arith.constant 0 : index
      %c0_22 = arith.constant 0 : index
      %22 = vector.load %arg8[%c0_20, %c0_21, %c0_22] : memref<1x128x128xf32, #tpu.memory_space<vmem>>, vector<1x128x128xf32>
      %23 = vector.shape_cast %22 : vector<1x128x128xf32> to vector<128x128xf32>
      %24 = vector.shape_cast %21 : vector<128x128xf32> to vector<1x128x128xf32>
      tpu.vector_store %arg8[%c0_20, %c0_21, %c0_22], %24 {strides = array<i32>} : memref<1x128x128xf32, #tpu.memory_space<vmem>>, vector<1x128x128xf32>,
    } else {
    }
    return
  }
  func.func @transform_0(%arg0: i32, %arg1: i32, %arg2: i32, %arg3: i32) -> (i32, i32, i32) {
    %c0_i32 = arith.constant 0 : i32
    return %arg0, %arg1, %arg3 : i32, i32, i32
  }
  func.func @transform_1(%arg0: i32, %arg1: i32, %arg2: i32, %arg3: i32) -> (i32, i32, i32) {
    %c0_i32 = arith.constant 0 : i32
    return %arg0, %arg3, %arg2 : i32, i32, i32
  }
  func.func @transform_2(%arg0: i32, %arg1: i32, %arg2: i32, %arg3: i32) -> (i32, i32, i32) {
    %c0_i32 = arith.constant 0 : i32
    return %arg0, %arg1, %arg2 : i32, i32, i32
  }
  func.func @transform_3(%arg0: i32, %arg1: i32, %arg2: i32, %arg3: i32) -> (i32, i32, i32) {
    %c0_i32 = arith.constant 0 : i32
    return %arg0, %arg1, %arg2 : i32, i32, i32
  }
  func.func @transform_4(%arg0: i32, %arg1: i32, %arg2: i32, %arg3: i32) -> (i32, i32, i32) {
    %c0_i32 = arith.constant 0 : i32
    return %arg0, %arg1, %arg2 : i32, i32, i32
  }
}

module attributes {stable_mosaic.version = 11 : i64} {
  func.func @_gcn_layer_kernel(%arg0: i32, %arg1: i32, %arg2: i32, %arg3: i32, %arg4: memref<1x128x128xbf16, #tpu.memory_space<vmem>>, %arg5: memref<1x128x128xbf16, #tpu.memory_space<vmem>>, %arg6: memref<1x128x128xf32, #tpu.memory_space<vmem>>, %arg7: memref<1x128x128xbf16, #tpu.memory_space<vmem>>, %arg8: memref<1x128x128xf32, #tpu.memory_space<vmem>>, %arg9: memref<128x128xf32, #tpu.memory_space<vmem>>) attributes {dimension_semantics = [#tpu.dimension_semantics<parallel>, #tpu.dimension_semantics<parallel>, #tpu.dimension_semantics<parallel>, #tpu.dimension_semantics<arbitrary>], iteration_bounds = array<i64: 3, 1, 1, 1>, scalar_prefetch = 0 : i64, scratch_operands = 1 : i64, tpu.core_type = #tpu.core_type<tc>, window_params = [{transform_indices = @transform_0, window_bounds = array<i64: 1, 128, 128>}, {transform_indices = @transform_1, window_bounds = array<i64: 1, 128, 128>}, {transform_indices = @transform_2, window_bounds = array<i64: 1, 128, 128>}, {transform_indices = @transform_3, window_bounds = array<i64: 1, 128, 128>}, {transform_indices = @transform_4, window_bounds = array<i64: 1, 128, 128>}]} {
    %c0_i32 = arith.constant 0 : i32
    %0 = arith.cmpi eq, %arg3, %c0_i32 : i32
    %1 = arith.extui %0 : i1 to i32
    %c0_i32_0 = arith.constant 0 : i32
    %2 = arith.cmpi ne, %1, %c0_i32_0 : i32
    scf.if %2 {
      %cst_12 = arith.constant 0.000000e+00 : f32
      %14 = vector.broadcast %cst_12 : f32 to vector<128x128xf32>
      %c0_13 = arith.constant 0 : index
      %c0_14 = arith.constant 0 : index
      %15 = vector.load %arg9[%c0_13, %c0_14] : memref<128x128xf32, #tpu.memory_space<vmem>>, vector<128x128xf32>
      tpu.vector_store %arg9[%c0_13, %c0_14], %14 {strides = array<i32>} : memref<128x128xf32, #tpu.memory_space<vmem>>, vector<128x128xf32>,
    } else {
    }
    %c0 = arith.constant 0 : index
    %c0_1 = arith.constant 0 : index
    %3 = vector.load %arg9[%c0, %c0_1] : memref<128x128xf32, #tpu.memory_space<vmem>>, vector<128x128xf32>
    %c0_2 = arith.constant 0 : index
    %c0_3 = arith.constant 0 : index
    %c0_4 = arith.constant 0 : index
    %4 = vector.load %arg4[%c0_2, %c0_3, %c0_4] : memref<1x128x128xbf16, #tpu.memory_space<vmem>>, vector<1x128x128xbf16>
    %5 = vector.shape_cast %4 : vector<1x128x128xbf16> to vector<128x128xbf16>
    %c0_5 = arith.constant 0 : index
    %c0_6 = arith.constant 0 : index
    %c0_7 = arith.constant 0 : index
    %6 = vector.load %arg5[%c0_5, %c0_6, %c0_7] : memref<1x128x128xbf16, #tpu.memory_space<vmem>>, vector<1x128x128xbf16>
    %7 = vector.shape_cast %6 : vector<1x128x128xbf16> to vector<128x128xbf16>
    %cst = arith.constant dense<0.000000e+00> : vector<128x128xf32>
    %8 = tpu.matmul %5, %7, %cst {dimension_numbers = #tpu.dot_dimension_numbers<[1], [0], [0], [1], [0, 0, 1, 1], [], []>} : vector<128x128xbf16>, vector<128x128xbf16>, vector<128x128xf32> -> vector<128x128xf32>
    %9 = arith.addf %3, %8 : vector<128x128xf32>
    %c0_8 = arith.constant 0 : index
    %c0_9 = arith.constant 0 : index
    %10 = vector.load %arg9[%c0_8, %c0_9] : memref<128x128xf32, #tpu.memory_space<vmem>>, vector<128x128xf32>
    tpu.vector_store %arg9[%c0_8, %c0_9], %9 {strides = array<i32>} : memref<128x128xf32, #tpu.memory_space<vmem>>, vector<128x128xf32>,
    %c0_i32_10 = arith.constant 0 : i32
    %11 = arith.cmpi eq, %arg3, %c0_i32_10 : i32
    %12 = arith.extui %11 : i1 to i32
    %c0_i32_11 = arith.constant 0 : i32
    %13 = arith.cmpi ne, %12, %c0_i32_11 : i32
    scf.if %13 {
      %c0_12 = arith.constant 0 : index
      %c0_13 = arith.constant 0 : index
      %14 = vector.load %arg9[%c0_12, %c0_13] : memref<128x128xf32, #tpu.memory_space<vmem>>, vector<128x128xf32>
      %15 = arith.truncf %14 : vector<128x128xf32> to vector<128x128xbf16>
      %c0_14 = arith.constant 0 : index
      %c0_15 = arith.constant 0 : index
      %c0_16 = arith.constant 0 : index
      %16 = vector.load %arg7[%c0_14, %c0_15, %c0_16] : memref<1x128x128xbf16, #tpu.memory_space<vmem>>, vector<1x128x128xbf16>
      %17 = vector.shape_cast %16 : vector<1x128x128xbf16> to vector<128x128xbf16>
      %18 = vector.shape_cast %15 : vector<128x128xbf16> to vector<1x128x128xbf16>
      tpu.vector_store %arg7[%c0_14, %c0_15, %c0_16], %18 {strides = array<i32>} : memref<1x128x128xbf16, #tpu.memory_space<vmem>>, vector<1x128x128xbf16>,
      %c0_17 = arith.constant 0 : index
      %c0_18 = arith.constant 0 : index
      %c0_19 = arith.constant 0 : index
      %19 = vector.load %arg6[%c0_17, %c0_18, %c0_19] : memref<1x128x128xf32, #tpu.memory_space<vmem>>, vector<1x128x128xf32>
      %20 = vector.shape_cast %19 : vector<1x128x128xf32> to vector<128x128xf32>
      %21 = arith.addf %20, %14 : vector<128x128xf32>
      %c0_20 = arith.constant 0 : index
      %c0_21 = arith.constant 0 : index
      %c0_22 = arith.constant 0 : index
      %22 = vector.load %arg8[%c0_20, %c0_21, %c0_22] : memref<1x128x128xf32, #tpu.memory_space<vmem>>, vector<1x128x128xf32>
      %23 = vector.shape_cast %22 : vector<1x128x128xf32> to vector<128x128xf32>
      %24 = vector.shape_cast %21 : vector<128x128xf32> to vector<1x128x128xf32>
      tpu.vector_store %arg8[%c0_20, %c0_21, %c0_22], %24 {strides = array<i32>} : memref<1x128x128xf32, #tpu.memory_space<vmem>>, vector<1x128x128xf32>,
    } else {
    }
    return
  }
  func.func @transform_0(%arg0: i32, %arg1: i32, %arg2: i32, %arg3: i32) -> (i32, i32, i32) {
    %c0_i32 = arith.constant 0 : i32
    return %arg0, %arg1, %arg3 : i32, i32, i32
  }
  func.func @transform_1(%arg0: i32, %arg1: i32, %arg2: i32, %arg3: i32) -> (i32, i32, i32) {
    %c0_i32 = arith.constant 0 : i32
    return %arg0, %arg3, %arg2 : i32, i32, i32
  }
  func.func @transform_2(%arg0: i32, %arg1: i32, %arg2: i32, %arg3: i32) -> (i32, i32, i32) {
    %c0_i32 = arith.constant 0 : i32
    return %arg0, %arg1, %arg2 : i32, i32, i32
  }
  func.func @transform_3(%arg0: i32, %arg1: i32, %arg2: i32, %arg3: i32) -> (i32, i32, i32) {
    %c0_i32 = arith.constant 0 : i32
    return %arg0, %arg1, %arg2 : i32, i32, i32
  }
  func.func @transform_4(%arg0: i32, %arg1: i32, %arg2: i32, %arg3: i32) -> (i32, i32, i32) {
    %c0_i32 = arith.constant 0 : i32
    return %arg0, %arg1, %arg2 : i32, i32, i32
  }
}

module attributes {stable_mosaic.version = 11 : i64} {
  func.func @_inproj_kernel(%arg0: i32, %arg1: i32, %arg2: i32, %arg3: memref<8x8x128xbf16, #tpu.memory_space<vmem>>, %arg4: memref<1x128x384xbf16, #tpu.memory_space<vmem>>, %arg5: memref<1x384xf32, #tpu.memory_space<vmem>>, %arg6: memref<8x1x8x384xbf16, #tpu.memory_space<vmem>>) attributes {dimension_semantics = [#tpu.dimension_semantics<parallel>, #tpu.dimension_semantics<parallel>, #tpu.dimension_semantics<parallel>], iteration_bounds = array<i64: 2, 1, 1>, scalar_prefetch = 0 : i64, scratch_operands = 0 : i64, tpu.core_type = #tpu.core_type<tc>, window_params = [{transform_indices = @transform_0, window_bounds = array<i64: 8, 8, 128>}, {transform_indices = @transform_1, window_bounds = array<i64: 1, 128, 384>}, {pipeline_mode = #tpu.pipeline_mode<synchronous>, transform_indices = @transform_2, window_bounds = array<i64: 1, 384>}, {transform_indices = @transform_3, window_bounds = array<i64: 8, 1, 8, 384>}]} {
    %c0 = arith.constant 0 : index
    %c0_0 = arith.constant 0 : index
    %c0_1 = arith.constant 0 : index
    %0 = vector.load %arg3[%c0, %c0_0, %c0_1] : memref<8x8x128xbf16, #tpu.memory_space<vmem>>, vector<8x8x128xbf16>
    %1 = vector.shape_cast %0 : vector<8x8x128xbf16> to vector<64x128xbf16>
    %c0_2 = arith.constant 0 : index
    %c0_3 = arith.constant 0 : index
    %c0_4 = arith.constant 0 : index
    %2 = vector.load %arg4[%c0_2, %c0_3, %c0_4] : memref<1x128x384xbf16, #tpu.memory_space<vmem>>, vector<1x128x384xbf16>
    %3 = vector.shape_cast %2 : vector<1x128x384xbf16> to vector<128x384xbf16>
    %cst = arith.constant dense<0.000000e+00> : vector<64x384xf32>
    %4 = tpu.matmul %1, %3, %cst {dimension_numbers = #tpu.dot_dimension_numbers<[1], [0], [0], [1], [0, 0, 1, 1], [], []>} : vector<64x128xbf16>, vector<128x384xbf16>, vector<64x384xf32> -> vector<64x384xf32>
    %c0_5 = arith.constant 0 : index
    %c0_6 = arith.constant 0 : index
    %5 = vector.load %arg5[%c0_5, %c0_6] : memref<1x384xf32, #tpu.memory_space<vmem>>, vector<1x384xf32>
    %6 = vector.broadcast %5 : vector<1x384xf32> to vector<64x384xf32>
    %7 = arith.addf %4, %6 : vector<64x384xf32>
    %8 = vector.shape_cast %7 : vector<64x384xf32> to vector<8x1x8x384xf32>
    %9 = arith.truncf %8 : vector<8x1x8x384xf32> to vector<8x1x8x384xbf16>
    %c0_7 = arith.constant 0 : index
    %c0_8 = arith.constant 0 : index
    %c0_9 = arith.constant 0 : index
    %c0_10 = arith.constant 0 : index
    %10 = vector.load %arg6[%c0_7, %c0_8, %c0_9, %c0_10] : memref<8x1x8x384xbf16, #tpu.memory_space<vmem>>, vector<8x1x8x384xbf16>
    tpu.vector_store %arg6[%c0_7, %c0_8, %c0_9, %c0_10], %9 {strides = array<i32>} : memref<8x1x8x384xbf16, #tpu.memory_space<vmem>>, vector<8x1x8x384xbf16>,
    return
  }
  func.func @transform_0(%arg0: i32, %arg1: i32, %arg2: i32) -> (i32, i32, i32) {
    %c0_i32 = arith.constant 0 : i32
    %c0_i32_0 = arith.constant 0 : i32
    return %arg2, %arg1, %c0_i32 : i32, i32, i32
  }
  func.func @transform_1(%arg0: i32, %arg1: i32, %arg2: i32) -> (i32, i32, i32) {
    %c0_i32 = arith.constant 0 : i32
    %c0_i32_0 = arith.constant 0 : i32
    %c0_i32_1 = arith.constant 0 : i32
    return %arg0, %c0_i32, %c0_i32_0 : i32, i32, i32
  }
  func.func @transform_2(%arg0: i32, %arg1: i32, %arg2: i32) -> (i32, i32) {
    %c0_i32 = arith.constant 0 : i32
    %c0_i32_0 = arith.constant 0 : i32
    %c0_i32_1 = arith.constant 0 : i32
    return %c0_i32, %c0_i32_0 : i32, i32
  }
  func.func @transform_3(%arg0: i32, %arg1: i32, %arg2: i32) -> (i32, i32, i32, i32) {
    %c0_i32 = arith.constant 0 : i32
    %c0_i32_0 = arith.constant 0 : i32
    return %arg2, %arg0, %arg1, %c0_i32 : i32, i32, i32, i32
  }
}

module attributes {stable_mosaic.version = 11 : i64} {
  func.func @kernel(%arg0: i32, %arg1: i32, %arg2: memref<8x1xi32, #tpu.memory_space<vmem>>, %arg3: memref<8x8x384xbf16, #tpu.memory_space<vmem>>, %arg4: memref<128x384xbf16, #tpu.memory_space<vmem>>, %arg5: memref<1x384xf32, #tpu.memory_space<vmem>>, %arg6: memref<8x128xf32, #tpu.memory_space<vmem>>, %arg7: memref<8x128xf32, #tpu.memory_space<vmem>>, %arg8: memref<8x128xf32, #tpu.memory_space<vmem>>) attributes {dimension_semantics = [#tpu.dimension_semantics<parallel>, #tpu.dimension_semantics<arbitrary>], iteration_bounds = array<i64: 2, 1>, scalar_prefetch = 0 : i64, scratch_operands = 2 : i64, tpu.core_type = #tpu.core_type<tc>, window_params = [{transform_indices = @transform_0, window_bounds = array<i64: 8, 1>}, {transform_indices = @transform_1, window_bounds = array<i64: 8, 8, 384>}, {pipeline_mode = #tpu.pipeline_mode<synchronous>, transform_indices = @transform_2, window_bounds = array<i64: 128, 384>}, {pipeline_mode = #tpu.pipeline_mode<synchronous>, transform_indices = @transform_3, window_bounds = array<i64: 1, 384>}, {transform_indices = @transform_4, window_bounds = array<i64: 8, 128>}]} {
    %c0_i32 = arith.constant 0 : i32
    %0 = arith.cmpi eq, %arg1, %c0_i32 : i32
    %1 = arith.extui %0 : i1 to i32
    %c0_i32_0 = arith.constant 0 : i32
    %2 = arith.cmpi ne, %1, %c0_i32_0 : i32
    scf.if %2 {
      %cst_66 = arith.constant 0.000000e+00 : f32
      %336 = vector.broadcast %cst_66 : f32 to vector<8x128xf32>
      %c0_67 = arith.constant 0 : index
      %c0_68 = arith.constant 0 : index
      %337 = vector.load %arg7[%c0_67, %c0_68] : memref<8x128xf32, #tpu.memory_space<vmem>>, vector<8x128xf32>
      tpu.vector_store %arg7[%c0_67, %c0_68], %336 {strides = array<i32>} : memref<8x128xf32, #tpu.memory_space<vmem>>, vector<8x128xf32>,
      %cst_69 = arith.constant 0.000000e+00 : f32
      %338 = vector.broadcast %cst_69 : f32 to vector<8x128xf32>
      %c0_70 = arith.constant 0 : index
      %c0_71 = arith.constant 0 : index
      %339 = vector.load %arg8[%c0_70, %c0_71] : memref<8x128xf32, #tpu.memory_space<vmem>>, vector<8x128xf32>
      tpu.vector_store %arg8[%c0_70, %c0_71], %338 {strides = array<i32>} : memref<8x128xf32, #tpu.memory_space<vmem>>, vector<8x128xf32>,
    } else {
    }
    %c0 = arith.constant 0 : index
    %c0_1 = arith.constant 0 : index
    %3 = vector.load %arg4[%c0, %c0_1] : memref<128x384xbf16, #tpu.memory_space<vmem>>, vector<128x384xbf16>
    %c0_2 = arith.constant 0 : index
    %c0_3 = arith.constant 0 : index
    %4 = vector.load %arg5[%c0_2, %c0_3] : memref<1x384xf32, #tpu.memory_space<vmem>>, vector<1x384xf32>
    %c0_4 = arith.constant 0 : index
    %c0_5 = arith.constant 0 : index
    %5 = vector.load %arg2[%c0_4, %c0_5] : memref<8x1xi32, #tpu.memory_space<vmem>>, vector<8x1xi32>
    %c1_i32 = arith.constant 1 : i32
    %6 = vector.broadcast %c1_i32 : i32 to vector<8x1xi32>
    %7 = arith.subi %5, %6 : vector<8x1xi32>
    %c8_i32 = arith.constant 8 : i32
    %8 = arith.muli %arg1, %c8_i32 : i32
    %c0_6 = arith.constant 0 : index
    %c0_7 = arith.constant 0 : index
    %9 = vector.load %arg7[%c0_6, %c0_7] : memref<8x128xf32, #tpu.memory_space<vmem>>, vector<8x128xf32>
    %c0_8 = arith.constant 0 : index
    %c0_9 = arith.constant 0 : index
    %10 = vector.load %arg8[%c0_8, %c0_9] : memref<8x128xf32, #tpu.memory_space<vmem>>, vector<8x128xf32>
    %c0_i32_10 = arith.constant 0 : i32
    %11 = arith.index_cast %c0_i32_10 : i32 to index
    %c0_11 = arith.constant 0 : index
    %c0_12 = arith.constant 0 : index
    %12 = vector.load %arg3[%11, %c0_11, %c0_12] : memref<8x8x384xbf16, #tpu.memory_space<vmem>>, vector<1x8x384xbf16>
    %13 = vector.shape_cast %12 : vector<1x8x384xbf16> to vector<8x384xbf16>
    %14 = arith.extf %13 : vector<8x384xbf16> to vector<8x384xf32>
    %15 = arith.truncf %9 : vector<8x128xf32> to vector<8x128xbf16>
    %cst = arith.constant dense<0.000000e+00> : vector<8x384xf32>
    %16 = tpu.matmul %15, %3, %cst {dimension_numbers = #tpu.dot_dimension_numbers<[1], [0], [0], [1], [0, 0, 1, 1], [], []>} : vector<8x128xbf16>, vector<128x384xbf16>, vector<8x384xf32> -> vector<8x384xf32>
    %17 = vector.broadcast %4 : vector<1x384xf32> to vector<8x384xf32>
    %18 = arith.addf %16, %17 : vector<8x384xf32>
    %19 = vector.extract_strided_slice %14 {offsets = [0, 0], sizes = [8, 128], strides = [1, 1]} : vector<8x384xf32> to vector<8x128xf32>
    %20 = vector.extract_strided_slice %18 {offsets = [0, 0], sizes = [8, 128], strides = [1, 1]} : vector<8x384xf32> to vector<8x128xf32>
    %21 = arith.addf %19, %20 : vector<8x128xf32>
    %22 = arith.negf %21 : vector<8x128xf32>
    %23 = math.exp %22 : vector<8x128xf32>
    %cst_13 = arith.constant 1.000000e+00 : f32
    %24 = vector.broadcast %cst_13 : f32 to vector<8x128xf32>
    %25 = arith.addf %24, %23 : vector<8x128xf32>
    %26 = arith.divf %24, %25 : vector<8x128xf32>
    %27 = vector.extract_strided_slice %14 {offsets = [0, 128], sizes = [8, 128], strides = [1, 1]} : vector<8x384xf32> to vector<8x128xf32>
    %28 = vector.extract_strided_slice %18 {offsets = [0, 128], sizes = [8, 128], strides = [1, 1]} : vector<8x384xf32> to vector<8x128xf32>
    %29 = arith.addf %27, %28 : vector<8x128xf32>
    %30 = arith.negf %29 : vector<8x128xf32>
    %31 = math.exp %30 : vector<8x128xf32>
    %cst_14 = arith.constant 1.000000e+00 : f32
    %32 = vector.broadcast %cst_14 : f32 to vector<8x128xf32>
    %33 = arith.addf %32, %31 : vector<8x128xf32>
    %34 = arith.divf %32, %33 : vector<8x128xf32>
    %35 = vector.extract_strided_slice %14 {offsets = [0, 256], sizes = [8, 128], strides = [1, 1]} : vector<8x384xf32> to vector<8x128xf32>
    %36 = vector.extract_strided_slice %18 {offsets = [0, 256], sizes = [8, 128], strides = [1, 1]} : vector<8x384xf32> to vector<8x128xf32>
    %37 = arith.mulf %26, %36 : vector<8x128xf32>
    %38 = arith.addf %35, %37 : vector<8x128xf32>
    %39 = math.tanh %38 : vector<8x128xf32>
    %cst_15 = arith.constant 1.000000e+00 : f32
    %40 = vector.broadcast %cst_15 : f32 to vector<8x128xf32>
    %41 = arith.subf %40, %34 : vector<8x128xf32>
    %42 = arith.mulf %41, %39 : vector<8x128xf32>
    %43 = arith.mulf %34, %9 : vector<8x128xf32>
    %44 = arith.addf %42, %43 : vector<8x128xf32>
    %45 = arith.addi %8, %c0_i32_10 : i32
    %46 = vector.broadcast %45 : i32 to vector<8x1xi32>
    %47 = arith.cmpi eq, %7, %46 : vector<8x1xi32>
    %48 = vector.shape_cast %47 : vector<8x1xi1> to vector<8x1xi1>
    %49 = vector.broadcast %48 : vector<8x1xi1> to vector<8x128xi1>
    %50 = arith.select %49, %44, %10 : vector<8x128xi1>, vector<8x128xf32>
    %c1_i32_16 = arith.constant 1 : i32
    %51 = arith.index_cast %c1_i32_16 : i32 to index
    %c0_17 = arith.constant 0 : index
    %c0_18 = arith.constant 0 : index
    %52 = vector.load %arg3[%51, %c0_17, %c0_18] : memref<8x8x384xbf16, #tpu.memory_space<vmem>>, vector<1x8x384xbf16>
    %53 = vector.shape_cast %52 : vector<1x8x384xbf16> to vector<8x384xbf16>
    %54 = arith.extf %53 : vector<8x384xbf16> to vector<8x384xf32>
    %55 = arith.truncf %44 : vector<8x128xf32> to vector<8x128xbf16>
    %cst_19 = arith.constant dense<0.000000e+00> : vector<8x384xf32>
    %56 = tpu.matmul %55, %3, %cst_19 {dimension_numbers = #tpu.dot_dimension_numbers<[1], [0], [0], [1], [0, 0, 1, 1], [], []>} : vector<8x128xbf16>, vector<128x384xbf16>, vector<8x384xf32> -> vector<8x384xf32>
    %57 = vector.broadcast %4 : vector<1x384xf32> to vector<8x384xf32>
    %58 = arith.addf %56, %57 : vector<8x384xf32>
    %59 = vector.extract_strided_slice %54 {offsets = [0, 0], sizes = [8, 128], strides = [1, 1]} : vector<8x384xf32> to vector<8x128xf32>
    %60 = vector.extract_strided_slice %58 {offsets = [0, 0], sizes = [8, 128], strides = [1, 1]} : vector<8x384xf32> to vector<8x128xf32>
    %61 = arith.addf %59, %60 : vector<8x128xf32>
    %62 = arith.negf %61 : vector<8x128xf32>
    %63 = math.exp %62 : vector<8x128xf32>
    %cst_20 = arith.constant 1.000000e+00 : f32
    %64 = vector.broadcast %cst_20 : f32 to vector<8x128xf32>
    %65 = arith.addf %64, %63 : vector<8x128xf32>
    %66 = arith.divf %64, %65 : vector<8x128xf32>
    %67 = vector.extract_strided_slice %54 {offsets = [0, 128], sizes = [8, 128], strides = [1, 1]} : vector<8x384xf32> to vector<8x128xf32>
    %68 = vector.extract_strided_slice %58 {offsets = [0, 128], sizes = [8, 128], strides = [1, 1]} : vector<8x384xf32> to vector<8x128xf32>
    %69 = arith.addf %67, %68 : vector<8x128xf32>
    %70 = arith.negf %69 : vector<8x128xf32>
    %71 = math.exp %70 : vector<8x128xf32>
    %cst_21 = arith.constant 1.000000e+00 : f32
    %72 = vector.broadcast %cst_21 : f32 to vector<8x128xf32>
    %73 = arith.addf %72, %71 : vector<8x128xf32>
    %74 = arith.divf %72, %73 : vector<8x128xf32>
    %75 = vector.extract_strided_slice %54 {offsets = [0, 256], sizes = [8, 128], strides = [1, 1]} : vector<8x384xf32> to vector<8x128xf32>
    %76 = vector.extract_strided_slice %58 {offsets = [0, 256], sizes = [8, 128], strides = [1, 1]} : vector<8x384xf32> to vector<8x128xf32>
    %77 = arith.mulf %66, %76 : vector<8x128xf32>
    %78 = arith.addf %75, %77 : vector<8x128xf32>
    %79 = math.tanh %78 : vector<8x128xf32>
    %cst_22 = arith.constant 1.000000e+00 : f32
    %80 = vector.broadcast %cst_22 : f32 to vector<8x128xf32>
    %81 = arith.subf %80, %74 : vector<8x128xf32>
    %82 = arith.mulf %81, %79 : vector<8x128xf32>
    %83 = arith.mulf %74, %44 : vector<8x128xf32>
    %84 = arith.addf %82, %83 : vector<8x128xf32>
    %85 = arith.addi %8, %c1_i32_16 : i32
    %86 = vector.broadcast %85 : i32 to vector<8x1xi32>
    %87 = arith.cmpi eq, %7, %86 : vector<8x1xi32>
    %88 = vector.shape_cast %87 : vector<8x1xi1> to vector<8x1xi1>
    %89 = vector.broadcast %88 : vector<8x1xi1> to vector<8x128xi1>
    %90 = arith.select %89, %84, %50 : vector<8x128xi1>, vector<8x128xf32>
    %c2_i32 = arith.constant 2 : i32
    %91 = arith.index_cast %c2_i32 : i32 to index
    %c0_23 = arith.constant 0 : index
    %c0_24 = arith.constant 0 : index
    %92 = vector.load %arg3[%91, %c0_23, %c0_24] : memref<8x8x384xbf16, #tpu.memory_space<vmem>>, vector<1x8x384xbf16>
    %93 = vector.shape_cast %92 : vector<1x8x384xbf16> to vector<8x384xbf16>
    %94 = arith.extf %93 : vector<8x384xbf16> to vector<8x384xf32>
    %95 = arith.truncf %84 : vector<8x128xf32> to vector<8x128xbf16>
    %cst_25 = arith.constant dense<0.000000e+00> : vector<8x384xf32>
    %96 = tpu.matmul %95, %3, %cst_25 {dimension_numbers = #tpu.dot_dimension_numbers<[1], [0], [0], [1], [0, 0, 1, 1], [], []>} : vector<8x128xbf16>, vector<128x384xbf16>, vector<8x384xf32> -> vector<8x384xf32>
    %97 = vector.broadcast %4 : vector<1x384xf32> to vector<8x384xf32>
    %98 = arith.addf %96, %97 : vector<8x384xf32>
    %99 = vector.extract_strided_slice %94 {offsets = [0, 0], sizes = [8, 128], strides = [1, 1]} : vector<8x384xf32> to vector<8x128xf32>
    %100 = vector.extract_strided_slice %98 {offsets = [0, 0], sizes = [8, 128], strides = [1, 1]} : vector<8x384xf32> to vector<8x128xf32>
    %101 = arith.addf %99, %100 : vector<8x128xf32>
    %102 = arith.negf %101 : vector<8x128xf32>
    %103 = math.exp %102 : vector<8x128xf32>
    %cst_26 = arith.constant 1.000000e+00 : f32
    %104 = vector.broadcast %cst_26 : f32 to vector<8x128xf32>
    %105 = arith.addf %104, %103 : vector<8x128xf32>
    %106 = arith.divf %104, %105 : vector<8x128xf32>
    %107 = vector.extract_strided_slice %94 {offsets = [0, 128], sizes = [8, 128], strides = [1, 1]} : vector<8x384xf32> to vector<8x128xf32>
    %108 = vector.extract_strided_slice %98 {offsets = [0, 128], sizes = [8, 128], strides = [1, 1]} : vector<8x384xf32> to vector<8x128xf32>
    %109 = arith.addf %107, %108 : vector<8x128xf32>
    %110 = arith.negf %109 : vector<8x128xf32>
    %111 = math.exp %110 : vector<8x128xf32>
    %cst_27 = arith.constant 1.000000e+00 : f32
    %112 = vector.broadcast %cst_27 : f32 to vector<8x128xf32>
    %113 = arith.addf %112, %111 : vector<8x128xf32>
    %114 = arith.divf %112, %113 : vector<8x128xf32>
    %115 = vector.extract_strided_slice %94 {offsets = [0, 256], sizes = [8, 128], strides = [1, 1]} : vector<8x384xf32> to vector<8x128xf32>
    %116 = vector.extract_strided_slice %98 {offsets = [0, 256], sizes = [8, 128], strides = [1, 1]} : vector<8x384xf32> to vector<8x128xf32>
    %117 = arith.mulf %106, %116 : vector<8x128xf32>
    %118 = arith.addf %115, %117 : vector<8x128xf32>
    %119 = math.tanh %118 : vector<8x128xf32>
    %cst_28 = arith.constant 1.000000e+00 : f32
    %120 = vector.broadcast %cst_28 : f32 to vector<8x128xf32>
    %121 = arith.subf %120, %114 : vector<8x128xf32>
    %122 = arith.mulf %121, %119 : vector<8x128xf32>
    %123 = arith.mulf %114, %84 : vector<8x128xf32>
    %124 = arith.addf %122, %123 : vector<8x128xf32>
    %125 = arith.addi %8, %c2_i32 : i32
    %126 = vector.broadcast %125 : i32 to vector<8x1xi32>
    %127 = arith.cmpi eq, %7, %126 : vector<8x1xi32>
    %128 = vector.shape_cast %127 : vector<8x1xi1> to vector<8x1xi1>
    %129 = vector.broadcast %128 : vector<8x1xi1> to vector<8x128xi1>
    %130 = arith.select %129, %124, %90 : vector<8x128xi1>, vector<8x128xf32>
    %c3_i32 = arith.constant 3 : i32
    %131 = arith.index_cast %c3_i32 : i32 to index
    %c0_29 = arith.constant 0 : index
    %c0_30 = arith.constant 0 : index
    %132 = vector.load %arg3[%131, %c0_29, %c0_30] : memref<8x8x384xbf16, #tpu.memory_space<vmem>>, vector<1x8x384xbf16>
    %133 = vector.shape_cast %132 : vector<1x8x384xbf16> to vector<8x384xbf16>
    %134 = arith.extf %133 : vector<8x384xbf16> to vector<8x384xf32>
    %135 = arith.truncf %124 : vector<8x128xf32> to vector<8x128xbf16>
    %cst_31 = arith.constant dense<0.000000e+00> : vector<8x384xf32>
    %136 = tpu.matmul %135, %3, %cst_31 {dimension_numbers = #tpu.dot_dimension_numbers<[1], [0], [0], [1], [0, 0, 1, 1], [], []>} : vector<8x128xbf16>, vector<128x384xbf16>, vector<8x384xf32> -> vector<8x384xf32>
    %137 = vector.broadcast %4 : vector<1x384xf32> to vector<8x384xf32>
    %138 = arith.addf %136, %137 : vector<8x384xf32>
    %139 = vector.extract_strided_slice %134 {offsets = [0, 0], sizes = [8, 128], strides = [1, 1]} : vector<8x384xf32> to vector<8x128xf32>
    %140 = vector.extract_strided_slice %138 {offsets = [0, 0], sizes = [8, 128], strides = [1, 1]} : vector<8x384xf32> to vector<8x128xf32>
    %141 = arith.addf %139, %140 : vector<8x128xf32>
    %142 = arith.negf %141 : vector<8x128xf32>
    %143 = math.exp %142 : vector<8x128xf32>
    %cst_32 = arith.constant 1.000000e+00 : f32
    %144 = vector.broadcast %cst_32 : f32 to vector<8x128xf32>
    %145 = arith.addf %144, %143 : vector<8x128xf32>
    %146 = arith.divf %144, %145 : vector<8x128xf32>
    %147 = vector.extract_strided_slice %134 {offsets = [0, 128], sizes = [8, 128], strides = [1, 1]} : vector<8x384xf32> to vector<8x128xf32>
    %148 = vector.extract_strided_slice %138 {offsets = [0, 128], sizes = [8, 128], strides = [1, 1]} : vector<8x384xf32> to vector<8x128xf32>
    %149 = arith.addf %147, %148 : vector<8x128xf32>
    %150 = arith.negf %149 : vector<8x128xf32>
    %151 = math.exp %150 : vector<8x128xf32>
    %cst_33 = arith.constant 1.000000e+00 : f32
    %152 = vector.broadcast %cst_33 : f32 to vector<8x128xf32>
    %153 = arith.addf %152, %151 : vector<8x128xf32>
    %154 = arith.divf %152, %153 : vector<8x128xf32>
    %155 = vector.extract_strided_slice %134 {offsets = [0, 256], sizes = [8, 128], strides = [1, 1]} : vector<8x384xf32> to vector<8x128xf32>
    %156 = vector.extract_strided_slice %138 {offsets = [0, 256], sizes = [8, 128], strides = [1, 1]} : vector<8x384xf32> to vector<8x128xf32>
    %157 = arith.mulf %146, %156 : vector<8x128xf32>
    %158 = arith.addf %155, %157 : vector<8x128xf32>
    %159 = math.tanh %158 : vector<8x128xf32>
    %cst_34 = arith.constant 1.000000e+00 : f32
    %160 = vector.broadcast %cst_34 : f32 to vector<8x128xf32>
    %161 = arith.subf %160, %154 : vector<8x128xf32>
    %162 = arith.mulf %161, %159 : vector<8x128xf32>
    %163 = arith.mulf %154, %124 : vector<8x128xf32>
    %164 = arith.addf %162, %163 : vector<8x128xf32>
    %165 = arith.addi %8, %c3_i32 : i32
    %166 = vector.broadcast %165 : i32 to vector<8x1xi32>
    %167 = arith.cmpi eq, %7, %166 : vector<8x1xi32>
    %168 = vector.shape_cast %167 : vector<8x1xi1> to vector<8x1xi1>
    %169 = vector.broadcast %168 : vector<8x1xi1> to vector<8x128xi1>
    %170 = arith.select %169, %164, %130 : vector<8x128xi1>, vector<8x128xf32>
    %c4_i32 = arith.constant 4 : i32
    %171 = arith.index_cast %c4_i32 : i32 to index
    %c0_35 = arith.constant 0 : index
    %c0_36 = arith.constant 0 : index
    %172 = vector.load %arg3[%171, %c0_35, %c0_36] : memref<8x8x384xbf16, #tpu.memory_space<vmem>>, vector<1x8x384xbf16>
    %173 = vector.shape_cast %172 : vector<1x8x384xbf16> to vector<8x384xbf16>
    %174 = arith.extf %173 : vector<8x384xbf16> to vector<8x384xf32>
    %175 = arith.truncf %164 : vector<8x128xf32> to vector<8x128xbf16>
    %cst_37 = arith.constant dense<0.000000e+00> : vector<8x384xf32>
    %176 = tpu.matmul %175, %3, %cst_37 {dimension_numbers = #tpu.dot_dimension_numbers<[1], [0], [0], [1], [0, 0, 1, 1], [], []>} : vector<8x128xbf16>, vector<128x384xbf16>, vector<8x384xf32> -> vector<8x384xf32>
    %177 = vector.broadcast %4 : vector<1x384xf32> to vector<8x384xf32>
    %178 = arith.addf %176, %177 : vector<8x384xf32>
    %179 = vector.extract_strided_slice %174 {offsets = [0, 0], sizes = [8, 128], strides = [1, 1]} : vector<8x384xf32> to vector<8x128xf32>
    %180 = vector.extract_strided_slice %178 {offsets = [0, 0], sizes = [8, 128], strides = [1, 1]} : vector<8x384xf32> to vector<8x128xf32>
    %181 = arith.addf %179, %180 : vector<8x128xf32>
    %182 = arith.negf %181 : vector<8x128xf32>
    %183 = math.exp %182 : vector<8x128xf32>
    %cst_38 = arith.constant 1.000000e+00 : f32
    %184 = vector.broadcast %cst_38 : f32 to vector<8x128xf32>
    %185 = arith.addf %184, %183 : vector<8x128xf32>
    %186 = arith.divf %184, %185 : vector<8x128xf32>
    %187 = vector.extract_strided_slice %174 {offsets = [0, 128], sizes = [8, 128], strides = [1, 1]} : vector<8x384xf32> to vector<8x128xf32>
    %188 = vector.extract_strided_slice %178 {offsets = [0, 128], sizes = [8, 128], strides = [1, 1]} : vector<8x384xf32> to vector<8x128xf32>
    %189 = arith.addf %187, %188 : vector<8x128xf32>
    %190 = arith.negf %189 : vector<8x128xf32>
    %191 = math.exp %190 : vector<8x128xf32>
    %cst_39 = arith.constant 1.000000e+00 : f32
    %192 = vector.broadcast %cst_39 : f32 to vector<8x128xf32>
    %193 = arith.addf %192, %191 : vector<8x128xf32>
    %194 = arith.divf %192, %193 : vector<8x128xf32>
    %195 = vector.extract_strided_slice %174 {offsets = [0, 256], sizes = [8, 128], strides = [1, 1]} : vector<8x384xf32> to vector<8x128xf32>
    %196 = vector.extract_strided_slice %178 {offsets = [0, 256], sizes = [8, 128], strides = [1, 1]} : vector<8x384xf32> to vector<8x128xf32>
    %197 = arith.mulf %186, %196 : vector<8x128xf32>
    %198 = arith.addf %195, %197 : vector<8x128xf32>
    %199 = math.tanh %198 : vector<8x128xf32>
    %cst_40 = arith.constant 1.000000e+00 : f32
    %200 = vector.broadcast %cst_40 : f32 to vector<8x128xf32>
    %201 = arith.subf %200, %194 : vector<8x128xf32>
    %202 = arith.mulf %201, %199 : vector<8x128xf32>
    %203 = arith.mulf %194, %164 : vector<8x128xf32>
    %204 = arith.addf %202, %203 : vector<8x128xf32>
    %205 = arith.addi %8, %c4_i32 : i32
    %206 = vector.broadcast %205 : i32 to vector<8x1xi32>
    %207 = arith.cmpi eq, %7, %206 : vector<8x1xi32>
    %208 = vector.shape_cast %207 : vector<8x1xi1> to vector<8x1xi1>
    %209 = vector.broadcast %208 : vector<8x1xi1> to vector<8x128xi1>
    %210 = arith.select %209, %204, %170 : vector<8x128xi1>, vector<8x128xf32>
    %c5_i32 = arith.constant 5 : i32
    %211 = arith.index_cast %c5_i32 : i32 to index
    %c0_41 = arith.constant 0 : index
    %c0_42 = arith.constant 0 : index
    %212 = vector.load %arg3[%211, %c0_41, %c0_42] : memref<8x8x384xbf16, #tpu.memory_space<vmem>>, vector<1x8x384xbf16>
    %213 = vector.shape_cast %212 : vector<1x8x384xbf16> to vector<8x384xbf16>
    %214 = arith.extf %213 : vector<8x384xbf16> to vector<8x384xf32>
    %215 = arith.truncf %204 : vector<8x128xf32> to vector<8x128xbf16>
    %cst_43 = arith.constant dense<0.000000e+00> : vector<8x384xf32>
    %216 = tpu.matmul %215, %3, %cst_43 {dimension_numbers = #tpu.dot_dimension_numbers<[1], [0], [0], [1], [0, 0, 1, 1], [], []>} : vector<8x128xbf16>, vector<128x384xbf16>, vector<8x384xf32> -> vector<8x384xf32>
    %217 = vector.broadcast %4 : vector<1x384xf32> to vector<8x384xf32>
    %218 = arith.addf %216, %217 : vector<8x384xf32>
    %219 = vector.extract_strided_slice %214 {offsets = [0, 0], sizes = [8, 128], strides = [1, 1]} : vector<8x384xf32> to vector<8x128xf32>
    %220 = vector.extract_strided_slice %218 {offsets = [0, 0], sizes = [8, 128], strides = [1, 1]} : vector<8x384xf32> to vector<8x128xf32>
    %221 = arith.addf %219, %220 : vector<8x128xf32>
    %222 = arith.negf %221 : vector<8x128xf32>
    %223 = math.exp %222 : vector<8x128xf32>
    %cst_44 = arith.constant 1.000000e+00 : f32
    %224 = vector.broadcast %cst_44 : f32 to vector<8x128xf32>
    %225 = arith.addf %224, %223 : vector<8x128xf32>
    %226 = arith.divf %224, %225 : vector<8x128xf32>
    %227 = vector.extract_strided_slice %214 {offsets = [0, 128], sizes = [8, 128], strides = [1, 1]} : vector<8x384xf32> to vector<8x128xf32>
    %228 = vector.extract_strided_slice %218 {offsets = [0, 128], sizes = [8, 128], strides = [1, 1]} : vector<8x384xf32> to vector<8x128xf32>
    %229 = arith.addf %227, %228 : vector<8x128xf32>
    %230 = arith.negf %229 : vector<8x128xf32>
    %231 = math.exp %230 : vector<8x128xf32>
    %cst_45 = arith.constant 1.000000e+00 : f32
    %232 = vector.broadcast %cst_45 : f32 to vector<8x128xf32>
    %233 = arith.addf %232, %231 : vector<8x128xf32>
    %234 = arith.divf %232, %233 : vector<8x128xf32>
    %235 = vector.extract_strided_slice %214 {offsets = [0, 256], sizes = [8, 128], strides = [1, 1]} : vector<8x384xf32> to vector<8x128xf32>
    %236 = vector.extract_strided_slice %218 {offsets = [0, 256], sizes = [8, 128], strides = [1, 1]} : vector<8x384xf32> to vector<8x128xf32>
    %237 = arith.mulf %226, %236 : vector<8x128xf32>
    %238 = arith.addf %235, %237 : vector<8x128xf32>
    %239 = math.tanh %238 : vector<8x128xf32>
    %cst_46 = arith.constant 1.000000e+00 : f32
    %240 = vector.broadcast %cst_46 : f32 to vector<8x128xf32>
    %241 = arith.subf %240, %234 : vector<8x128xf32>
    %242 = arith.mulf %241, %239 : vector<8x128xf32>
    %243 = arith.mulf %234, %204 : vector<8x128xf32>
    %244 = arith.addf %242, %243 : vector<8x128xf32>
    %245 = arith.addi %8, %c5_i32 : i32
    %246 = vector.broadcast %245 : i32 to vector<8x1xi32>
    %247 = arith.cmpi eq, %7, %246 : vector<8x1xi32>
    %248 = vector.shape_cast %247 : vector<8x1xi1> to vector<8x1xi1>
    %249 = vector.broadcast %248 : vector<8x1xi1> to vector<8x128xi1>
    %250 = arith.select %249, %244, %210 : vector<8x128xi1>, vector<8x128xf32>
    %c6_i32 = arith.constant 6 : i32
    %251 = arith.index_cast %c6_i32 : i32 to index
    %c0_47 = arith.constant 0 : index
    %c0_48 = arith.constant 0 : index
    %252 = vector.load %arg3[%251, %c0_47, %c0_48] : memref<8x8x384xbf16, #tpu.memory_space<vmem>>, vector<1x8x384xbf16>
    %253 = vector.shape_cast %252 : vector<1x8x384xbf16> to vector<8x384xbf16>
    %254 = arith.extf %253 : vector<8x384xbf16> to vector<8x384xf32>
    %255 = arith.truncf %244 : vector<8x128xf32> to vector<8x128xbf16>
    %cst_49 = arith.constant dense<0.000000e+00> : vector<8x384xf32>
    %256 = tpu.matmul %255, %3, %cst_49 {dimension_numbers = #tpu.dot_dimension_numbers<[1], [0], [0], [1], [0, 0, 1, 1], [], []>} : vector<8x128xbf16>, vector<128x384xbf16>, vector<8x384xf32> -> vector<8x384xf32>
    %257 = vector.broadcast %4 : vector<1x384xf32> to vector<8x384xf32>
    %258 = arith.addf %256, %257 : vector<8x384xf32>
    %259 = vector.extract_strided_slice %254 {offsets = [0, 0], sizes = [8, 128], strides = [1, 1]} : vector<8x384xf32> to vector<8x128xf32>
    %260 = vector.extract_strided_slice %258 {offsets = [0, 0], sizes = [8, 128], strides = [1, 1]} : vector<8x384xf32> to vector<8x128xf32>
    %261 = arith.addf %259, %260 : vector<8x128xf32>
    %262 = arith.negf %261 : vector<8x128xf32>
    %263 = math.exp %262 : vector<8x128xf32>
    %cst_50 = arith.constant 1.000000e+00 : f32
    %264 = vector.broadcast %cst_50 : f32 to vector<8x128xf32>
    %265 = arith.addf %264, %263 : vector<8x128xf32>
    %266 = arith.divf %264, %265 : vector<8x128xf32>
    %267 = vector.extract_strided_slice %254 {offsets = [0, 128], sizes = [8, 128], strides = [1, 1]} : vector<8x384xf32> to vector<8x128xf32>
    %268 = vector.extract_strided_slice %258 {offsets = [0, 128], sizes = [8, 128], strides = [1, 1]} : vector<8x384xf32> to vector<8x128xf32>
    %269 = arith.addf %267, %268 : vector<8x128xf32>
    %270 = arith.negf %269 : vector<8x128xf32>
    %271 = math.exp %270 : vector<8x128xf32>
    %cst_51 = arith.constant 1.000000e+00 : f32
    %272 = vector.broadcast %cst_51 : f32 to vector<8x128xf32>
    %273 = arith.addf %272, %271 : vector<8x128xf32>
    %274 = arith.divf %272, %273 : vector<8x128xf32>
    %275 = vector.extract_strided_slice %254 {offsets = [0, 256], sizes = [8, 128], strides = [1, 1]} : vector<8x384xf32> to vector<8x128xf32>
    %276 = vector.extract_strided_slice %258 {offsets = [0, 256], sizes = [8, 128], strides = [1, 1]} : vector<8x384xf32> to vector<8x128xf32>
    %277 = arith.mulf %266, %276 : vector<8x128xf32>
    %278 = arith.addf %275, %277 : vector<8x128xf32>
    %279 = math.tanh %278 : vector<8x128xf32>
    %cst_52 = arith.constant 1.000000e+00 : f32
    %280 = vector.broadcast %cst_52 : f32 to vector<8x128xf32>
    %281 = arith.subf %280, %274 : vector<8x128xf32>
    %282 = arith.mulf %281, %279 : vector<8x128xf32>
    %283 = arith.mulf %274, %244 : vector<8x128xf32>
    %284 = arith.addf %282, %283 : vector<8x128xf32>
    %285 = arith.addi %8, %c6_i32 : i32
    %286 = vector.broadcast %285 : i32 to vector<8x1xi32>
    %287 = arith.cmpi eq, %7, %286 : vector<8x1xi32>
    %288 = vector.shape_cast %287 : vector<8x1xi1> to vector<8x1xi1>
    %289 = vector.broadcast %288 : vector<8x1xi1> to vector<8x128xi1>
    %290 = arith.select %289, %284, %250 : vector<8x128xi1>, vector<8x128xf32>
    %c7_i32 = arith.constant 7 : i32
    %291 = arith.index_cast %c7_i32 : i32 to index
    %c0_53 = arith.constant 0 : index
    %c0_54 = arith.constant 0 : index
    %292 = vector.load %arg3[%291, %c0_53, %c0_54] : memref<8x8x384xbf16, #tpu.memory_space<vmem>>, vector<1x8x384xbf16>
    %293 = vector.shape_cast %292 : vector<1x8x384xbf16> to vector<8x384xbf16>
    %294 = arith.extf %293 : vector<8x384xbf16> to vector<8x384xf32>
    %295 = arith.truncf %284 : vector<8x128xf32> to vector<8x128xbf16>
    %cst_55 = arith.constant dense<0.000000e+00> : vector<8x384xf32>
    %296 = tpu.matmul %295, %3, %cst_55 {dimension_numbers = #tpu.dot_dimension_numbers<[1], [0], [0], [1], [0, 0, 1, 1], [], []>} : vector<8x128xbf16>, vector<128x384xbf16>, vector<8x384xf32> -> vector<8x384xf32>
    %297 = vector.broadcast %4 : vector<1x384xf32> to vector<8x384xf32>
    %298 = arith.addf %296, %297 : vector<8x384xf32>
    %299 = vector.extract_strided_slice %294 {offsets = [0, 0], sizes = [8, 128], strides = [1, 1]} : vector<8x384xf32> to vector<8x128xf32>
    %300 = vector.extract_strided_slice %298 {offsets = [0, 0], sizes = [8, 128], strides = [1, 1]} : vector<8x384xf32> to vector<8x128xf32>
    %301 = arith.addf %299, %300 : vector<8x128xf32>
    %302 = arith.negf %301 : vector<8x128xf32>
    %303 = math.exp %302 : vector<8x128xf32>
    %cst_56 = arith.constant 1.000000e+00 : f32
    %304 = vector.broadcast %cst_56 : f32 to vector<8x128xf32>
    %305 = arith.addf %304, %303 : vector<8x128xf32>
    %306 = arith.divf %304, %305 : vector<8x128xf32>
    %307 = vector.extract_strided_slice %294 {offsets = [0, 128], sizes = [8, 128], strides = [1, 1]} : vector<8x384xf32> to vector<8x128xf32>
    %308 = vector.extract_strided_slice %298 {offsets = [0, 128], sizes = [8, 128], strides = [1, 1]} : vector<8x384xf32> to vector<8x128xf32>
    %309 = arith.addf %307, %308 : vector<8x128xf32>
    %310 = arith.negf %309 : vector<8x128xf32>
    %311 = math.exp %310 : vector<8x128xf32>
    %cst_57 = arith.constant 1.000000e+00 : f32
    %312 = vector.broadcast %cst_57 : f32 to vector<8x128xf32>
    %313 = arith.addf %312, %311 : vector<8x128xf32>
    %314 = arith.divf %312, %313 : vector<8x128xf32>
    %315 = vector.extract_strided_slice %294 {offsets = [0, 256], sizes = [8, 128], strides = [1, 1]} : vector<8x384xf32> to vector<8x128xf32>
    %316 = vector.extract_strided_slice %298 {offsets = [0, 256], sizes = [8, 128], strides = [1, 1]} : vector<8x384xf32> to vector<8x128xf32>
    %317 = arith.mulf %306, %316 : vector<8x128xf32>
    %318 = arith.addf %315, %317 : vector<8x128xf32>
    %319 = math.tanh %318 : vector<8x128xf32>
    %cst_58 = arith.constant 1.000000e+00 : f32
    %320 = vector.broadcast %cst_58 : f32 to vector<8x128xf32>
    %321 = arith.subf %320, %314 : vector<8x128xf32>
    %322 = arith.mulf %321, %319 : vector<8x128xf32>
    %323 = arith.mulf %314, %284 : vector<8x128xf32>
    %324 = arith.addf %322, %323 : vector<8x128xf32>
    %325 = arith.addi %8, %c7_i32 : i32
    %326 = vector.broadcast %325 : i32 to vector<8x1xi32>
    %327 = arith.cmpi eq, %7, %326 : vector<8x1xi32>
    %328 = vector.shape_cast %327 : vector<8x1xi1> to vector<8x1xi1>
    %329 = vector.broadcast %328 : vector<8x1xi1> to vector<8x128xi1>
    %330 = arith.select %329, %324, %290 : vector<8x128xi1>, vector<8x128xf32>
    %c8_i32_59 = arith.constant 8 : i32
    %c0_60 = arith.constant 0 : index
    %c0_61 = arith.constant 0 : index
    %331 = vector.load %arg7[%c0_60, %c0_61] : memref<8x128xf32, #tpu.memory_space<vmem>>, vector<8x128xf32>
    tpu.vector_store %arg7[%c0_60, %c0_61], %324 {strides = array<i32>} : memref<8x128xf32, #tpu.memory_space<vmem>>, vector<8x128xf32>,
    %c0_62 = arith.constant 0 : index
    %c0_63 = arith.constant 0 : index
    %332 = vector.load %arg8[%c0_62, %c0_63] : memref<8x128xf32, #tpu.memory_space<vmem>>, vector<8x128xf32>
    tpu.vector_store %arg8[%c0_62, %c0_63], %330 {strides = array<i32>} : memref<8x128xf32, #tpu.memory_space<vmem>>, vector<8x128xf32>,
    %c0_i32_64 = arith.constant 0 : i32
    %333 = arith.cmpi eq, %arg1, %c0_i32_64 : i32
    %334 = arith.extui %333 : i1 to i32
    %c0_i32_65 = arith.constant 0 : i32
    %335 = arith.cmpi ne, %334, %c0_i32_65 : i32
    scf.if %335 {
      %c0_66 = arith.constant 0 : index
      %c0_67 = arith.constant 0 : index
      %336 = vector.load %arg8[%c0_66, %c0_67] : memref<8x128xf32, #tpu.memory_space<vmem>>, vector<8x128xf32>
      %c0_68 = arith.constant 0 : index
      %c0_69 = arith.constant 0 : index
      %337 = vector.load %arg6[%c0_68, %c0_69] : memref<8x128xf32, #tpu.memory_space<vmem>>, vector<8x128xf32>
      tpu.vector_store %arg6[%c0_68, %c0_69], %336 {strides = array<i32>} : memref<8x128xf32, #tpu.memory_space<vmem>>, vector<8x128xf32>,
    } else {
    }
    return
  }
  func.func @transform_0(%arg0: i32, %arg1: i32) -> (i32, i32) {
    %c0_i32 = arith.constant 0 : i32
    %c0_i32_0 = arith.constant 0 : i32
    return %arg0, %c0_i32 : i32, i32
  }
  func.func @transform_1(%arg0: i32, %arg1: i32) -> (i32, i32, i32) {
    %c0_i32 = arith.constant 0 : i32
    %c0_i32_0 = arith.constant 0 : i32
    return %arg1, %arg0, %c0_i32 : i32, i32, i32
  }
  func.func @transform_2(%arg0: i32, %arg1: i32) -> (i32, i32) {
    %c0_i32 = arith.constant 0 : i32
    %c0_i32_0 = arith.constant 0 : i32
    %c0_i32_1 = arith.constant 0 : i32
    return %c0_i32, %c0_i32_0 : i32, i32
  }
  func.func @transform_3(%arg0: i32, %arg1: i32) -> (i32, i32) {
    %c0_i32 = arith.constant 0 : i32
    %c0_i32_0 = arith.constant 0 : i32
    %c0_i32_1 = arith.constant 0 : i32
    return %c0_i32, %c0_i32_0 : i32, i32
  }
  func.func @transform_4(%arg0: i32, %arg1: i32) -> (i32, i32) {
    %c0_i32 = arith.constant 0 : i32
    %c0_i32_0 = arith.constant 0 : i32
    return %arg0, %c0_i32 : i32, i32
  }
}

module attributes {stable_mosaic.version = 11 : i64} {
  func.func @_inproj_kernel(%arg0: i32, %arg1: i32, %arg2: i32, %arg3: memref<8x8x128xbf16, #tpu.memory_space<vmem>>, %arg4: memref<1x128x384xbf16, #tpu.memory_space<vmem>>, %arg5: memref<1x384xf32, #tpu.memory_space<vmem>>, %arg6: memref<8x1x8x384xbf16, #tpu.memory_space<vmem>>) attributes {dimension_semantics = [#tpu.dimension_semantics<parallel>, #tpu.dimension_semantics<parallel>, #tpu.dimension_semantics<parallel>], iteration_bounds = array<i64: 2, 1, 2>, scalar_prefetch = 0 : i64, scratch_operands = 0 : i64, tpu.core_type = #tpu.core_type<tc>, window_params = [{transform_indices = @transform_0, window_bounds = array<i64: 8, 8, 128>}, {transform_indices = @transform_1, window_bounds = array<i64: 1, 128, 384>}, {pipeline_mode = #tpu.pipeline_mode<synchronous>, transform_indices = @transform_2, window_bounds = array<i64: 1, 384>}, {transform_indices = @transform_3, window_bounds = array<i64: 8, 1, 8, 384>}]} {
    %c0 = arith.constant 0 : index
    %c0_0 = arith.constant 0 : index
    %c0_1 = arith.constant 0 : index
    %0 = vector.load %arg3[%c0, %c0_0, %c0_1] : memref<8x8x128xbf16, #tpu.memory_space<vmem>>, vector<8x8x128xbf16>
    %1 = vector.shape_cast %0 : vector<8x8x128xbf16> to vector<64x128xbf16>
    %c0_2 = arith.constant 0 : index
    %c0_3 = arith.constant 0 : index
    %c0_4 = arith.constant 0 : index
    %2 = vector.load %arg4[%c0_2, %c0_3, %c0_4] : memref<1x128x384xbf16, #tpu.memory_space<vmem>>, vector<1x128x384xbf16>
    %3 = vector.shape_cast %2 : vector<1x128x384xbf16> to vector<128x384xbf16>
    %cst = arith.constant dense<0.000000e+00> : vector<64x384xf32>
    %4 = tpu.matmul %1, %3, %cst {dimension_numbers = #tpu.dot_dimension_numbers<[1], [0], [0], [1], [0, 0, 1, 1], [], []>} : vector<64x128xbf16>, vector<128x384xbf16>, vector<64x384xf32> -> vector<64x384xf32>
    %c0_5 = arith.constant 0 : index
    %c0_6 = arith.constant 0 : index
    %5 = vector.load %arg5[%c0_5, %c0_6] : memref<1x384xf32, #tpu.memory_space<vmem>>, vector<1x384xf32>
    %6 = vector.broadcast %5 : vector<1x384xf32> to vector<64x384xf32>
    %7 = arith.addf %4, %6 : vector<64x384xf32>
    %8 = vector.shape_cast %7 : vector<64x384xf32> to vector<8x1x8x384xf32>
    %9 = arith.truncf %8 : vector<8x1x8x384xf32> to vector<8x1x8x384xbf16>
    %c0_7 = arith.constant 0 : index
    %c0_8 = arith.constant 0 : index
    %c0_9 = arith.constant 0 : index
    %c0_10 = arith.constant 0 : index
    %10 = vector.load %arg6[%c0_7, %c0_8, %c0_9, %c0_10] : memref<8x1x8x384xbf16, #tpu.memory_space<vmem>>, vector<8x1x8x384xbf16>
    tpu.vector_store %arg6[%c0_7, %c0_8, %c0_9, %c0_10], %9 {strides = array<i32>} : memref<8x1x8x384xbf16, #tpu.memory_space<vmem>>, vector<8x1x8x384xbf16>,
    return
  }
  func.func @transform_0(%arg0: i32, %arg1: i32, %arg2: i32) -> (i32, i32, i32) {
    %c0_i32 = arith.constant 0 : i32
    %c0_i32_0 = arith.constant 0 : i32
    return %arg2, %arg1, %c0_i32 : i32, i32, i32
  }
  func.func @transform_1(%arg0: i32, %arg1: i32, %arg2: i32) -> (i32, i32, i32) {
    %c0_i32 = arith.constant 0 : i32
    %c0_i32_0 = arith.constant 0 : i32
    %c0_i32_1 = arith.constant 0 : i32
    return %arg0, %c0_i32, %c0_i32_0 : i32, i32, i32
  }
  func.func @transform_2(%arg0: i32, %arg1: i32, %arg2: i32) -> (i32, i32) {
    %c0_i32 = arith.constant 0 : i32
    %c0_i32_0 = arith.constant 0 : i32
    %c0_i32_1 = arith.constant 0 : i32
    return %c0_i32, %c0_i32_0 : i32, i32
  }
  func.func @transform_3(%arg0: i32, %arg1: i32, %arg2: i32) -> (i32, i32, i32, i32) {
    %c0_i32 = arith.constant 0 : i32
    %c0_i32_0 = arith.constant 0 : i32
    return %arg2, %arg0, %arg1, %c0_i32 : i32, i32, i32, i32
  }
}

module attributes {stable_mosaic.version = 11 : i64} {
  func.func @_logits_kernel(%arg0: i32, %arg1: i32, %arg2: memref<8x128xbf16, #tpu.memory_space<vmem>>, %arg3: memref<8x128xbf16, #tpu.memory_space<vmem>>, %arg4: memref<128x128xbf16, #tpu.memory_space<vmem>>, %arg5: memref<8x128xf32, #tpu.memory_space<vmem>>, %arg6: memref<8x128xf32, #tpu.memory_space<vmem>>, %arg7: memref<8x128xf32, #tpu.memory_space<vmem>>) attributes {dimension_semantics = [#tpu.dimension_semantics<parallel>, #tpu.dimension_semantics<parallel>], iteration_bounds = array<i64: 1, 1>, scalar_prefetch = 0 : i64, scratch_operands = 0 : i64, tpu.core_type = #tpu.core_type<tc>, window_params = [{transform_indices = @transform_0, window_bounds = array<i64: 8, 128>}, {transform_indices = @transform_1, window_bounds = array<i64: 8, 128>}, {transform_indices = @transform_2, window_bounds = array<i64: 128, 128>}, {transform_indices = @transform_3, window_bounds = array<i64: 8, 128>}, {transform_indices = @transform_4, window_bounds = array<i64: 8, 128>}, {transform_indices = @transform_5, window_bounds = array<i64: 8, 128>}]} {
    %c0 = arith.constant 0 : index
    %c0_0 = arith.constant 0 : index
    %0 = vector.load %arg4[%c0, %c0_0] : memref<128x128xbf16, #tpu.memory_space<vmem>>, vector<128x128xbf16>
    %c0_1 = arith.constant 0 : index
    %c0_2 = arith.constant 0 : index
    %1 = vector.load %arg2[%c0_1, %c0_2] : memref<8x128xbf16, #tpu.memory_space<vmem>>, vector<8x128xbf16>
    %cst = arith.constant dense<0.000000e+00> : vector<8x128xf32>
    %2 = tpu.matmul %1, %0, %cst {dimension_numbers = #tpu.dot_dimension_numbers<[1], [1], [0], [0], [0, 0, 1, 0], [], []>} : vector<8x128xbf16>, vector<128x128xbf16>, vector<8x128xf32> -> vector<8x128xf32>
    %c0_3 = arith.constant 0 : index
    %c0_4 = arith.constant 0 : index
    %3 = vector.load %arg3[%c0_3, %c0_4] : memref<8x128xbf16, #tpu.memory_space<vmem>>, vector<8x128xbf16>
    %cst_5 = arith.constant dense<0.000000e+00> : vector<8x128xf32>
    %4 = tpu.matmul %3, %0, %cst_5 {dimension_numbers = #tpu.dot_dimension_numbers<[1], [1], [0], [0], [0, 0, 1, 0], [], []>} : vector<8x128xbf16>, vector<128x128xbf16>, vector<8x128xf32> -> vector<8x128xf32>
    %c0_6 = arith.constant 0 : index
    %c0_7 = arith.constant 0 : index
    %5 = vector.load %arg5[%c0_6, %c0_7] : memref<8x128xf32, #tpu.memory_space<vmem>>, vector<8x128xf32>
    tpu.vector_store %arg5[%c0_6, %c0_7], %2 {strides = array<i32>} : memref<8x128xf32, #tpu.memory_space<vmem>>, vector<8x128xf32>,
    %c0_8 = arith.constant 0 : index
    %c0_9 = arith.constant 0 : index
    %6 = vector.load %arg6[%c0_8, %c0_9] : memref<8x128xf32, #tpu.memory_space<vmem>>, vector<8x128xf32>
    tpu.vector_store %arg6[%c0_8, %c0_9], %4 {strides = array<i32>} : memref<8x128xf32, #tpu.memory_space<vmem>>, vector<8x128xf32>,
    %7 = arith.addf %2, %4 : vector<8x128xf32>
    %8 = arith.negf %7 : vector<8x128xf32>
    %9 = math.exp %8 : vector<8x128xf32>
    %cst_10 = arith.constant 1.000000e+00 : f32
    %10 = vector.broadcast %cst_10 : f32 to vector<8x128xf32>
    %11 = arith.addf %10, %9 : vector<8x128xf32>
    %12 = arith.divf %10, %11 : vector<8x128xf32>
    %c0_11 = arith.constant 0 : index
    %c0_12 = arith.constant 0 : index
    %13 = vector.load %arg7[%c0_11, %c0_12] : memref<8x128xf32, #tpu.memory_space<vmem>>, vector<8x128xf32>
    tpu.vector_store %arg7[%c0_11, %c0_12], %12 {strides = array<i32>} : memref<8x128xf32, #tpu.memory_space<vmem>>, vector<8x128xf32>,
    return
  }
  func.func @transform_0(%arg0: i32, %arg1: i32) -> (i32, i32) {
    %c0_i32 = arith.constant 0 : i32
    %c0_i32_0 = arith.constant 0 : i32
    return %arg1, %c0_i32 : i32, i32
  }
  func.func @transform_1(%arg0: i32, %arg1: i32) -> (i32, i32) {
    %c0_i32 = arith.constant 0 : i32
    %c0_i32_0 = arith.constant 0 : i32
    return %arg1, %c0_i32 : i32, i32
  }
  func.func @transform_2(%arg0: i32, %arg1: i32) -> (i32, i32) {
    %c0_i32 = arith.constant 0 : i32
    %c0_i32_0 = arith.constant 0 : i32
    return %arg0, %c0_i32 : i32, i32
  }
  func.func @transform_3(%arg0: i32, %arg1: i32) -> (i32, i32) {
    %c0_i32 = arith.constant 0 : i32
    return %arg1, %arg0 : i32, i32
  }
  func.func @transform_4(%arg0: i32, %arg1: i32) -> (i32, i32) {
    %c0_i32 = arith.constant 0 : i32
    return %arg1, %arg0 : i32, i32
  }
  func.func @transform_5(%arg0: i32, %arg1: i32) -> (i32, i32) {
    %c0_i32 = arith.constant 0 : i32
    return %arg1, %arg0 : i32, i32
  }
}

module attributes {stable_mosaic.version = 11 : i64} {
  func.func @kernel(%arg0: i32, %arg1: i32, %arg2: memref<8x1xi32, #tpu.memory_space<vmem>>, %arg3: memref<8x8x384xbf16, #tpu.memory_space<vmem>>, %arg4: memref<128x384xbf16, #tpu.memory_space<vmem>>, %arg5: memref<1x384xf32, #tpu.memory_space<vmem>>, %arg6: memref<8x128xf32, #tpu.memory_space<vmem>>, %arg7: memref<8x128xf32, #tpu.memory_space<vmem>>, %arg8: memref<8x128xf32, #tpu.memory_space<vmem>>) attributes {dimension_semantics = [#tpu.dimension_semantics<parallel>, #tpu.dimension_semantics<arbitrary>], iteration_bounds = array<i64: 2, 2>, scalar_prefetch = 0 : i64, scratch_operands = 2 : i64, tpu.core_type = #tpu.core_type<tc>, window_params = [{transform_indices = @transform_0, window_bounds = array<i64: 8, 1>}, {transform_indices = @transform_1, window_bounds = array<i64: 8, 8, 384>}, {pipeline_mode = #tpu.pipeline_mode<synchronous>, transform_indices = @transform_2, window_bounds = array<i64: 128, 384>}, {pipeline_mode = #tpu.pipeline_mode<synchronous>, transform_indices = @transform_3, window_bounds = array<i64: 1, 384>}, {transform_indices = @transform_4, window_bounds = array<i64: 8, 128>}]} {
    %c0_i32 = arith.constant 0 : i32
    %0 = arith.cmpi eq, %arg1, %c0_i32 : i32
    %1 = arith.extui %0 : i1 to i32
    %c0_i32_0 = arith.constant 0 : i32
    %2 = arith.cmpi ne, %1, %c0_i32_0 : i32
    scf.if %2 {
      %cst_66 = arith.constant 0.000000e+00 : f32
      %336 = vector.broadcast %cst_66 : f32 to vector<8x128xf32>
      %c0_67 = arith.constant 0 : index
      %c0_68 = arith.constant 0 : index
      %337 = vector.load %arg7[%c0_67, %c0_68] : memref<8x128xf32, #tpu.memory_space<vmem>>, vector<8x128xf32>
      tpu.vector_store %arg7[%c0_67, %c0_68], %336 {strides = array<i32>} : memref<8x128xf32, #tpu.memory_space<vmem>>, vector<8x128xf32>,
      %cst_69 = arith.constant 0.000000e+00 : f32
      %338 = vector.broadcast %cst_69 : f32 to vector<8x128xf32>
      %c0_70 = arith.constant 0 : index
      %c0_71 = arith.constant 0 : index
      %339 = vector.load %arg8[%c0_70, %c0_71] : memref<8x128xf32, #tpu.memory_space<vmem>>, vector<8x128xf32>
      tpu.vector_store %arg8[%c0_70, %c0_71], %338 {strides = array<i32>} : memref<8x128xf32, #tpu.memory_space<vmem>>, vector<8x128xf32>,
    } else {
    }
    %c0 = arith.constant 0 : index
    %c0_1 = arith.constant 0 : index
    %3 = vector.load %arg4[%c0, %c0_1] : memref<128x384xbf16, #tpu.memory_space<vmem>>, vector<128x384xbf16>
    %c0_2 = arith.constant 0 : index
    %c0_3 = arith.constant 0 : index
    %4 = vector.load %arg5[%c0_2, %c0_3] : memref<1x384xf32, #tpu.memory_space<vmem>>, vector<1x384xf32>
    %c0_4 = arith.constant 0 : index
    %c0_5 = arith.constant 0 : index
    %5 = vector.load %arg2[%c0_4, %c0_5] : memref<8x1xi32, #tpu.memory_space<vmem>>, vector<8x1xi32>
    %c1_i32 = arith.constant 1 : i32
    %6 = vector.broadcast %c1_i32 : i32 to vector<8x1xi32>
    %7 = arith.subi %5, %6 : vector<8x1xi32>
    %c8_i32 = arith.constant 8 : i32
    %8 = arith.muli %arg1, %c8_i32 : i32
    %c0_6 = arith.constant 0 : index
    %c0_7 = arith.constant 0 : index
    %9 = vector.load %arg7[%c0_6, %c0_7] : memref<8x128xf32, #tpu.memory_space<vmem>>, vector<8x128xf32>
    %c0_8 = arith.constant 0 : index
    %c0_9 = arith.constant 0 : index
    %10 = vector.load %arg8[%c0_8, %c0_9] : memref<8x128xf32, #tpu.memory_space<vmem>>, vector<8x128xf32>
    %c0_i32_10 = arith.constant 0 : i32
    %11 = arith.index_cast %c0_i32_10 : i32 to index
    %c0_11 = arith.constant 0 : index
    %c0_12 = arith.constant 0 : index
    %12 = vector.load %arg3[%11, %c0_11, %c0_12] : memref<8x8x384xbf16, #tpu.memory_space<vmem>>, vector<1x8x384xbf16>
    %13 = vector.shape_cast %12 : vector<1x8x384xbf16> to vector<8x384xbf16>
    %14 = arith.extf %13 : vector<8x384xbf16> to vector<8x384xf32>
    %15 = arith.truncf %9 : vector<8x128xf32> to vector<8x128xbf16>
    %cst = arith.constant dense<0.000000e+00> : vector<8x384xf32>
    %16 = tpu.matmul %15, %3, %cst {dimension_numbers = #tpu.dot_dimension_numbers<[1], [0], [0], [1], [0, 0, 1, 1], [], []>} : vector<8x128xbf16>, vector<128x384xbf16>, vector<8x384xf32> -> vector<8x384xf32>
    %17 = vector.broadcast %4 : vector<1x384xf32> to vector<8x384xf32>
    %18 = arith.addf %16, %17 : vector<8x384xf32>
    %19 = vector.extract_strided_slice %14 {offsets = [0, 0], sizes = [8, 128], strides = [1, 1]} : vector<8x384xf32> to vector<8x128xf32>
    %20 = vector.extract_strided_slice %18 {offsets = [0, 0], sizes = [8, 128], strides = [1, 1]} : vector<8x384xf32> to vector<8x128xf32>
    %21 = arith.addf %19, %20 : vector<8x128xf32>
    %22 = arith.negf %21 : vector<8x128xf32>
    %23 = math.exp %22 : vector<8x128xf32>
    %cst_13 = arith.constant 1.000000e+00 : f32
    %24 = vector.broadcast %cst_13 : f32 to vector<8x128xf32>
    %25 = arith.addf %24, %23 : vector<8x128xf32>
    %26 = arith.divf %24, %25 : vector<8x128xf32>
    %27 = vector.extract_strided_slice %14 {offsets = [0, 128], sizes = [8, 128], strides = [1, 1]} : vector<8x384xf32> to vector<8x128xf32>
    %28 = vector.extract_strided_slice %18 {offsets = [0, 128], sizes = [8, 128], strides = [1, 1]} : vector<8x384xf32> to vector<8x128xf32>
    %29 = arith.addf %27, %28 : vector<8x128xf32>
    %30 = arith.negf %29 : vector<8x128xf32>
    %31 = math.exp %30 : vector<8x128xf32>
    %cst_14 = arith.constant 1.000000e+00 : f32
    %32 = vector.broadcast %cst_14 : f32 to vector<8x128xf32>
    %33 = arith.addf %32, %31 : vector<8x128xf32>
    %34 = arith.divf %32, %33 : vector<8x128xf32>
    %35 = vector.extract_strided_slice %14 {offsets = [0, 256], sizes = [8, 128], strides = [1, 1]} : vector<8x384xf32> to vector<8x128xf32>
    %36 = vector.extract_strided_slice %18 {offsets = [0, 256], sizes = [8, 128], strides = [1, 1]} : vector<8x384xf32> to vector<8x128xf32>
    %37 = arith.mulf %26, %36 : vector<8x128xf32>
    %38 = arith.addf %35, %37 : vector<8x128xf32>
    %39 = math.tanh %38 : vector<8x128xf32>
    %cst_15 = arith.constant 1.000000e+00 : f32
    %40 = vector.broadcast %cst_15 : f32 to vector<8x128xf32>
    %41 = arith.subf %40, %34 : vector<8x128xf32>
    %42 = arith.mulf %41, %39 : vector<8x128xf32>
    %43 = arith.mulf %34, %9 : vector<8x128xf32>
    %44 = arith.addf %42, %43 : vector<8x128xf32>
    %45 = arith.addi %8, %c0_i32_10 : i32
    %46 = vector.broadcast %45 : i32 to vector<8x1xi32>
    %47 = arith.cmpi eq, %7, %46 : vector<8x1xi32>
    %48 = vector.shape_cast %47 : vector<8x1xi1> to vector<8x1xi1>
    %49 = vector.broadcast %48 : vector<8x1xi1> to vector<8x128xi1>
    %50 = arith.select %49, %44, %10 : vector<8x128xi1>, vector<8x128xf32>
    %c1_i32_16 = arith.constant 1 : i32
    %51 = arith.index_cast %c1_i32_16 : i32 to index
    %c0_17 = arith.constant 0 : index
    %c0_18 = arith.constant 0 : index
    %52 = vector.load %arg3[%51, %c0_17, %c0_18] : memref<8x8x384xbf16, #tpu.memory_space<vmem>>, vector<1x8x384xbf16>
    %53 = vector.shape_cast %52 : vector<1x8x384xbf16> to vector<8x384xbf16>
    %54 = arith.extf %53 : vector<8x384xbf16> to vector<8x384xf32>
    %55 = arith.truncf %44 : vector<8x128xf32> to vector<8x128xbf16>
    %cst_19 = arith.constant dense<0.000000e+00> : vector<8x384xf32>
    %56 = tpu.matmul %55, %3, %cst_19 {dimension_numbers = #tpu.dot_dimension_numbers<[1], [0], [0], [1], [0, 0, 1, 1], [], []>} : vector<8x128xbf16>, vector<128x384xbf16>, vector<8x384xf32> -> vector<8x384xf32>
    %57 = vector.broadcast %4 : vector<1x384xf32> to vector<8x384xf32>
    %58 = arith.addf %56, %57 : vector<8x384xf32>
    %59 = vector.extract_strided_slice %54 {offsets = [0, 0], sizes = [8, 128], strides = [1, 1]} : vector<8x384xf32> to vector<8x128xf32>
    %60 = vector.extract_strided_slice %58 {offsets = [0, 0], sizes = [8, 128], strides = [1, 1]} : vector<8x384xf32> to vector<8x128xf32>
    %61 = arith.addf %59, %60 : vector<8x128xf32>
    %62 = arith.negf %61 : vector<8x128xf32>
    %63 = math.exp %62 : vector<8x128xf32>
    %cst_20 = arith.constant 1.000000e+00 : f32
    %64 = vector.broadcast %cst_20 : f32 to vector<8x128xf32>
    %65 = arith.addf %64, %63 : vector<8x128xf32>
    %66 = arith.divf %64, %65 : vector<8x128xf32>
    %67 = vector.extract_strided_slice %54 {offsets = [0, 128], sizes = [8, 128], strides = [1, 1]} : vector<8x384xf32> to vector<8x128xf32>
    %68 = vector.extract_strided_slice %58 {offsets = [0, 128], sizes = [8, 128], strides = [1, 1]} : vector<8x384xf32> to vector<8x128xf32>
    %69 = arith.addf %67, %68 : vector<8x128xf32>
    %70 = arith.negf %69 : vector<8x128xf32>
    %71 = math.exp %70 : vector<8x128xf32>
    %cst_21 = arith.constant 1.000000e+00 : f32
    %72 = vector.broadcast %cst_21 : f32 to vector<8x128xf32>
    %73 = arith.addf %72, %71 : vector<8x128xf32>
    %74 = arith.divf %72, %73 : vector<8x128xf32>
    %75 = vector.extract_strided_slice %54 {offsets = [0, 256], sizes = [8, 128], strides = [1, 1]} : vector<8x384xf32> to vector<8x128xf32>
    %76 = vector.extract_strided_slice %58 {offsets = [0, 256], sizes = [8, 128], strides = [1, 1]} : vector<8x384xf32> to vector<8x128xf32>
    %77 = arith.mulf %66, %76 : vector<8x128xf32>
    %78 = arith.addf %75, %77 : vector<8x128xf32>
    %79 = math.tanh %78 : vector<8x128xf32>
    %cst_22 = arith.constant 1.000000e+00 : f32
    %80 = vector.broadcast %cst_22 : f32 to vector<8x128xf32>
    %81 = arith.subf %80, %74 : vector<8x128xf32>
    %82 = arith.mulf %81, %79 : vector<8x128xf32>
    %83 = arith.mulf %74, %44 : vector<8x128xf32>
    %84 = arith.addf %82, %83 : vector<8x128xf32>
    %85 = arith.addi %8, %c1_i32_16 : i32
    %86 = vector.broadcast %85 : i32 to vector<8x1xi32>
    %87 = arith.cmpi eq, %7, %86 : vector<8x1xi32>
    %88 = vector.shape_cast %87 : vector<8x1xi1> to vector<8x1xi1>
    %89 = vector.broadcast %88 : vector<8x1xi1> to vector<8x128xi1>
    %90 = arith.select %89, %84, %50 : vector<8x128xi1>, vector<8x128xf32>
    %c2_i32 = arith.constant 2 : i32
    %91 = arith.index_cast %c2_i32 : i32 to index
    %c0_23 = arith.constant 0 : index
    %c0_24 = arith.constant 0 : index
    %92 = vector.load %arg3[%91, %c0_23, %c0_24] : memref<8x8x384xbf16, #tpu.memory_space<vmem>>, vector<1x8x384xbf16>
    %93 = vector.shape_cast %92 : vector<1x8x384xbf16> to vector<8x384xbf16>
    %94 = arith.extf %93 : vector<8x384xbf16> to vector<8x384xf32>
    %95 = arith.truncf %84 : vector<8x128xf32> to vector<8x128xbf16>
    %cst_25 = arith.constant dense<0.000000e+00> : vector<8x384xf32>
    %96 = tpu.matmul %95, %3, %cst_25 {dimension_numbers = #tpu.dot_dimension_numbers<[1], [0], [0], [1], [0, 0, 1, 1], [], []>} : vector<8x128xbf16>, vector<128x384xbf16>, vector<8x384xf32> -> vector<8x384xf32>
    %97 = vector.broadcast %4 : vector<1x384xf32> to vector<8x384xf32>
    %98 = arith.addf %96, %97 : vector<8x384xf32>
    %99 = vector.extract_strided_slice %94 {offsets = [0, 0], sizes = [8, 128], strides = [1, 1]} : vector<8x384xf32> to vector<8x128xf32>
    %100 = vector.extract_strided_slice %98 {offsets = [0, 0], sizes = [8, 128], strides = [1, 1]} : vector<8x384xf32> to vector<8x128xf32>
    %101 = arith.addf %99, %100 : vector<8x128xf32>
    %102 = arith.negf %101 : vector<8x128xf32>
    %103 = math.exp %102 : vector<8x128xf32>
    %cst_26 = arith.constant 1.000000e+00 : f32
    %104 = vector.broadcast %cst_26 : f32 to vector<8x128xf32>
    %105 = arith.addf %104, %103 : vector<8x128xf32>
    %106 = arith.divf %104, %105 : vector<8x128xf32>
    %107 = vector.extract_strided_slice %94 {offsets = [0, 128], sizes = [8, 128], strides = [1, 1]} : vector<8x384xf32> to vector<8x128xf32>
    %108 = vector.extract_strided_slice %98 {offsets = [0, 128], sizes = [8, 128], strides = [1, 1]} : vector<8x384xf32> to vector<8x128xf32>
    %109 = arith.addf %107, %108 : vector<8x128xf32>
    %110 = arith.negf %109 : vector<8x128xf32>
    %111 = math.exp %110 : vector<8x128xf32>
    %cst_27 = arith.constant 1.000000e+00 : f32
    %112 = vector.broadcast %cst_27 : f32 to vector<8x128xf32>
    %113 = arith.addf %112, %111 : vector<8x128xf32>
    %114 = arith.divf %112, %113 : vector<8x128xf32>
    %115 = vector.extract_strided_slice %94 {offsets = [0, 256], sizes = [8, 128], strides = [1, 1]} : vector<8x384xf32> to vector<8x128xf32>
    %116 = vector.extract_strided_slice %98 {offsets = [0, 256], sizes = [8, 128], strides = [1, 1]} : vector<8x384xf32> to vector<8x128xf32>
    %117 = arith.mulf %106, %116 : vector<8x128xf32>
    %118 = arith.addf %115, %117 : vector<8x128xf32>
    %119 = math.tanh %118 : vector<8x128xf32>
    %cst_28 = arith.constant 1.000000e+00 : f32
    %120 = vector.broadcast %cst_28 : f32 to vector<8x128xf32>
    %121 = arith.subf %120, %114 : vector<8x128xf32>
    %122 = arith.mulf %121, %119 : vector<8x128xf32>
    %123 = arith.mulf %114, %84 : vector<8x128xf32>
    %124 = arith.addf %122, %123 : vector<8x128xf32>
    %125 = arith.addi %8, %c2_i32 : i32
    %126 = vector.broadcast %125 : i32 to vector<8x1xi32>
    %127 = arith.cmpi eq, %7, %126 : vector<8x1xi32>
    %128 = vector.shape_cast %127 : vector<8x1xi1> to vector<8x1xi1>
    %129 = vector.broadcast %128 : vector<8x1xi1> to vector<8x128xi1>
    %130 = arith.select %129, %124, %90 : vector<8x128xi1>, vector<8x128xf32>
    %c3_i32 = arith.constant 3 : i32
    %131 = arith.index_cast %c3_i32 : i32 to index
    %c0_29 = arith.constant 0 : index
    %c0_30 = arith.constant 0 : index
    %132 = vector.load %arg3[%131, %c0_29, %c0_30] : memref<8x8x384xbf16, #tpu.memory_space<vmem>>, vector<1x8x384xbf16>
    %133 = vector.shape_cast %132 : vector<1x8x384xbf16> to vector<8x384xbf16>
    %134 = arith.extf %133 : vector<8x384xbf16> to vector<8x384xf32>
    %135 = arith.truncf %124 : vector<8x128xf32> to vector<8x128xbf16>
    %cst_31 = arith.constant dense<0.000000e+00> : vector<8x384xf32>
    %136 = tpu.matmul %135, %3, %cst_31 {dimension_numbers = #tpu.dot_dimension_numbers<[1], [0], [0], [1], [0, 0, 1, 1], [], []>} : vector<8x128xbf16>, vector<128x384xbf16>, vector<8x384xf32> -> vector<8x384xf32>
    %137 = vector.broadcast %4 : vector<1x384xf32> to vector<8x384xf32>
    %138 = arith.addf %136, %137 : vector<8x384xf32>
    %139 = vector.extract_strided_slice %134 {offsets = [0, 0], sizes = [8, 128], strides = [1, 1]} : vector<8x384xf32> to vector<8x128xf32>
    %140 = vector.extract_strided_slice %138 {offsets = [0, 0], sizes = [8, 128], strides = [1, 1]} : vector<8x384xf32> to vector<8x128xf32>
    %141 = arith.addf %139, %140 : vector<8x128xf32>
    %142 = arith.negf %141 : vector<8x128xf32>
    %143 = math.exp %142 : vector<8x128xf32>
    %cst_32 = arith.constant 1.000000e+00 : f32
    %144 = vector.broadcast %cst_32 : f32 to vector<8x128xf32>
    %145 = arith.addf %144, %143 : vector<8x128xf32>
    %146 = arith.divf %144, %145 : vector<8x128xf32>
    %147 = vector.extract_strided_slice %134 {offsets = [0, 128], sizes = [8, 128], strides = [1, 1]} : vector<8x384xf32> to vector<8x128xf32>
    %148 = vector.extract_strided_slice %138 {offsets = [0, 128], sizes = [8, 128], strides = [1, 1]} : vector<8x384xf32> to vector<8x128xf32>
    %149 = arith.addf %147, %148 : vector<8x128xf32>
    %150 = arith.negf %149 : vector<8x128xf32>
    %151 = math.exp %150 : vector<8x128xf32>
    %cst_33 = arith.constant 1.000000e+00 : f32
    %152 = vector.broadcast %cst_33 : f32 to vector<8x128xf32>
    %153 = arith.addf %152, %151 : vector<8x128xf32>
    %154 = arith.divf %152, %153 : vector<8x128xf32>
    %155 = vector.extract_strided_slice %134 {offsets = [0, 256], sizes = [8, 128], strides = [1, 1]} : vector<8x384xf32> to vector<8x128xf32>
    %156 = vector.extract_strided_slice %138 {offsets = [0, 256], sizes = [8, 128], strides = [1, 1]} : vector<8x384xf32> to vector<8x128xf32>
    %157 = arith.mulf %146, %156 : vector<8x128xf32>
    %158 = arith.addf %155, %157 : vector<8x128xf32>
    %159 = math.tanh %158 : vector<8x128xf32>
    %cst_34 = arith.constant 1.000000e+00 : f32
    %160 = vector.broadcast %cst_34 : f32 to vector<8x128xf32>
    %161 = arith.subf %160, %154 : vector<8x128xf32>
    %162 = arith.mulf %161, %159 : vector<8x128xf32>
    %163 = arith.mulf %154, %124 : vector<8x128xf32>
    %164 = arith.addf %162, %163 : vector<8x128xf32>
    %165 = arith.addi %8, %c3_i32 : i32
    %166 = vector.broadcast %165 : i32 to vector<8x1xi32>
    %167 = arith.cmpi eq, %7, %166 : vector<8x1xi32>
    %168 = vector.shape_cast %167 : vector<8x1xi1> to vector<8x1xi1>
    %169 = vector.broadcast %168 : vector<8x1xi1> to vector<8x128xi1>
    %170 = arith.select %169, %164, %130 : vector<8x128xi1>, vector<8x128xf32>
    %c4_i32 = arith.constant 4 : i32
    %171 = arith.index_cast %c4_i32 : i32 to index
    %c0_35 = arith.constant 0 : index
    %c0_36 = arith.constant 0 : index
    %172 = vector.load %arg3[%171, %c0_35, %c0_36] : memref<8x8x384xbf16, #tpu.memory_space<vmem>>, vector<1x8x384xbf16>
    %173 = vector.shape_cast %172 : vector<1x8x384xbf16> to vector<8x384xbf16>
    %174 = arith.extf %173 : vector<8x384xbf16> to vector<8x384xf32>
    %175 = arith.truncf %164 : vector<8x128xf32> to vector<8x128xbf16>
    %cst_37 = arith.constant dense<0.000000e+00> : vector<8x384xf32>
    %176 = tpu.matmul %175, %3, %cst_37 {dimension_numbers = #tpu.dot_dimension_numbers<[1], [0], [0], [1], [0, 0, 1, 1], [], []>} : vector<8x128xbf16>, vector<128x384xbf16>, vector<8x384xf32> -> vector<8x384xf32>
    %177 = vector.broadcast %4 : vector<1x384xf32> to vector<8x384xf32>
    %178 = arith.addf %176, %177 : vector<8x384xf32>
    %179 = vector.extract_strided_slice %174 {offsets = [0, 0], sizes = [8, 128], strides = [1, 1]} : vector<8x384xf32> to vector<8x128xf32>
    %180 = vector.extract_strided_slice %178 {offsets = [0, 0], sizes = [8, 128], strides = [1, 1]} : vector<8x384xf32> to vector<8x128xf32>
    %181 = arith.addf %179, %180 : vector<8x128xf32>
    %182 = arith.negf %181 : vector<8x128xf32>
    %183 = math.exp %182 : vector<8x128xf32>
    %cst_38 = arith.constant 1.000000e+00 : f32
    %184 = vector.broadcast %cst_38 : f32 to vector<8x128xf32>
    %185 = arith.addf %184, %183 : vector<8x128xf32>
    %186 = arith.divf %184, %185 : vector<8x128xf32>
    %187 = vector.extract_strided_slice %174 {offsets = [0, 128], sizes = [8, 128], strides = [1, 1]} : vector<8x384xf32> to vector<8x128xf32>
    %188 = vector.extract_strided_slice %178 {offsets = [0, 128], sizes = [8, 128], strides = [1, 1]} : vector<8x384xf32> to vector<8x128xf32>
    %189 = arith.addf %187, %188 : vector<8x128xf32>
    %190 = arith.negf %189 : vector<8x128xf32>
    %191 = math.exp %190 : vector<8x128xf32>
    %cst_39 = arith.constant 1.000000e+00 : f32
    %192 = vector.broadcast %cst_39 : f32 to vector<8x128xf32>
    %193 = arith.addf %192, %191 : vector<8x128xf32>
    %194 = arith.divf %192, %193 : vector<8x128xf32>
    %195 = vector.extract_strided_slice %174 {offsets = [0, 256], sizes = [8, 128], strides = [1, 1]} : vector<8x384xf32> to vector<8x128xf32>
    %196 = vector.extract_strided_slice %178 {offsets = [0, 256], sizes = [8, 128], strides = [1, 1]} : vector<8x384xf32> to vector<8x128xf32>
    %197 = arith.mulf %186, %196 : vector<8x128xf32>
    %198 = arith.addf %195, %197 : vector<8x128xf32>
    %199 = math.tanh %198 : vector<8x128xf32>
    %cst_40 = arith.constant 1.000000e+00 : f32
    %200 = vector.broadcast %cst_40 : f32 to vector<8x128xf32>
    %201 = arith.subf %200, %194 : vector<8x128xf32>
    %202 = arith.mulf %201, %199 : vector<8x128xf32>
    %203 = arith.mulf %194, %164 : vector<8x128xf32>
    %204 = arith.addf %202, %203 : vector<8x128xf32>
    %205 = arith.addi %8, %c4_i32 : i32
    %206 = vector.broadcast %205 : i32 to vector<8x1xi32>
    %207 = arith.cmpi eq, %7, %206 : vector<8x1xi32>
    %208 = vector.shape_cast %207 : vector<8x1xi1> to vector<8x1xi1>
    %209 = vector.broadcast %208 : vector<8x1xi1> to vector<8x128xi1>
    %210 = arith.select %209, %204, %170 : vector<8x128xi1>, vector<8x128xf32>
    %c5_i32 = arith.constant 5 : i32
    %211 = arith.index_cast %c5_i32 : i32 to index
    %c0_41 = arith.constant 0 : index
    %c0_42 = arith.constant 0 : index
    %212 = vector.load %arg3[%211, %c0_41, %c0_42] : memref<8x8x384xbf16, #tpu.memory_space<vmem>>, vector<1x8x384xbf16>
    %213 = vector.shape_cast %212 : vector<1x8x384xbf16> to vector<8x384xbf16>
    %214 = arith.extf %213 : vector<8x384xbf16> to vector<8x384xf32>
    %215 = arith.truncf %204 : vector<8x128xf32> to vector<8x128xbf16>
    %cst_43 = arith.constant dense<0.000000e+00> : vector<8x384xf32>
    %216 = tpu.matmul %215, %3, %cst_43 {dimension_numbers = #tpu.dot_dimension_numbers<[1], [0], [0], [1], [0, 0, 1, 1], [], []>} : vector<8x128xbf16>, vector<128x384xbf16>, vector<8x384xf32> -> vector<8x384xf32>
    %217 = vector.broadcast %4 : vector<1x384xf32> to vector<8x384xf32>
    %218 = arith.addf %216, %217 : vector<8x384xf32>
    %219 = vector.extract_strided_slice %214 {offsets = [0, 0], sizes = [8, 128], strides = [1, 1]} : vector<8x384xf32> to vector<8x128xf32>
    %220 = vector.extract_strided_slice %218 {offsets = [0, 0], sizes = [8, 128], strides = [1, 1]} : vector<8x384xf32> to vector<8x128xf32>
    %221 = arith.addf %219, %220 : vector<8x128xf32>
    %222 = arith.negf %221 : vector<8x128xf32>
    %223 = math.exp %222 : vector<8x128xf32>
    %cst_44 = arith.constant 1.000000e+00 : f32
    %224 = vector.broadcast %cst_44 : f32 to vector<8x128xf32>
    %225 = arith.addf %224, %223 : vector<8x128xf32>
    %226 = arith.divf %224, %225 : vector<8x128xf32>
    %227 = vector.extract_strided_slice %214 {offsets = [0, 128], sizes = [8, 128], strides = [1, 1]} : vector<8x384xf32> to vector<8x128xf32>
    %228 = vector.extract_strided_slice %218 {offsets = [0, 128], sizes = [8, 128], strides = [1, 1]} : vector<8x384xf32> to vector<8x128xf32>
    %229 = arith.addf %227, %228 : vector<8x128xf32>
    %230 = arith.negf %229 : vector<8x128xf32>
    %231 = math.exp %230 : vector<8x128xf32>
    %cst_45 = arith.constant 1.000000e+00 : f32
    %232 = vector.broadcast %cst_45 : f32 to vector<8x128xf32>
    %233 = arith.addf %232, %231 : vector<8x128xf32>
    %234 = arith.divf %232, %233 : vector<8x128xf32>
    %235 = vector.extract_strided_slice %214 {offsets = [0, 256], sizes = [8, 128], strides = [1, 1]} : vector<8x384xf32> to vector<8x128xf32>
    %236 = vector.extract_strided_slice %218 {offsets = [0, 256], sizes = [8, 128], strides = [1, 1]} : vector<8x384xf32> to vector<8x128xf32>
    %237 = arith.mulf %226, %236 : vector<8x128xf32>
    %238 = arith.addf %235, %237 : vector<8x128xf32>
    %239 = math.tanh %238 : vector<8x128xf32>
    %cst_46 = arith.constant 1.000000e+00 : f32
    %240 = vector.broadcast %cst_46 : f32 to vector<8x128xf32>
    %241 = arith.subf %240, %234 : vector<8x128xf32>
    %242 = arith.mulf %241, %239 : vector<8x128xf32>
    %243 = arith.mulf %234, %204 : vector<8x128xf32>
    %244 = arith.addf %242, %243 : vector<8x128xf32>
    %245 = arith.addi %8, %c5_i32 : i32
    %246 = vector.broadcast %245 : i32 to vector<8x1xi32>
    %247 = arith.cmpi eq, %7, %246 : vector<8x1xi32>
    %248 = vector.shape_cast %247 : vector<8x1xi1> to vector<8x1xi1>
    %249 = vector.broadcast %248 : vector<8x1xi1> to vector<8x128xi1>
    %250 = arith.select %249, %244, %210 : vector<8x128xi1>, vector<8x128xf32>
    %c6_i32 = arith.constant 6 : i32
    %251 = arith.index_cast %c6_i32 : i32 to index
    %c0_47 = arith.constant 0 : index
    %c0_48 = arith.constant 0 : index
    %252 = vector.load %arg3[%251, %c0_47, %c0_48] : memref<8x8x384xbf16, #tpu.memory_space<vmem>>, vector<1x8x384xbf16>
    %253 = vector.shape_cast %252 : vector<1x8x384xbf16> to vector<8x384xbf16>
    %254 = arith.extf %253 : vector<8x384xbf16> to vector<8x384xf32>
    %255 = arith.truncf %244 : vector<8x128xf32> to vector<8x128xbf16>
    %cst_49 = arith.constant dense<0.000000e+00> : vector<8x384xf32>
    %256 = tpu.matmul %255, %3, %cst_49 {dimension_numbers = #tpu.dot_dimension_numbers<[1], [0], [0], [1], [0, 0, 1, 1], [], []>} : vector<8x128xbf16>, vector<128x384xbf16>, vector<8x384xf32> -> vector<8x384xf32>
    %257 = vector.broadcast %4 : vector<1x384xf32> to vector<8x384xf32>
    %258 = arith.addf %256, %257 : vector<8x384xf32>
    %259 = vector.extract_strided_slice %254 {offsets = [0, 0], sizes = [8, 128], strides = [1, 1]} : vector<8x384xf32> to vector<8x128xf32>
    %260 = vector.extract_strided_slice %258 {offsets = [0, 0], sizes = [8, 128], strides = [1, 1]} : vector<8x384xf32> to vector<8x128xf32>
    %261 = arith.addf %259, %260 : vector<8x128xf32>
    %262 = arith.negf %261 : vector<8x128xf32>
    %263 = math.exp %262 : vector<8x128xf32>
    %cst_50 = arith.constant 1.000000e+00 : f32
    %264 = vector.broadcast %cst_50 : f32 to vector<8x128xf32>
    %265 = arith.addf %264, %263 : vector<8x128xf32>
    %266 = arith.divf %264, %265 : vector<8x128xf32>
    %267 = vector.extract_strided_slice %254 {offsets = [0, 128], sizes = [8, 128], strides = [1, 1]} : vector<8x384xf32> to vector<8x128xf32>
    %268 = vector.extract_strided_slice %258 {offsets = [0, 128], sizes = [8, 128], strides = [1, 1]} : vector<8x384xf32> to vector<8x128xf32>
    %269 = arith.addf %267, %268 : vector<8x128xf32>
    %270 = arith.negf %269 : vector<8x128xf32>
    %271 = math.exp %270 : vector<8x128xf32>
    %cst_51 = arith.constant 1.000000e+00 : f32
    %272 = vector.broadcast %cst_51 : f32 to vector<8x128xf32>
    %273 = arith.addf %272, %271 : vector<8x128xf32>
    %274 = arith.divf %272, %273 : vector<8x128xf32>
    %275 = vector.extract_strided_slice %254 {offsets = [0, 256], sizes = [8, 128], strides = [1, 1]} : vector<8x384xf32> to vector<8x128xf32>
    %276 = vector.extract_strided_slice %258 {offsets = [0, 256], sizes = [8, 128], strides = [1, 1]} : vector<8x384xf32> to vector<8x128xf32>
    %277 = arith.mulf %266, %276 : vector<8x128xf32>
    %278 = arith.addf %275, %277 : vector<8x128xf32>
    %279 = math.tanh %278 : vector<8x128xf32>
    %cst_52 = arith.constant 1.000000e+00 : f32
    %280 = vector.broadcast %cst_52 : f32 to vector<8x128xf32>
    %281 = arith.subf %280, %274 : vector<8x128xf32>
    %282 = arith.mulf %281, %279 : vector<8x128xf32>
    %283 = arith.mulf %274, %244 : vector<8x128xf32>
    %284 = arith.addf %282, %283 : vector<8x128xf32>
    %285 = arith.addi %8, %c6_i32 : i32
    %286 = vector.broadcast %285 : i32 to vector<8x1xi32>
    %287 = arith.cmpi eq, %7, %286 : vector<8x1xi32>
    %288 = vector.shape_cast %287 : vector<8x1xi1> to vector<8x1xi1>
    %289 = vector.broadcast %288 : vector<8x1xi1> to vector<8x128xi1>
    %290 = arith.select %289, %284, %250 : vector<8x128xi1>, vector<8x128xf32>
    %c7_i32 = arith.constant 7 : i32
    %291 = arith.index_cast %c7_i32 : i32 to index
    %c0_53 = arith.constant 0 : index
    %c0_54 = arith.constant 0 : index
    %292 = vector.load %arg3[%291, %c0_53, %c0_54] : memref<8x8x384xbf16, #tpu.memory_space<vmem>>, vector<1x8x384xbf16>
    %293 = vector.shape_cast %292 : vector<1x8x384xbf16> to vector<8x384xbf16>
    %294 = arith.extf %293 : vector<8x384xbf16> to vector<8x384xf32>
    %295 = arith.truncf %284 : vector<8x128xf32> to vector<8x128xbf16>
    %cst_55 = arith.constant dense<0.000000e+00> : vector<8x384xf32>
    %296 = tpu.matmul %295, %3, %cst_55 {dimension_numbers = #tpu.dot_dimension_numbers<[1], [0], [0], [1], [0, 0, 1, 1], [], []>} : vector<8x128xbf16>, vector<128x384xbf16>, vector<8x384xf32> -> vector<8x384xf32>
    %297 = vector.broadcast %4 : vector<1x384xf32> to vector<8x384xf32>
    %298 = arith.addf %296, %297 : vector<8x384xf32>
    %299 = vector.extract_strided_slice %294 {offsets = [0, 0], sizes = [8, 128], strides = [1, 1]} : vector<8x384xf32> to vector<8x128xf32>
    %300 = vector.extract_strided_slice %298 {offsets = [0, 0], sizes = [8, 128], strides = [1, 1]} : vector<8x384xf32> to vector<8x128xf32>
    %301 = arith.addf %299, %300 : vector<8x128xf32>
    %302 = arith.negf %301 : vector<8x128xf32>
    %303 = math.exp %302 : vector<8x128xf32>
    %cst_56 = arith.constant 1.000000e+00 : f32
    %304 = vector.broadcast %cst_56 : f32 to vector<8x128xf32>
    %305 = arith.addf %304, %303 : vector<8x128xf32>
    %306 = arith.divf %304, %305 : vector<8x128xf32>
    %307 = vector.extract_strided_slice %294 {offsets = [0, 128], sizes = [8, 128], strides = [1, 1]} : vector<8x384xf32> to vector<8x128xf32>
    %308 = vector.extract_strided_slice %298 {offsets = [0, 128], sizes = [8, 128], strides = [1, 1]} : vector<8x384xf32> to vector<8x128xf32>
    %309 = arith.addf %307, %308 : vector<8x128xf32>
    %310 = arith.negf %309 : vector<8x128xf32>
    %311 = math.exp %310 : vector<8x128xf32>
    %cst_57 = arith.constant 1.000000e+00 : f32
    %312 = vector.broadcast %cst_57 : f32 to vector<8x128xf32>
    %313 = arith.addf %312, %311 : vector<8x128xf32>
    %314 = arith.divf %312, %313 : vector<8x128xf32>
    %315 = vector.extract_strided_slice %294 {offsets = [0, 256], sizes = [8, 128], strides = [1, 1]} : vector<8x384xf32> to vector<8x128xf32>
    %316 = vector.extract_strided_slice %298 {offsets = [0, 256], sizes = [8, 128], strides = [1, 1]} : vector<8x384xf32> to vector<8x128xf32>
    %317 = arith.mulf %306, %316 : vector<8x128xf32>
    %318 = arith.addf %315, %317 : vector<8x128xf32>
    %319 = math.tanh %318 : vector<8x128xf32>
    %cst_58 = arith.constant 1.000000e+00 : f32
    %320 = vector.broadcast %cst_58 : f32 to vector<8x128xf32>
    %321 = arith.subf %320, %314 : vector<8x128xf32>
    %322 = arith.mulf %321, %319 : vector<8x128xf32>
    %323 = arith.mulf %314, %284 : vector<8x128xf32>
    %324 = arith.addf %322, %323 : vector<8x128xf32>
    %325 = arith.addi %8, %c7_i32 : i32
    %326 = vector.broadcast %325 : i32 to vector<8x1xi32>
    %327 = arith.cmpi eq, %7, %326 : vector<8x1xi32>
    %328 = vector.shape_cast %327 : vector<8x1xi1> to vector<8x1xi1>
    %329 = vector.broadcast %328 : vector<8x1xi1> to vector<8x128xi1>
    %330 = arith.select %329, %324, %290 : vector<8x128xi1>, vector<8x128xf32>
    %c8_i32_59 = arith.constant 8 : i32
    %c0_60 = arith.constant 0 : index
    %c0_61 = arith.constant 0 : index
    %331 = vector.load %arg7[%c0_60, %c0_61] : memref<8x128xf32, #tpu.memory_space<vmem>>, vector<8x128xf32>
    tpu.vector_store %arg7[%c0_60, %c0_61], %324 {strides = array<i32>} : memref<8x128xf32, #tpu.memory_space<vmem>>, vector<8x128xf32>,
    %c0_62 = arith.constant 0 : index
    %c0_63 = arith.constant 0 : index
    %332 = vector.load %arg8[%c0_62, %c0_63] : memref<8x128xf32, #tpu.memory_space<vmem>>, vector<8x128xf32>
    tpu.vector_store %arg8[%c0_62, %c0_63], %330 {strides = array<i32>} : memref<8x128xf32, #tpu.memory_space<vmem>>, vector<8x128xf32>,
    %c1_i32_64 = arith.constant 1 : i32
    %333 = arith.cmpi eq, %arg1, %c1_i32_64 : i32
    %334 = arith.extui %333 : i1 to i32
    %c0_i32_65 = arith.constant 0 : i32
    %335 = arith.cmpi ne, %334, %c0_i32_65 : i32
    scf.if %335 {
      %c0_66 = arith.constant 0 : index
      %c0_67 = arith.constant 0 : index
      %336 = vector.load %arg8[%c0_66, %c0_67] : memref<8x128xf32, #tpu.memory_space<vmem>>, vector<8x128xf32>
      %c0_68 = arith.constant 0 : index
      %c0_69 = arith.constant 0 : index
      %337 = vector.load %arg6[%c0_68, %c0_69] : memref<8x128xf32, #tpu.memory_space<vmem>>, vector<8x128xf32>
      tpu.vector_store %arg6[%c0_68, %c0_69], %336 {strides = array<i32>} : memref<8x128xf32, #tpu.memory_space<vmem>>, vector<8x128xf32>,
    } else {
    }
    return
  }
  func.func @transform_0(%arg0: i32, %arg1: i32) -> (i32, i32) {
    %c0_i32 = arith.constant 0 : i32
    %c0_i32_0 = arith.constant 0 : i32
    return %arg0, %c0_i32 : i32, i32
  }
  func.func @transform_1(%arg0: i32, %arg1: i32) -> (i32, i32, i32) {
    %c0_i32 = arith.constant 0 : i32
    %c0_i32_0 = arith.constant 0 : i32
    return %arg1, %arg0, %c0_i32 : i32, i32, i32
  }
  func.func @transform_2(%arg0: i32, %arg1: i32) -> (i32, i32) {
    %c0_i32 = arith.constant 0 : i32
    %c0_i32_0 = arith.constant 0 : i32
    %c0_i32_1 = arith.constant 0 : i32
    return %c0_i32, %c0_i32_0 : i32, i32
  }
  func.func @transform_3(%arg0: i32, %arg1: i32) -> (i32, i32) {
    %c0_i32 = arith.constant 0 : i32
    %c0_i32_0 = arith.constant 0 : i32
    %c0_i32_1 = arith.constant 0 : i32
    return %c0_i32, %c0_i32_0 : i32, i32
  }
  func.func @transform_4(%arg0: i32, %arg1: i32) -> (i32, i32) {
    %c0_i32 = arith.constant 0 : i32
    %c0_i32_0 = arith.constant 0 : i32
    return %arg0, %c0_i32 : i32, i32
  }
}

</mosaic_0001>

<bundles_post_ra>
// kernel: hapcl_forward.11
= control target key start
LH: loop header
LB: loop body
LE: loop exit
PB: predicated region body
PF: predicated region fallthrough
CT: control target
= control target key end

     0   :  { %s1315_s15 = smov 0   ;;  %s1317_s16 = smov 0   ;;  %s1414_s0 = inlined_call_operand.vmem [shape: bf16[3,128,128], index: 0, kind: input, shape index: {}]   ;;  %s1415_s1 = inlined_call_operand.vmem [shape: bf16[3,128,128], index: 1, kind: input, shape index: {}]   ;;  %s1416_s2 = inlined_call_operand.vmem [shape: f32[3,128,128], index: 2, kind: input, shape index: {}, may-alias: {2,4}]   ;;  %s1417_s3 = inlined_call_operand.vmem [shape: bf16[3,128,128], index: 3, kind: output, shape index: {0}]   ;;  %s1418_s4 = inlined_call_operand.vmem [shape: f32[3,128,128], index: 4, kind: output, shape index: {1}, may-alias: {2,4}]  }
   0x1   :  { %s1319_s17 = smov 0  }
   0x2 LB: > { %s41_s18 = sadd.s32 1, %s1284_s16  ;;  %p1049_p0 = scmp.ge.s32.totalorder %s1288_s17, 1  ;;  %s1288_s17 = sphi %s1319_s17, %s15_s17   ;;  %s1284_s16 = sphi %s1317_s16, %s1420_s16   ;;  %s1280_s15 = sphi %s1315_s15, %s1419_s15  }
   0x3   : > { %p43_p1 = scmp.ge.s32.totalorder %s41_s18, 3  ;;  %p255_p2 = scmp.lt.s32.totalorder %s1288_s17, 4 }
   0x5   : > { %s1422_s18 = smov (%p43_p1, %s41_s18), 0  ;;  %p256_p3 = pnand %p1049_p0, %p255_p2 }
   0x6   : > { %p332_p4 = scmp.lt.s32.totalorder (!%p256_p3), %s1280_s15, 2 }
   0x7   : > { %259 = sbr.rel (%p256_p3) target bundleno = 279 (0x117), region = 32 }
   0xe   : > { %s1424_s15 = smov (!%p332_p4, %s1280_s15), 2 }
   0xf   : > { %s1336_s19 = sshll.u32 %s1424_s15, 6  ;;  %s1096_s26 = sshll.u32 %s1424_s15, 7 }
  0x10   : > { %s1342_s22 = scalar_lea.vmem %s1415_s1, %s1336_s19  ;;  %s1351_s25 = scalar_lea.vmem %s1414_s0, %s1336_s19 }
  0x11   : > { %v1250_v0 = vld [vmem:[%s1342_s22] sm:$0xff]   ;;  %v1251_v1 = vld [vmem:[%s1342_s22 + $0x8] sm:$0xff]   ;;  %v1252_v2 = vld [vmem:[%s1342_s22 + $0x10] sm:$0xff]   ;;  %s368_s29 = scalar_lea.vmem %s1416_s2, %s1096_s26  ;;  %s1373_s6 = scalar_lea.vmem %s1418_s4, %s1096_s26 }
  0x12   : > { %1178 = vmatprep.subr.bf16.mxu0 %v1250_v0  ;;  %1210 = vmatprep.subr.bf16.mxu1 %v1250_v0  ;;  %v1253_v3 = vld [vmem:[%s1342_s22 + $0x18] sm:$0xff]   ;;  %v1258_v4 = vld [vmem:[%s1351_s25] sm:$0xff]   ;;  %v1255_v7 = vld [vmem:[%s1342_s22 + $0x28] sm:$0xff]   ;;  %s1379_s9 = scalar_lea.vmem %s1417_s3, %s1336_s19 }
  0x13   : > { %1179 = vmatpush3.bf16.msra.mxu0 %v1250_v0  ;;  %1218 = vmatpush3.bf16.msra.mxu1 %v1250_v0  ;;  %v1259_v5 = vld [vmem:[%s1351_s25 + $0x20] sm:$0xff]   ;;  %v1256_v8 = vld [vmem:[%s1342_s22 + $0x30] sm:$0xff]   ;;  %v1257_v9 = vld [vmem:[%s1342_s22 + $0x38] sm:$0xff]  }
  0x14   : > { %1180 = vmatprep.subr.bf16.mxu0 %v1251_v1  ;;  %1211 = vmatprep.subr.bf16.mxu1 %v1251_v1  ;;  %v1254_v6 = vld [vmem:[%s1342_s22 + $0x20] sm:$0xff]   ;;  %v1260_v10 = vld [vmem:[%s1351_s25 + $0x8] sm:$0xff]   ;;  %v1262_v12 = vld [vmem:[%s1351_s25 + $0x10] sm:$0xff]  }
  0x15   : > { %1194 = vmatprep.mubr.bf16.mxu0 %v1258_v4  ;;  %1202 = vmatprep.mubr.bf16.mxu1 %v1259_v5  ;;  %v1261_v11 = vld [vmem:[%s1351_s25 + $0x28] sm:$0xff]   ;;  %v1263_v13 = vld [vmem:[%s1351_s25 + $0x30] sm:$0xff]   ;;  %v1264_v14 = vld [vmem:[%s1351_s25 + $0x18] sm:$0xff]  }
  0x16   : > { %v1265_v15 = vld [vmem:[%s1351_s25 + $0x38] sm:$0xff]   ;;  %v791_v16 = vld [vmem:[%s368_s29 + $0x10] sm:$0xff]  ;;  %v789_v18 = vld [vmem:[%s368_s29] sm:$0xff] }
  0x17   : > { %1181 = vmatpush3.bf16.msra.mxu0 %v1251_v1  ;;  %1219 = vmatpush3.bf16.msra.mxu1 %v1251_v1  ;;  %v799_v17 = vld [vmem:[%s368_s29 + $0x50] sm:$0xff]  ;;  %v797_v19 = vld [vmem:[%s368_s29 + $0x40] sm:$0xff]  ;;  %v792_v20 = vld [vmem:[%s368_s29 + $0x18] sm:$0xff] }
  0x18   : > { %1182 = vmatprep.subr.bf16.mxu0 %v1252_v2  ;;  %1212 = vmatprep.subr.bf16.mxu1 %v1252_v2  ;;  %v800_v21 = vld [vmem:[%s368_s29 + $0x58] sm:$0xff]  ;;  %v790_v22 = vld [vmem:[%s368_s29 + $0x8] sm:$0xff]  ;;  %v795_v24 = vld [vmem:[%s368_s29 + $0x30] sm:$0xff] }
  0x19   : > { %v798_v23 = vld [vmem:[%s368_s29 + $0x48] sm:$0xff]  ;;  %v803_v25 = vld [vmem:[%s368_s29 + $0x70] sm:$0xff]  ;;  %v793_v26 = vld [vmem:[%s368_s29 + $0x20] sm:$0xff] }
  0x1a   : > { %v801_v27 = vld [vmem:[%s368_s29 + $0x60] sm:$0xff]  ;;  %v796_v28 = vld [vmem:[%s368_s29 + $0x38] sm:$0xff]  ;;  %v794_v32 = vld [vmem:[%s368_s29 + $0x28] sm:$0xff] }
  0x1b   : > { %1183 = vmatpush3.bf16.msra.mxu0 %v1252_v2  ;;  %1220 = vmatpush3.bf16.msra.mxu1 %v1252_v2  ;;  %v804_v31 = vld [vmem:[%s368_s29 + $0x78] sm:$0xff]  ;;  %v802_v33 = vld [vmem:[%s368_s29 + $0x68] sm:$0xff] }
  0x1c   : > { %1184 = vmatprep.subr.bf16.mxu0 %v1253_v3  ;;  %1213 = vmatprep.subr.bf16.mxu1 %v1253_v3 }
  0x1f   : > { %1185 = vmatpush3.bf16.msra.mxu0 %v1253_v3  ;;  %1221 = vmatpush3.bf16.msra.mxu1 %v1253_v3 }
  0x20   : > { %1186 = vmatprep.subr.bf16.mxu0 %v1254_v6  ;;  %1214 = vmatprep.subr.bf16.mxu1 %v1254_v6 }
  0x23   : > { %1187 = vmatpush3.bf16.msra.mxu0 %v1254_v6  ;;  %1222 = vmatpush3.bf16.msra.mxu1 %v1254_v6 }
  0x24   : > { %1188 = vmatprep.subr.bf16.mxu0 %v1255_v7  ;;  %1215 = vmatprep.subr.bf16.mxu1 %v1255_v7 }
  0x27   : > { %1189 = vmatpush3.bf16.msra.mxu0 %v1255_v7  ;;  %1223 = vmatpush3.bf16.msra.mxu1 %v1255_v7 }
  0x28   : > { %1190 = vmatprep.subr.bf16.mxu0 %v1256_v8  ;;  %1216 = vmatprep.subr.bf16.mxu1 %v1256_v8 }
  0x2b   : > { %1191 = vmatpush3.bf16.msra.mxu0 %v1256_v8  ;;  %1224 = vmatpush3.bf16.msra.mxu1 %v1256_v8 }
  0x2c   : > { %1192 = vmatprep.subr.bf16.mxu0 %v1257_v9  ;;  %1217 = vmatprep.subr.bf16.mxu1 %v1257_v9 }
  0x2f   : > { %1193 = vmatpush3.bf16.msra.mxu0 %v1257_v9  ;;  %1225 = vmatpush3.bf16.msra.mxu1 %v1257_v9 }
  0x32   : > { %1195 = vmatmul.mubr.bf16.vlgmr.msra.gmra.mrb[0].mxu0 %v1260_v10  ;;  %1203 = vmatmul.mubr.bf16.vlgmr.msra.gmra.mrb[0].mxu1 %v1261_v11 }
  0x33   : > { %1198 = vmatprep.mubr.bf16.mxu0 %v1262_v12  ;;  %1206 = vmatprep.mubr.bf16.mxu1 %v1263_v13 }
  0x3a   : > { %1199 = vmatmul.mubr.bf16.gmra.mrb[4].mxu0 %v1264_v14  ;;  %1207 = vmatmul.mubr.bf16.gmra.mrb[4].mxu1 %v1265_v15 }
 0x105   : > { %v1196_v29 = vpop.f32.mrb[0].mxu0  ;;  %v1204_v30 = vpop.f32.mrb[0].mxu1 }
 0x106   : > { %v807_v34 = vadd.f32 %v1196_v29, %v791_v16  ;;  %v815_v35 = vadd.f32 %v1204_v30, %v799_v17  ;;  %v595_v36 = vpop.f32.mrb[1].mxu0  ;;  %v627_v37 = vpop.f32.mrb[1].mxu1 }
 0x107   : > { %v805_v38 = vadd.f32 %v789_v18, %v595_v36  ;;  %v813_v39 = vadd.f32 %v797_v19, %v627_v37  ;;  %v1197_v40 = vpop.f32.mrb[2].mxu0  ;;  %v1205_v41 = vpop.f32.mrb[2].mxu1 }
 0x108   : > { %v1123_v42 = vpack.c.bf16 %v1197_v40, %v1196_v29  ;;  %v808_v43 = vadd.f32 %v1197_v40, %v792_v20  ;;  %v1143_v44 = vpack.c.bf16 %v1205_v41, %v1204_v30  ;;  %v816_v45 = vadd.f32 %v1205_v41, %v800_v21  ;;  %v598_v46 = vpop.f32.mrb[3].mxu0  ;;  %v630_v47 = vpop.f32.mrb[3].mxu1  ;;  %823 = vst [vmem:[%s1373_s6 + $0x10] sm:$0xff] %v807_v34 }
 0x109   : > { %831 = vst [vmem:[%s1373_s6 + $0x50] sm:$0xff] %v815_v35  ;;  %v1118_v48 = vpack.c.bf16 %v598_v46, %v595_v36  ;;  %v806_v49 = vadd.f32 %v790_v22, %v598_v46  ;;  %v1138_v50 = vpack.c.bf16 %v630_v47, %v627_v37  ;;  %v814_v51 = vadd.f32 %v798_v23, %v630_v47 }
 0x10a   : > { %821 = vst [vmem:[%s1373_s6] sm:$0xff] %v805_v38  ;;  %829 = vst [vmem:[%s1373_s6 + $0x40] sm:$0xff] %v813_v39 }
 0x10b   : > { %1155 = vst [vmem:[%s1379_s9 + $0x8] sm:$0xff] %v1123_v42   ;;  %1159 = vst [vmem:[%s1379_s9 + $0x28] sm:$0xff] %v1143_v44  }
 0x10c   : > { %824 = vst [vmem:[%s1373_s6 + $0x18] sm:$0xff] %v808_v43  ;;  %832 = vst [vmem:[%s1373_s6 + $0x58] sm:$0xff] %v816_v45 }
 0x10d   : > { %1119 = vst [vmem:[%s1379_s9] sm:$0xff] %v1118_v48   ;;  %1158 = vst [vmem:[%s1379_s9 + $0x20] sm:$0xff] %v1138_v50   ;;  %v1200_v52 = vpop.f32.mrb[4].mxu0  ;;  %v1208_v53 = vpop.f32.mrb[4].mxu1 }
 0x10e   : > { %822 = vst [vmem:[%s1373_s6 + $0x8] sm:$0xff] %v806_v49  ;;  %830 = vst [vmem:[%s1373_s6 + $0x48] sm:$0xff] %v814_v51  ;;  %v811_v54 = vadd.f32 %v1200_v52, %v795_v24  ;;  %v819_v55 = vadd.f32 %v1208_v53, %v803_v25  ;;  %v611_v56 = vpop.f32.mrb[5].mxu0  ;;  %v643_v57 = vpop.f32.mrb[5].mxu1 }
 0x10f   : > { %v809_v58 = vadd.f32 %v793_v26, %v611_v56  ;;  %v817_v59 = vadd.f32 %v801_v27, %v643_v57  ;;  %v1201_v60 = vpop.f32.mrb[6].mxu0  ;;  %v1209_v61 = vpop.f32.mrb[6].mxu1 }
 0x110   : > { %v1133_v62 = vpack.c.bf16 %v1201_v60, %v1200_v52  ;;  %v812_v63 = vadd.f32 %v1201_v60, %v796_v28  ;;  %v1153_v0 = vpack.c.bf16 %v1209_v61, %v1208_v53  ;;  %v820_v1 = vadd.f32 %v1209_v61, %v804_v31  ;;  %v614_v2 = vpop.f32.mrb[7].mxu0  ;;  %v646_v3 = vpop.f32.mrb[7].mxu1  ;;  %827 = vst [vmem:[%s1373_s6 + $0x30] sm:$0xff] %v811_v54 }
 0x111   : > { %835 = vst [vmem:[%s1373_s6 + $0x70] sm:$0xff] %v819_v55  ;;  %v1128_v4 = vpack.c.bf16 %v614_v2, %v611_v56  ;;  %v810_v5 = vadd.f32 %v794_v32, %v614_v2  ;;  %v1148_v6 = vpack.c.bf16 %v646_v3, %v643_v57  ;;  %v818_v7 = vadd.f32 %v802_v33, %v646_v3 }
 0x112   : > { %825 = vst [vmem:[%s1373_s6 + $0x20] sm:$0xff] %v809_v58  ;;  %833 = vst [vmem:[%s1373_s6 + $0x60] sm:$0xff] %v817_v59 }
 0x113   : > { %1157 = vst [vmem:[%s1379_s9 + $0x18] sm:$0xff] %v1133_v62   ;;  %1161 = vst [vmem:[%s1379_s9 + $0x38] sm:$0xff] %v1153_v0  }
 0x114   : > { %828 = vst [vmem:[%s1373_s6 + $0x38] sm:$0xff] %v812_v63  ;;  %836 = vst [vmem:[%s1373_s6 + $0x78] sm:$0xff] %v820_v1 }
 0x115   : > { %1156 = vst [vmem:[%s1379_s9 + $0x10] sm:$0xff] %v1128_v4   ;;  %1160 = vst [vmem:[%s1379_s9 + $0x30] sm:$0xff] %v1148_v6  }
 0x116   : > { %826 = vst [vmem:[%s1373_s6 + $0x28] sm:$0xff] %v810_v5  ;;  %834 = vst [vmem:[%s1373_s6 + $0x68] sm:$0xff] %v818_v7 }
 0x117 PF: > { %s15_s17 = sadd.s32 1, %s1288_s17   ;;  %s1419_s15 = smov %s1284_s16 }
 0x118   : > { %p12_p5 = scmp.ge.s32.totalorder %s15_s17, 5   ;;  %s1420_s16 = smov %s1422_s18 }
 0x11a   :  { %14 = sbr.rel (!%p12_p5) target bundleno = 2 (0x2), region = 88 }

// kernel: hapcl_forward.12
= control target key start
LH: loop header
LB: loop body
LE: loop exit
PB: predicated region body
PF: predicated region fallthrough
CT: control target
= control target key end

     0   :  { %10 = vsyncpa [#allocation4], 0  ;;  %s1577_s0 = inlined_call_operand.vmem [shape: bf16[3,128,128], index: 0, kind: input, shape index: {}]   ;;  %s1578_s1 = inlined_call_operand.vmem [shape: bf16[3,128,128], index: 1, kind: input, shape index: {}]   ;;  %s1579_s2 = inlined_call_operand.vmem [shape: f32[3,128,128], index: 2, kind: input, shape index: {}, may-alias: {2,4}]   ;;  %s1580_s3 = inlined_call_operand.hbm [shape: bf16[3,128,128], index: 3, kind: output, shape index: {0}]   ;;  %s1581_s4 = inlined_call_operand.vmem [shape: f32[3,128,128], index: 4, kind: output, shape index: {1}, may-alias: {2,4}]  }
   0x1   :  { %12 = vsyncpa [#allocation4 + $0x1], 0  ;;  %s1393_s15 = smov 0   ;;  %s1395_s16 = smov 0  }
   0x2   :  { %s1397_s17 = smov 0   ;;  %s1399_s18 = smov 0  }
   0x3   :  { %s1401_s19 = smov 0   ;;  %s1403_s20 = smov 0  }
   0x4 LB: > { %s1029_s21 = sadd.s32 4294967295, %s1363_s20   ;;  %s1030_s22 = sadd.s32 4294967294, %s1363_s20   ;;  %s1363_s20 = sphi %s1403_s20, %s18_s20   ;;  %s1359_s19 = sphi %s1401_s19, %s1588_s19   ;;  %s1355_s18 = sphi %s1399_s18, %s1587_s18   ;;  %s1351_s17 = sphi %s1397_s17, %s1586_s17   ;;  %s1347_s16 = sphi %s1395_s16, %s1585_s16   ;;  %s1343_s15 = sphi %s1393_s15, %s1584_s15  }
   0x5   : > { %s44_s23 = sadd.s32 1, %s1359_s19  ;;  %s145_s24 = sadd.s32 1, %s1351_s17 }
   0x6   : > { %p46_p0 = scmp.ge.s32.totalorder %s44_s23, 3  ;;  %p155_p1 = scmp.ne.s32.totalorder %s1351_s17, %s1347_s16 }
   0x7   : > { %p156_p2 = scmp.eq.s32.totalorder %s1029_s21, 2  ;;  %p161_p3 = scmp.ne.s32.totalorder %s1347_s16, %s1343_s15 }
   0x8   : > { %s1590_s23 = smov (%p46_p0, %s44_s23), 0  ;;  %p162_p5 = scmp.eq.s32.totalorder %s1030_s22, 2 }
   0x9   : > { %p1433_p4 = por %p156_p2, %p155_p1  ;;  %s138_s26 = ssub.s32 %s1359_s19, %s1590_s23 }
   0xa   : > { %p1033_p6 = scmp.ge.s32.totalorder %s1363_s20, 1  ;;  %p143_p7 = scmp.eq.s32.totalorder %s138_s26, 0 }
   0xb   : > { %p1440_p8 = por %p162_p5, %p161_p3  ;;  %p258_p9 = scmp.lt.s32.totalorder %s1363_s20, 4 }
   0xc   : > { %s1446_s28 = scalar_select %p143_p7, %s1351_s17, %s145_s24  }
   0xd   : > { %p259_p10 = pnand %p1033_p6, %p258_p9 }
   0xe   : > { %p328_p11 = scmp.lt.s32.totalorder (!%p259_p10), %s1355_s18, 2  ;;  %s310_s21 = sand.u32 (!%p259_p10), 1, %s1347_s16  }
   0xf   : > { %262 = sbr.rel (%p259_p10) target bundleno = 302 (0x12e), region = 32  ;;  %s1486_s22 = sshll.u32 (!%p259_p10), %s310_s21, 6 }
  0x10   : > { %s1100_s5 = sshll.u32 (!%p259_p10), %s1355_s18, 10  ;;  %s1531_s9 = scalar_lea.sflag (!%p259_p10), [#allocation4], %s310_s21 }
  0x11   : > { %s1515_s8 = scalar_lea.hbm (!%p259_p10), %s1580_s3, %s1100_s5 }
  0x16   : > { %s1450_s29 = scalar_select %p328_p11, %s1355_s18, 2 }
  0x18   : > { %s1080_s30 = sshll.u32 %s1450_s29, 6  ;;  %s1082_s11 = sshll.u32 %s1450_s29, 7 }
  0x19   : > { %s1456_s7 = scalar_lea.vmem %s1578_s1, %s1080_s30  ;;  %s1464_s10 = scalar_lea.vmem %s1577_s0, %s1080_s30 }
  0x1a   : > { %v1269_v0 = vld [vmem:[%s1456_s7] sm:$0xff]   ;;  %v1270_v1 = vld [vmem:[%s1456_s7 + $0x8] sm:$0xff]   ;;  %v1271_v2 = vld [vmem:[%s1456_s7 + $0x10] sm:$0xff]   ;;  %s364_s14 = scalar_lea.vmem %s1579_s2, %s1082_s11  ;;  %s1491_s29 = scalar_lea.vmem %s1581_s4, %s1082_s11 }
  0x1b   : > { %1164 = vmatprep.subr.bf16.mxu0 %v1269_v0  ;;  %1196 = vmatprep.subr.bf16.mxu1 %v1269_v0  ;;  %v1272_v3 = vld [vmem:[%s1456_s7 + $0x18] sm:$0xff]   ;;  %v1277_v4 = vld [vmem:[%s1464_s10] sm:$0xff]   ;;  %v1274_v7 = vld [vmem:[%s1456_s7 + $0x28] sm:$0xff]   ;;  %s1498_s30 = scalar_lea.vmem [#allocation3], %s1486_s22  ;;  %s1365_s11 = smov [#allocation3]  }
  0x1c   : > { %1165 = vmatpush3.bf16.msra.mxu0 %v1269_v0  ;;  %1204 = vmatpush3.bf16.msra.mxu1 %v1269_v0  ;;  %v1278_v5 = vld [vmem:[%s1464_s10 + $0x20] sm:$0xff]   ;;  %v1275_v8 = vld [vmem:[%s1456_s7 + $0x30] sm:$0xff]   ;;  %v1276_v9 = vld [vmem:[%s1456_s7 + $0x38] sm:$0xff]   ;;  %s850_s6 = sshll.u32 %s1498_s30, 4  ;;  %s1289_s12 = sshll.u32 %s1365_s11, 4  ;;  %s1517_s6 = int_to_ptr.vmem [resolvable:$true] %s850_s6  ;;  %s1290_s12 = int_to_ptr.vmem [resolvable:$false] %s1289_s12 }
  0x1d   : > { %1166 = vmatprep.subr.bf16.mxu0 %v1270_v1  ;;  %1197 = vmatprep.subr.bf16.mxu1 %v1270_v1  ;;  %v1273_v6 = vld [vmem:[%s1456_s7 + $0x20] sm:$0xff]   ;;  %v1279_v10 = vld [vmem:[%s1464_s10 + $0x8] sm:$0xff]   ;;  %v1281_v12 = vld [vmem:[%s1464_s10 + $0x10] sm:$0xff]   ;;  %s1291_s13 = scalar_lea.vmem %s1290_s12, 2048  ;;  %p1292_p1 = scmp.lt.s32.totalorder %s1517_s6, %s1290_s12 }
  0x1e   : > { %1180 = vmatprep.mubr.bf16.mxu0 %v1277_v4  ;;  %1188 = vmatprep.mubr.bf16.mxu1 %v1278_v5  ;;  %v1280_v11 = vld [vmem:[%s1464_s10 + $0x28] sm:$0xff]   ;;  %v1282_v13 = vld [vmem:[%s1464_s10 + $0x30] sm:$0xff]   ;;  %v1283_v14 = vld [vmem:[%s1464_s10 + $0x18] sm:$0xff]  }
  0x1f   : > { %v1284_v15 = vld [vmem:[%s1464_s10 + $0x38] sm:$0xff]   ;;  %v775_v16 = vld [vmem:[%s364_s14 + $0x10] sm:$0xff]  ;;  %v773_v18 = vld [vmem:[%s364_s14] sm:$0xff]  ;;  %s1285_s10 = scalar_lea.vmem %s1517_s6, 1024 }
  0x20   : > { %1167 = vmatpush3.bf16.msra.mxu0 %v1270_v1  ;;  %1205 = vmatpush3.bf16.msra.mxu1 %v1270_v1  ;;  %v783_v17 = vld [vmem:[%s364_s14 + $0x50] sm:$0xff]  ;;  %v781_v19 = vld [vmem:[%s364_s14 + $0x40] sm:$0xff]  ;;  %v776_v20 = vld [vmem:[%s364_s14 + $0x18] sm:$0xff]  ;;  %p1286_p12 = scmp.ne.s32.totalorder %s1517_s6, %s1285_s10  ;;  %p1293_p2 = scmp.lt.s32.totalorder %s1291_s13, %s1285_s10 }
  0x21   : > { %1168 = vmatprep.subr.bf16.mxu0 %v1271_v2  ;;  %1198 = vmatprep.subr.bf16.mxu1 %v1271_v2  ;;  %v784_v21 = vld [vmem:[%s364_s14 + $0x58] sm:$0xff]  ;;  %v774_v22 = vld [vmem:[%s364_s14 + $0x8] sm:$0xff]  ;;  %v779_v24 = vld [vmem:[%s364_s14 + $0x30] sm:$0xff] }
  0x22   : > { %v782_v23 = vld [vmem:[%s364_s14 + $0x48] sm:$0xff]  ;;  %v787_v25 = vld [vmem:[%s364_s14 + $0x70] sm:$0xff]  ;;  %v777_v26 = vld [vmem:[%s364_s14 + $0x20] sm:$0xff]  ;;  %p1287_p13 = pnand %p1286_p12, %p1433_p4  ;;  %p1294_p3 = por %p1293_p2, %p1292_p1 }
  0x23   : > { %v785_v27 = vld [vmem:[%s364_s14 + $0x60] sm:$0xff]  ;;  %v780_v28 = vld [vmem:[%s364_s14 + $0x38] sm:$0xff]  ;;  %v778_v32 = vld [vmem:[%s364_s14 + $0x28] sm:$0xff] }
  0x24   : > { %1169 = vmatpush3.bf16.msra.mxu0 %v1271_v2  ;;  %1206 = vmatpush3.bf16.msra.mxu1 %v1271_v2  ;;  %v788_v31 = vld [vmem:[%s364_s14 + $0x78] sm:$0xff]  ;;  %v786_v33 = vld [vmem:[%s364_s14 + $0x68] sm:$0xff]  ;;  %p1288_p0 = pneg %p1287_p13 }
  0x25   : > { %1170 = vmatprep.subr.bf16.mxu0 %v1272_v3  ;;  %1199 = vmatprep.subr.bf16.mxu1 %v1272_v3 }
  0x26   : > { %p1295_p5 = pnand %p1294_p3, %p1288_p0 }
  0x28   : > { %1171 = vmatpush3.bf16.msra.mxu0 %v1272_v3  ;;  %1207 = vmatpush3.bf16.msra.mxu1 %v1272_v3 }
  0x29   : > { %1172 = vmatprep.subr.bf16.mxu0 %v1273_v6  ;;  %1200 = vmatprep.subr.bf16.mxu1 %v1273_v6 }
  0x2c   : > { %1173 = vmatpush3.bf16.msra.mxu0 %v1273_v6  ;;  %1208 = vmatpush3.bf16.msra.mxu1 %v1273_v6 }
  0x2d   : > { %1174 = vmatprep.subr.bf16.mxu0 %v1274_v7  ;;  %1201 = vmatprep.subr.bf16.mxu1 %v1274_v7 }
  0x30   : > { %1175 = vmatpush3.bf16.msra.mxu0 %v1274_v7  ;;  %1209 = vmatpush3.bf16.msra.mxu1 %v1274_v7 }
  0x31   : > { %1176 = vmatprep.subr.bf16.mxu0 %v1275_v8  ;;  %1202 = vmatprep.subr.bf16.mxu1 %v1275_v8 }
  0x34   : > { %1177 = vmatpush3.bf16.msra.mxu0 %v1275_v8  ;;  %1210 = vmatpush3.bf16.msra.mxu1 %v1275_v8 }
  0x35   : > { %1178 = vmatprep.subr.bf16.mxu0 %v1276_v9  ;;  %1203 = vmatprep.subr.bf16.mxu1 %v1276_v9 }
  0x38   : > { %1179 = vmatpush3.bf16.msra.mxu0 %v1276_v9  ;;  %1211 = vmatpush3.bf16.msra.mxu1 %v1276_v9 }
  0x3b   : > { %1181 = vmatmul.mubr.bf16.vlgmr.msra.gmra.mrb[0].mxu0 %v1279_v10  ;;  %1189 = vmatmul.mubr.bf16.vlgmr.msra.gmra.mrb[0].mxu1 %v1280_v11 }
  0x3c   : > { %1184 = vmatprep.mubr.bf16.mxu0 %v1281_v12  ;;  %1192 = vmatprep.mubr.bf16.mxu1 %v1282_v13 }
  0x43   : > { %1185 = vmatmul.mubr.bf16.gmra.mrb[4].mxu0 %v1283_v14  ;;  %1193 = vmatmul.mubr.bf16.gmra.mrb[4].mxu1 %v1284_v15 }
 0x10e   : > { %v1182_v29 = vpop.f32.mrb[0].mxu0  ;;  %v1190_v30 = vpop.f32.mrb[0].mxu1 }
 0x10f   : > { %v791_v34 = vadd.f32 %v1182_v29, %v775_v16  ;;  %v799_v35 = vadd.f32 %v1190_v30, %v783_v17  ;;  %v579_v36 = vpop.f32.mrb[1].mxu0  ;;  %v611_v37 = vpop.f32.mrb[1].mxu1 }
 0x110   : > { %v789_v38 = vadd.f32 %v773_v18, %v579_v36  ;;  %v797_v39 = vadd.f32 %v781_v19, %v611_v37  ;;  %v1183_v40 = vpop.f32.mrb[2].mxu0  ;;  %v1191_v41 = vpop.f32.mrb[2].mxu1 }
 0x111   : > { %v1109_v42 = vpack.c.bf16 %v1183_v40, %v1182_v29  ;;  %v792_v43 = vadd.f32 %v1183_v40, %v776_v20  ;;  %v1129_v44 = vpack.c.bf16 %v1191_v41, %v1190_v30  ;;  %v800_v45 = vadd.f32 %v1191_v41, %v784_v21  ;;  %v582_v46 = vpop.f32.mrb[3].mxu0  ;;  %v614_v47 = vpop.f32.mrb[3].mxu1  ;;  %807 = vst [vmem:[%s1491_s29 + $0x10] sm:$0xff] %v791_v34 }
 0x112   : > { %815 = vst [vmem:[%s1491_s29 + $0x50] sm:$0xff] %v799_v35  ;;  %v1104_v48 = vpack.c.bf16 %v582_v46, %v579_v36  ;;  %v790_v49 = vadd.f32 %v774_v22, %v582_v46  ;;  %v1124_v50 = vpack.c.bf16 %v614_v47, %v611_v37  ;;  %v798_v51 = vadd.f32 %v782_v23, %v614_v47 }
 0x113   : > { %805 = vst [vmem:[%s1491_s29] sm:$0xff] %v789_v38  ;;  %813 = vst [vmem:[%s1491_s29 + $0x40] sm:$0xff] %v797_v39 }
 0x114   : > { %1141 = vst [vmem:[%s1498_s30 + $0x8] sm:$0xff] %v1109_v42   ;;  %1145 = vst [vmem:[%s1498_s30 + $0x28] sm:$0xff] %v1129_v44  }
 0x115   : > { %808 = vst [vmem:[%s1491_s29 + $0x18] sm:$0xff] %v792_v43  ;;  %816 = vst [vmem:[%s1491_s29 + $0x58] sm:$0xff] %v800_v45 }
 0x116   : > { %1105 = vst [vmem:[%s1498_s30] sm:$0xff] %v1104_v48   ;;  %1144 = vst [vmem:[%s1498_s30 + $0x20] sm:$0xff] %v1124_v50   ;;  %v1186_v52 = vpop.f32.mrb[4].mxu0  ;;  %v1194_v53 = vpop.f32.mrb[4].mxu1 }
 0x117   : > { %806 = vst [vmem:[%s1491_s29 + $0x8] sm:$0xff] %v790_v49  ;;  %814 = vst [vmem:[%s1491_s29 + $0x48] sm:$0xff] %v798_v51  ;;  %v795_v54 = vadd.f32 %v1186_v52, %v779_v24  ;;  %v803_v55 = vadd.f32 %v1194_v53, %v787_v25  ;;  %v595_v56 = vpop.f32.mrb[5].mxu0  ;;  %v627_v57 = vpop.f32.mrb[5].mxu1 }
 0x118   : > { %v793_v58 = vadd.f32 %v777_v26, %v595_v56  ;;  %v801_v59 = vadd.f32 %v785_v27, %v627_v57  ;;  %v1187_v60 = vpop.f32.mrb[6].mxu0  ;;  %v1195_v61 = vpop.f32.mrb[6].mxu1 }
 0x119   : > { %v1119_v62 = vpack.c.bf16 %v1187_v60, %v1186_v52  ;;  %v796_v63 = vadd.f32 %v1187_v60, %v780_v28  ;;  %v1139_v0 = vpack.c.bf16 %v1195_v61, %v1194_v53  ;;  %v804_v1 = vadd.f32 %v1195_v61, %v788_v31  ;;  %v598_v2 = vpop.f32.mrb[7].mxu0  ;;  %v630_v3 = vpop.f32.mrb[7].mxu1  ;;  %811 = vst [vmem:[%s1491_s29 + $0x30] sm:$0xff] %v795_v54 }
 0x11a   : > { %819 = vst [vmem:[%s1491_s29 + $0x70] sm:$0xff] %v803_v55  ;;  %v1114_v4 = vpack.c.bf16 %v598_v2, %v595_v56  ;;  %v794_v5 = vadd.f32 %v778_v32, %v598_v2  ;;  %v1134_v6 = vpack.c.bf16 %v630_v3, %v627_v57  ;;  %v802_v7 = vadd.f32 %v786_v33, %v630_v3 }
 0x11b   : > { %809 = vst [vmem:[%s1491_s29 + $0x20] sm:$0xff] %v793_v58  ;;  %817 = vst [vmem:[%s1491_s29 + $0x60] sm:$0xff] %v801_v59 }
 0x11c   : > { %1143 = vst [vmem:[%s1498_s30 + $0x18] sm:$0xff] %v1119_v62   ;;  %1147 = vst [vmem:[%s1498_s30 + $0x38] sm:$0xff] %v1139_v0  }
 0x11d   : > { %812 = vst [vmem:[%s1491_s29 + $0x38] sm:$0xff] %v796_v63  ;;  %820 = vst [vmem:[%s1491_s29 + $0x78] sm:$0xff] %v804_v1 }
 0x11e   : > { %1142 = vst [vmem:[%s1498_s30 + $0x10] sm:$0xff] %v1114_v4   ;;  %1146 = vst [vmem:[%s1498_s30 + $0x30] sm:$0xff] %v1134_v6  }
 0x11f   : > { %810 = vst [vmem:[%s1491_s29 + $0x28] sm:$0xff] %v794_v5  ;;  %818 = vst [vmem:[%s1491_s29 + $0x68] sm:$0xff] %v802_v7 }
 0x120   : > { %1298 = shalt.err (!%p1295_p5)
}
 0x121   : > { %s1299_s14 = scalar_lea.hbm %s1515_s8, 1024  ;;  %s1303_s24 = scalar_lea.hbm %s1580_s3, 3072 }
 0x122   : > { %p1300_p6 = scmp.ne.s32.totalorder %s1515_s8, %s1299_s14  ;;  %p1304_p10 = scmp.lt.u32.totalorder %s1515_s8, %s1580_s3 }
 0x123   : > { %p1305_p11 = scmp.lt.u32.totalorder %s1303_s24, %s1299_s14  ;;  %p1307_p13 = scmp.lt.u32.totalorder %s1299_s14, %s1515_s8 }
 0x124   : > { %p1301_p7 = pnand %p1300_p6, %p1433_p4 }
 0x125   : > { %p1306_p12 = por %p1305_p11, %p1304_p10 }
 0x126   : > { %p1302_p9 = pneg %p1301_p7 }
 0x127   : > { %p1308_p0 = por %p1307_p13, %p1306_p12 }
 0x129   : > { %p1309_p1 = pnand %p1308_p0, %p1302_p9 }
 0x12b   : > { %1312 = shalt.err (!%p1309_p1)
}
 0x12c   : > { %s1366_s30 = smov 64   ;;  %s1367_s5 = smov 4  }
 0x12d   : > { %1212 = dma.vmem_to_hbm [thread:$0]  (%p1433_p4), %s1517_s6, 1024, %s1515_s8, %s1531_s9, %s1366_s30, %s1366_s30, %s1367_s5  }
 0x12e PF: > { %p1218_p2 = scmp.ge.s32.totalorder %s1363_s20, 2  ;;  %s869_s18 = sand.u32 1, %s1343_s15  }
 0x12f   : > { %s870_s7 = scalar_lea.sflag [#allocation4], %s869_s18 }
 0x130   : > { %p1215_p3 = pnand %p1218_p2, %p1440_p8 }
 0x132   : > { %1338 = dma.done.wait (!%p1215_p3), %s870_s7, 1024  }
 0x133   : > { %1340 = vsyncadd (!%p1215_p3), %s870_s7, 4294966272  ;;  %s18_s20 = sadd.s32 1, %s1363_s20   ;;  %s1584_s15 = smov %s1347_s16 }
 0x134   : > { %p15_p5 = scmp.ge.s32.totalorder %s18_s20, 5   ;;  %s1585_s16 = smov %s1351_s17 }
 0x135   : > { %s1586_s17 = smov %s1446_s28  ;;  %s1587_s18 = smov %s1359_s19 }
 0x136   : > { %s1588_s19 = smov %s1590_s23  ;;  %17 = sbr.rel (!%p15_p5) target bundleno = 4 (0x4), region = 93 }
 0x13d   :  { %890 = vsyncpa [#allocation4], 1 }
 0x13e   :  { %892 = vsyncpa [#allocation4 + $0x1], 1 }

// kernel: tile.23
= control target key start
LH: loop header
LB: loop body
LE: loop exit
PB: predicated region body
PF: predicated region fallthrough
CT: control target
= control target key end

     0   :  { %s22_s0 = inlined_call_operand.vmem [shape: s32[8], index: 0, kind: input, shape index: {}]   ;;  %s23_s1 = inlined_call_operand.vmem [shape: s32[2,8], index: 1, kind: output, shape index: {}]  }
   0x1   :  { %v4_v0 = vld [vmem:[%s22_s0] ss:$0 sm:$0xff] }
   0x2   :  { %5 = vst [vmem:[%s23_s1] sm:$0x3] %v4_v0 }

// kernel: tile.1
= control target key start
LH: loop header
LB: loop body
LE: loop exit
PB: predicated region body
PF: predicated region fallthrough
CT: control target
= control target key end

     0   :  { %s66_s8 = smov 125   ;;  %vm7_vm0 = vcmask 7168   ;;  %s67_s11 = smov 126   ;;  %s117_s0 = inlined_call_operand.vmem [shape: s32[2,8], index: 0, kind: input, shape index: {}]   ;;  %s118_s1 = inlined_call_operand.vmem [shape: s32[16,1], index: 1, kind: output, shape index: {}]  }
   0x1   :  { %v4_v0 = vld [vmem:[%s117_s0] sm:$0x3]  ;;  %s65_s0 = smov 127   ;;  %s68_s12 = smov 124  }
   0x2   :  { %5 = vst [vmem:[#allocation0] sm:$0x3] %v4_v0  ;;  %s69_s13 = smov 123   ;;  %s70_s14 = smov 122  }
   0x3   :  { %s71_s15 = smov 121  }
   0x9   :  { %v9_v1 = vld [vmem:[#allocation0] sm:$0x3]  }
   0xa   :  { %v21_v2 = vld [vmem:[#allocation0] sm:$0x3]   ;;  %10 = vrot.lane.b32.xlu0 %v9_v1, %s65_s0 }
   0xb   :  { %22 = vrot.lane.b32.xlu1 %v21_v2, %s66_s8  ;;  %v15_v3 = vld [vmem:[#allocation0] sm:$0x3]  }
   0xc   :  { %v27_v4 = vld [vmem:[#allocation0] sm:$0x3]  }
   0xd   :  { %v6_v5 = vld [vmem:[#allocation0] sm:$0x3]  }
   0xe   :  { %8 = vst.msk [vmem:[%s118_s1] ss:$8 sm:$0x3] %vm7_vm0, %v6_v5   ;;  %16 = vrot.lane.b32.xlu0 %v15_v3, %s67_s11  ;;  %v33_v6 = vld [vmem:[#allocation0] sm:$0x3]  }
   0xf   :  { %28 = vrot.lane.b32.xlu1 %v27_v4, %s68_s12  ;;  %v39_v7 = vld [vmem:[#allocation0] sm:$0x3]  }
  0x10   :  { %v45_v8 = vld [vmem:[#allocation0] sm:$0x3]  }
  0x12   :  { %34 = vrot.lane.b32.xlu0 %v33_v6, %s69_s13 }
  0x13   :  { %40 = vrot.lane.b32.xlu1 %v39_v7, %s70_s14 }
  0x16   :  { %46 = vrot.lane.b32.xlu0 %v45_v8, %s71_s15 }
  0x7c   :  { %v11_v9 = vpop.permute.xlu0 %10  }
  0x7d   :  { %v23_v10 = vpop.permute.xlu1 %22   ;;  %51 = vst.msk [vmem:[%s118_s1 + $0x1] ss:$8 sm:$0x3] %vm7_vm0, %v11_v9  }
  0x7e   :  { %53 = vst.msk [vmem:[%s118_s1 + $0x3] ss:$8 sm:$0x3] %vm7_vm0, %v23_v10  }
  0x80   :  { %v17_v11 = vpop.permute.xlu0 %16  }
  0x81   :  { %v29_v12 = vpop.permute.xlu1 %28   ;;  %52 = vst.msk [vmem:[%s118_s1 + $0x2] ss:$8 sm:$0x3] %vm7_vm0, %v17_v11  }
  0x82   :  { %54 = vst.msk [vmem:[%s118_s1 + $0x4] ss:$8 sm:$0x3] %vm7_vm0, %v29_v12  }
  0x84   :  { %v35_v13 = vpop.permute.xlu0 %34  }
  0x85   :  { %v41_v14 = vpop.permute.xlu1 %40   ;;  %55 = vst.msk [vmem:[%s118_s1 + $0x5] ss:$8 sm:$0x3] %vm7_vm0, %v35_v13  }
  0x86   :  { %56 = vst.msk [vmem:[%s118_s1 + $0x6] ss:$8 sm:$0x3] %vm7_vm0, %v41_v14  }
  0x88   :  { %v47_v15 = vpop.permute.xlu0 %46  }
  0x89   :  { %57 = vst.msk [vmem:[%s118_s1 + $0x7] ss:$8 sm:$0x3] %vm7_vm0, %v47_v15  }

// kernel: hapcl_forward.13
= control target key start
LH: loop header
LB: loop body
LE: loop exit
PB: predicated region body
PF: predicated region fallthrough
CT: control target
= control target key end

     0   :  { %s1113_s12 = smov 0   ;;  %s1115_s13 = smov 0   ;;  %s1282_s0 = inlined_call_operand.vmem [shape: bf16[8,8,128], index: 0, kind: input, shape index: {}]   ;;  %s1283_s1 = inlined_call_operand.vmem [shape: bf16[2,128,384], index: 1, kind: input, shape index: {}]   ;;  %s1284_s2 = inlined_call_operand.vmem [shape: f32[1,384], index: 2, kind: input, shape index: {}]   ;;  %s1285_s3 = inlined_call_operand.vmem [shape: bf16[8,2,8,384], index: 3, kind: output, shape index: {}]  }
   0x1   :  { %s1117_s14 = smov 0   ;;  %s1119_s15 = smov 0  }
   0x2   :  { %s1121_s16 = smov 0  }
   0x3 LB: > { %s850_s17 = sadd.s32 4294967295, %s1090_s16   ;;  %s32_s18 = sadd.s32 1, %s1086_s15  ;;  %s1090_s16 = sphi %s1121_s16, %s13_s16   ;;  %s1086_s15 = sphi %s1119_s15, %s1290_s15   ;;  %s1082_s14 = sphi %s1117_s14, %s1289_s14   ;;  %s1078_s13 = sphi %s1115_s13, %s1288_s13   ;;  %s1074_s12 = sphi %s1113_s12, %s1287_s12  }
   0x4   : > { %p34_p0 = scmp.ge.s32.totalorder %s32_s18, 2  ;;  %s118_s19 = sadd.s32 1, %s1078_s13 }
   0x5   : > { %p128_p1 = scmp.ne.s32.totalorder %s1078_s13, %s1074_s12  ;;  %p129_p2 = scmp.eq.s32.totalorder %s850_s17, 1 }
   0x6   : > { %s1292_s18 = smov (%p34_p0, %s32_s18), 0  ;;  %p855_p4 = scmp.ge.s32.totalorder %s1090_s16, 1 }
   0x7   : > { %p1145_p3 = por %p129_p2, %p128_p1  ;;  %s112_s21 = ssub.s32 %s1086_s15, %s1292_s18 }
   0x8   : > { %p176_p5 = scmp.lt.s32.totalorder %s1090_s16, 3  ;;  %p116_p6 = scmp.eq.s32.totalorder %s112_s21, 0 }
   0xa   : > { %p177_p7 = pnand %p855_p4, %p176_p5 }
   0xb   : > { %s1154_s22 = scalar_select %p116_p6, %s1078_s13, %s118_s19  }
   0xc   : > { %180 = sbr.rel (%p177_p7) target bundleno = 309 (0x135), region = 32  ;;  %p216_p8 = scmp.lt.s32.totalorder (!%p177_p7), %s1082_s14, 1  ;;  %v1092_v0 = vmov (!%p177_p7), 0   ;;  %v1045_v1 = vld [vmem:[%s1282_s0] sm:$0xff] (!%p177_p7)   ;;  %v1048_v26 = vld [vmem:[%s1282_s0 + $0x8] sm:$0xff] (!%p177_p7)   ;;  %v1050_v27 = vld [vmem:[%s1282_s0 + $0x10] sm:$0xff] (!%p177_p7)   ;;  %v265_v29 = vlaneseq (!%p177_p7) }
   0xd   : > { %464 = vmatprep.mubr.bf16.mxu0 (!%p177_p7), %v1092_v0  ;;  %964 = vmatprep.mubr.bf16.mxu1 (!%p177_p7), %v1045_v1  ;;  %v1051_v28 = vld [vmem:[%s1282_s0 + $0x18] sm:$0xff] (!%p177_p7)   ;;  %v263_v32 = vld [vmem:[%s1284_s2] sm:$0x7] (!%p177_p7)  ;;  %s204_s11 = sand.u32 (!%p177_p7), 1, %s1074_s12  }
   0xe   : > { %v266_v30 = vshrl.u32 (!%p177_p7), %v265_v29, 7  ;;  %s972_s17 = smul.u32 (!%p177_p7), 96, %s204_s11 }
  0x10   : > { %v267_v31 = vsub.s32 (!%p177_p7), 0, %v266_v30  ;;  %v271_v33 = vsub.s32 (!%p177_p7), 1, %v266_v30  ;;  %v275_v36 = vsub.s32 (!%p177_p7), 2, %v266_v30  ;;  %s1215_s12 = scalar_lea.vmem (!%p177_p7), [#allocation2], %s972_s17 }
  0x12   : > { %v1207_v34 = vrot.slane (!%p177_p7), %v263_v32, %v267_v31  ;;  %v1209_v35 = vrot.slane (!%p177_p7), %v263_v32, %v271_v33  ;;  %v276_v44 = vrot.slane (!%p177_p7), %v263_v32, %v275_v36 }
  0x13   : > { %s217_s25 = scalar_select %p216_p8, %s1082_s14, 1 }
  0x14   : > { %s974_s19 = smul.u32 (%p1145_p3), 12, %s1082_s14 }
  0x15   : > { %s973_s26 = smul.u32 192, %s217_s25 }
  0x16   : > { %s704_s23 = scalar_lea.vmem (%p1145_p3), %s1285_s3, %s974_s19 }
  0x17   : > { %s1165_s29 = scalar_lea.vmem %s1283_s1, %s973_s26 }
  0x18   : > { %v1016_v2 = vld [vmem:[%s1165_s29 + $0x4] ss:$12 sps:$4 sm:$0xff]   ;;  %v1018_v3 = vld [vmem:[%s1165_s29] ss:$12 sps:$4 sm:$0xff]   ;;  %v1019_v4 = vld [vmem:[%s1165_s29 + $0x1c] ss:$12 sps:$4 sm:$0xff]  }
  0x19   : > { %432 = vmatprep.subr.bf16.mxu0 %v1016_v2  ;;  %v1021_v5 = vld [vmem:[%s1165_s29 + $0x18] ss:$12 sps:$4 sm:$0xff]   ;;  %v1022_v6 = vld [vmem:[%s1165_s29 + $0x34] ss:$12 sps:$4 sm:$0xff]   ;;  %v1024_v8 = vld [vmem:[%s1165_s29 + $0x30] ss:$12 sps:$4 sm:$0xff]  }
  0x1a   : > { %433 = vmatpush1.bf16.msra.mxu0 %v1018_v3  ;;  %v1028_v7 = vld [vmem:[%s1165_s29 + $0x8] ss:$12 sps:$4 sm:$0xff]   ;;  %v1025_v9 = vld [vmem:[%s1165_s29 + $0x4c] ss:$12 sps:$4 sm:$0xff]   ;;  %v1029_v13 = vld [vmem:[%s1165_s29 + $0x64] ss:$12 sps:$4 sm:$0xff]  }
  0x1b   : > { %434 = vmatprep.subr.bf16.mxu0 %v1019_v4  ;;  %948 = vmatprep.subr.bf16.mxu1 %v1028_v7  ;;  %v1032_v10 = vld [vmem:[%s1165_s29 + $0x20] ss:$12 sps:$4 sm:$0xff]   ;;  %v1036_v11 = vld [vmem:[%s1165_s29 + $0x38] ss:$12 sps:$4 sm:$0xff]   ;;  %v1027_v12 = vld [vmem:[%s1165_s29 + $0x48] ss:$12 sps:$4 sm:$0xff]  }
  0x1c   : > { %949 = vmatpush3.bf16.msra.mxu1 %v1028_v7  ;;  %v1040_v14 = vld [vmem:[%s1165_s29 + $0x50] ss:$12 sps:$4 sm:$0xff]   ;;  %v1031_v15 = vld [vmem:[%s1165_s29 + $0x60] ss:$12 sps:$4 sm:$0xff]   ;;  %v1044_v17 = vld [vmem:[%s1165_s29 + $0x68] ss:$12 sps:$4 sm:$0xff]  }
  0x1d   : > { %950 = vmatprep.subr.bf16.mxu1 %v1032_v10  ;;  %v1033_v16 = vld [vmem:[%s1165_s29 + $0x7c] ss:$12 sps:$4 sm:$0xff]   ;;  %v1035_v18 = vld [vmem:[%s1165_s29 + $0x78] ss:$12 sps:$4 sm:$0xff]   ;;  %v1037_v19 = vld [vmem:[%s1165_s29 + $0x94] ss:$12 sps:$4 sm:$0xff]  }
  0x1e   : > { %435 = vmatpush1.bf16.msra.mxu0 %v1021_v5  ;;  %v1046_v20 = vld [vmem:[%s1165_s29 + $0x80] ss:$12 sps:$4 sm:$0xff]   ;;  %v1039_v21 = vld [vmem:[%s1165_s29 + $0x90] ss:$12 sps:$4 sm:$0xff]   ;;  %v1047_v23 = vld [vmem:[%s1165_s29 + $0x98] ss:$12 sps:$4 sm:$0xff]  }
  0x1f   : > { %436 = vmatprep.subr.bf16.mxu0 %v1022_v6  ;;  %v1041_v22 = vld [vmem:[%s1165_s29 + $0xac] ss:$12 sps:$4 sm:$0xff]   ;;  %v1043_v24 = vld [vmem:[%s1165_s29 + $0xa8] ss:$12 sps:$4 sm:$0xff]   ;;  %v1049_v25 = vld [vmem:[%s1165_s29 + $0xb0] ss:$12 sps:$4 sm:$0xff]  }
  0x20   : > { %951 = vmatpush3.bf16.msra.mxu1 %v1032_v10 }
  0x21   : > { %952 = vmatprep.subr.bf16.mxu1 %v1036_v11 }
  0x22   : > { %437 = vmatpush1.bf16.msra.mxu0 %v1024_v8 }
  0x23   : > { %438 = vmatprep.subr.bf16.mxu0 %v1025_v9 }
  0x24   : > { %953 = vmatpush3.bf16.msra.mxu1 %v1036_v11 }
  0x25   : > { %954 = vmatprep.subr.bf16.mxu1 %v1040_v14 }
  0x26   : > { %439 = vmatpush1.bf16.msra.mxu0 %v1027_v12 }
  0x27   : > { %440 = vmatprep.subr.bf16.mxu0 %v1029_v13 }
  0x28   : > { %955 = vmatpush3.bf16.msra.mxu1 %v1040_v14 }
  0x29   : > { %956 = vmatprep.subr.bf16.mxu1 %v1044_v17 }
  0x2a   : > { %441 = vmatpush1.bf16.msra.mxu0 %v1031_v15 }
  0x2b   : > { %442 = vmatprep.subr.bf16.mxu0 %v1033_v16 }
  0x2c   : > { %957 = vmatpush3.bf16.msra.mxu1 %v1044_v17 }
  0x2d   : > { %958 = vmatprep.subr.bf16.mxu1 %v1046_v20 }
  0x2e   : > { %443 = vmatpush1.bf16.msra.mxu0 %v1035_v18 }
  0x2f   : > { %444 = vmatprep.subr.bf16.mxu0 %v1037_v19 }
  0x30   : > { %959 = vmatpush3.bf16.msra.mxu1 %v1046_v20 }
  0x31   : > { %960 = vmatprep.subr.bf16.mxu1 %v1047_v23 }
  0x32   : > { %445 = vmatpush1.bf16.msra.mxu0 %v1039_v21 }
  0x33   : > { %446 = vmatprep.subr.bf16.mxu0 %v1041_v22 }
  0x34   : > { %961 = vmatpush3.bf16.msra.mxu1 %v1047_v23 }
  0x35   : > { %962 = vmatprep.subr.bf16.mxu1 %v1049_v25 }
  0x36   : > { %447 = vmatpush1.bf16.msra.mxu0 %v1043_v24 }
  0x38   : > { %963 = vmatpush3.bf16.msra.mxu1 %v1049_v25 }
  0x39   : > { %465 = vmatmul.mubr.bf16.vlgmr.msra.gmra.mrb[0].mxu0 %v1045_v1 }
  0x3a   : > { %474 = vmatprep.mubr.bf16.mxu0 %v1092_v0 }
  0x3b   : > { %965 = vmatmul.mubr.bf16.vlgmr.msra.gmra.mrb[0].mxu1 %v1048_v26 }
  0x3c   : > { %968 = vmatprep.mubr.bf16.mxu1 %v1050_v27 }
  0x41   : > { %475 = vmatmul.mubr.bf16.gmra.mrb[4].mxu0 %v1048_v26 }
  0x42   : > { %484 = vmatprep.mubr.bf16.mxu0 %v1092_v0 }
  0x43   : > { %969 = vmatmul.mubr.bf16.gmra.mrb[4].mxu1 %v1051_v28 }
  0x49   : > { %485 = vmatmul.mubr.bf16.gmra.mrb[8].mxu0 %v1050_v27 }
  0x4a   : > { %494 = vmatprep.mubr.bf16.mxu0 %v1092_v0 }
  0x51   : > { %495 = vmatmul.mubr.bf16.gmra.mrb[12].mxu0 %v1051_v28 }
 0x10c   : > { %v466_v37 = vpop.f32.mrb[0].mxu0 }
 0x10d   : > { %v467_v38 = vadd.f32 %v466_v37, %v1207_v34  ;;  %v468_v39 = vpop.f32.mrb[1].mxu0 }
 0x10e   : > { %v469_v40 = vadd.f32 %v468_v39, %v1209_v35  ;;  %v470_v41 = vpop.f32.mrb[2].mxu0  ;;  %v966_v48 = vpop.f32.mrb[0].mxu1 }
 0x10f   : > { %v471_v42 = vadd.f32 %v470_v41, %v1207_v34  ;;  %v472_v43 = vpop.f32.mrb[3].mxu0  ;;  %v548_v49 = vadd.f32 %v966_v48, %v276_v44  ;;  %v539_v50 = vpop.f32.mrb[1].mxu1 }
 0x110   : > { %v920_v45 = vpack.c.bf16 %v469_v40, %v467_v38  ;;  %v473_v46 = vadd.f32 %v472_v43, %v1209_v35  ;;  %v540_v52 = vadd.f32 %v539_v50, %v276_v44  ;;  %v967_v53 = vpop.f32.mrb[2].mxu1 }
 0x111   : > { %v925_v56 = vpack.c.bf16 %v548_v49, %v548_v49  ;;  %v551_v57 = vadd.f32 %v967_v53, %v276_v44  ;;  %v542_v58 = vpop.f32.mrb[3].mxu1 }
 0x112   : > { %674 = vst [vmem:[%s1215_s12] sm:$0xff] %v920_v45  ;;  %v922_v47 = vpack.c.bf16 %v473_v46, %v471_v42  ;;  %v921_v61 = vpack.c.bf16 %v540_v52, %v540_v52  ;;  %v543_v62 = vadd.f32 %v542_v58, %v276_v44 }
 0x113   : > { %679 = vst [vmem:[%s1215_s12 + $0x20] sm:$0xf] %v925_v56  ;;  %v927_v1 = vpack.c.bf16 %v551_v57, %v551_v57 }
 0x114   : > { %676 = vst [vmem:[%s1215_s12 + $0xc] sm:$0xff] %v922_v47  ;;  %v476_v51 = vpop.f32.mrb[4].mxu0  ;;  %675 = vst [vmem:[%s1215_s12 + $0x8] sm:$0xf] %v921_v61  ;;  %v923_v4 = vpack.c.bf16 %v543_v62, %v543_v62 }
 0x115   : > { %v477_v54 = vadd.f32 %v476_v51, %v1207_v34  ;;  %v478_v55 = vpop.f32.mrb[5].mxu0  ;;  %681 = vst [vmem:[%s1215_s12 + $0x2c] sm:$0xf] %v927_v1 }
 0x116   : > { %v479_v59 = vadd.f32 %v478_v55, %v1209_v35  ;;  %v480_v60 = vpop.f32.mrb[6].mxu0  ;;  %677 = vst [vmem:[%s1215_s12 + $0x14] sm:$0xf] %v923_v4  ;;  %v970_v6 = vpop.f32.mrb[4].mxu1 }
 0x117   : > { %v481_v63 = vadd.f32 %v480_v60, %v1207_v34  ;;  %v482_v0 = vpop.f32.mrb[7].mxu0  ;;  %v564_v7 = vadd.f32 %v970_v6, %v276_v44  ;;  %v555_v8 = vpop.f32.mrb[5].mxu1 }
 0x118   : > { %v924_v2 = vpack.c.bf16 %v479_v59, %v477_v54  ;;  %v483_v3 = vadd.f32 %v482_v0, %v1209_v35  ;;  %v556_v10 = vadd.f32 %v555_v8, %v276_v44  ;;  %v971_v11 = vpop.f32.mrb[6].mxu1 }
 0x119   : > { %v933_v14 = vpack.c.bf16 %v564_v7, %v564_v7  ;;  %v567_v15 = vadd.f32 %v971_v11, %v276_v44  ;;  %v558_v16 = vpop.f32.mrb[7].mxu1 }
 0x11a   : > { %678 = vst [vmem:[%s1215_s12 + $0x18] sm:$0xff] %v924_v2  ;;  %v926_v5 = vpack.c.bf16 %v483_v3, %v481_v63  ;;  %v929_v19 = vpack.c.bf16 %v556_v10, %v556_v10  ;;  %v559_v20 = vadd.f32 %v558_v16, %v276_v44  ;;  %v906_v48 = vld [vmem:[%s1215_s12 + $0x20] sm:$0xf] (%p1145_p3) }
 0x11b   : > { %687 = vst [vmem:[%s1215_s12 + $0x50] sm:$0xf] %v933_v14  ;;  %v935_v23 = vpack.c.bf16 %v567_v15, %v567_v15  ;;  %v721_v40 = vld [vmem:[%s1215_s12 + $0xc] sm:$0xff] (%p1145_p3)  ;;  %v902_v46 = vld [vmem:[%s1215_s12 + $0x8] sm:$0xf] (%p1145_p3) }
 0x11c   : > { %680 = vst [vmem:[%s1215_s12 + $0x24] sm:$0xff] %v926_v5  ;;  %v486_v9 = vpop.f32.mrb[8].mxu0  ;;  %683 = vst [vmem:[%s1215_s12 + $0x38] sm:$0xf] %v929_v19  ;;  %v931_v26 = vpack.c.bf16 %v559_v20, %v559_v20  ;;  %v908_v49 = vld [vmem:[%s1215_s12 + $0x2c] sm:$0xf] (%p1145_p3) }
 0x11d   : > { %v487_v12 = vadd.f32 %v486_v9, %v1207_v34  ;;  %v488_v13 = vpop.f32.mrb[9].mxu0  ;;  %689 = vst [vmem:[%s1215_s12 + $0x5c] sm:$0xf] %v935_v23  ;;  %722 = vst [vmem:[%s704_s23 + $0x18] sm:$0xff] (%p1145_p3), %v721_v40  ;;  %v904_v47 = vld [vmem:[%s1215_s12 + $0x14] sm:$0xf] (%p1145_p3) }
 0x11e   : > { %v489_v17 = vadd.f32 %v488_v13, %v1209_v35  ;;  %v490_v18 = vpop.f32.mrb[10].mxu0  ;;  %685 = vst [vmem:[%s1215_s12 + $0x44] sm:$0xf] %v931_v26  ;;  %903 = vst [vmem:[%s704_s23 + $0x8] sm:$0xf] (%p1145_p3), %v902_v46 }
 0x11f   : > { %v491_v21 = vadd.f32 %v490_v18, %v1207_v34  ;;  %v492_v22 = vpop.f32.mrb[11].mxu0  ;;  %905 = vst [vmem:[%s704_s23 + $0x20] sm:$0xf] (%p1145_p3), %v904_v47  ;;  %907 = vst [vmem:[%s704_s23 + $0x38] sm:$0xf] (%p1145_p3), %v906_v48 }
 0x120   : > { %v928_v24 = vpack.c.bf16 %v489_v17, %v487_v12  ;;  %v493_v25 = vadd.f32 %v492_v22, %v1209_v35  ;;  %909 = vst [vmem:[%s704_s23 + $0x50] sm:$0xf] (%p1145_p3), %v908_v49 }
 0x122   : > { %682 = vst [vmem:[%s1215_s12 + $0x30] sm:$0xff] %v928_v24  ;;  %v930_v27 = vpack.c.bf16 %v493_v25, %v491_v21  ;;  %v914_v52 = vld [vmem:[%s1215_s12 + $0x50] sm:$0xf] (%p1145_p3) }
 0x123   : > { %v725_v41 = vld [vmem:[%s1215_s12 + $0x24] sm:$0xff] (%p1145_p3)  ;;  %v910_v50 = vld [vmem:[%s1215_s12 + $0x38] sm:$0xf] (%p1145_p3)  ;;  %915 = vst [vmem:[%s704_s23 + $0x98] sm:$0xf] (%p1145_p3), %v914_v52 }
 0x124   : > { %684 = vst [vmem:[%s1215_s12 + $0x3c] sm:$0xff] %v930_v27  ;;  %v496_v28 = vpop.f32.mrb[12].mxu0  ;;  %726 = vst [vmem:[%s704_s23 + $0x48] sm:$0xff] (%p1145_p3), %v725_v41  ;;  %v916_v53 = vld [vmem:[%s1215_s12 + $0x5c] sm:$0xf] (%p1145_p3) }
 0x125   : > { %v497_v29 = vadd.f32 %v496_v28, %v1207_v34  ;;  %v498_v30 = vpop.f32.mrb[13].mxu0  ;;  %v912_v51 = vld [vmem:[%s1215_s12 + $0x44] sm:$0xf] (%p1145_p3)  ;;  %911 = vst [vmem:[%s704_s23 + $0x68] sm:$0xf] (%p1145_p3), %v910_v50 }
 0x126   : > { %v499_v31 = vadd.f32 %v498_v30, %v1209_v35  ;;  %v500_v32 = vpop.f32.mrb[14].mxu0  ;;  %696 = sbr.rel (!%p1145_p3) target bundleno = 309 (0x135), region = 36  ;;  %913 = vst [vmem:[%s704_s23 + $0x80] sm:$0xf] (%p1145_p3), %v912_v51  ;;  %917 = vst [vmem:[%s704_s23 + $0xb0] sm:$0xf] (%p1145_p3), %v916_v53 }
 0x127   : > { %v501_v33 = vadd.f32 %v500_v32, %v1207_v34  ;;  %v502_v36 = vpop.f32.mrb[15].mxu0  ;;  %v719_v34 = vld [vmem:[%s1215_s12] sm:$0xff] (%p1145_p3) }
 0x128   : > { %v932_v37 = vpack.c.bf16 %v499_v31, %v497_v29  ;;  %v503_v38 = vadd.f32 %v502_v36, %v1209_v35  ;;  %v723_v35 = vld [vmem:[%s1215_s12 + $0x18] sm:$0xff] (%p1145_p3)  ;;  %720 = vst [vmem:[%s704_s23] sm:$0xff] (%p1145_p3), %v719_v34 }
 0x129   : > { %v727_v42 = vld [vmem:[%s1215_s12 + $0x30] sm:$0xff] (%p1145_p3)  ;;  %724 = vst [vmem:[%s704_s23 + $0x30] sm:$0xff] (%p1145_p3), %v723_v35 }
 0x12a   : > { %686 = vst [vmem:[%s1215_s12 + $0x48] sm:$0xff] %v932_v37  ;;  %v934_v39 = vpack.c.bf16 %v503_v38, %v501_v33  ;;  %728 = vst [vmem:[%s704_s23 + $0x60] sm:$0xff] (%p1145_p3), %v727_v42 }
 0x12b   : > { %v729_v43 = vld [vmem:[%s1215_s12 + $0x3c] sm:$0xff] (%p1145_p3) }
 0x12c   : > { %688 = vst [vmem:[%s1215_s12 + $0x54] sm:$0xff] %v934_v39  ;;  %730 = vst [vmem:[%s704_s23 + $0x78] sm:$0xff] (%p1145_p3), %v729_v43 }
 0x131   : > { %v731_v44 = vld [vmem:[%s1215_s12 + $0x48] sm:$0xff] }
 0x132   : > { %732 = vst [vmem:[%s704_s23 + $0x90] sm:$0xff] %v731_v44 }
 0x133   : > { %v733_v45 = vld [vmem:[%s1215_s12 + $0x54] sm:$0xff] }
 0x134   : > { %734 = vst [vmem:[%s704_s23 + $0xa8] sm:$0xff] %v733_v45 }
 0x135 PF: > { %s13_s16 = sadd.s32 1, %s1090_s16   ;;  %s1287_s12 = smov %s1078_s13 }
 0x136   : > { %p10_p9 = scmp.ge.s32.totalorder %s13_s16, 4   ;;  %s1288_s13 = smov %s1154_s22 }
 0x137   : > { %s1289_s14 = smov %s1086_s15  ;;  %s1290_s15 = smov %s1292_s18 }
 0x138   :  { %12 = sbr.rel (!%p10_p9) target bundleno = 3 (0x3), region = 97 }

// kernel: hapcl_forward.17
= control target key start
LH: loop header
LB: loop body
LE: loop exit
PB: predicated region body
PF: predicated region fallthrough
CT: control target
= control target key end

     0   :  { %v267_v0 = vmov 0.0   ;;  %vm268_vm0 = vmmov 0   ;;  %s338_s2 = inlined_call_operand.vmem [shape: bf16[128,128], index: 2, kind: input, shape index: {}]   ;;  %s339_s0 = inlined_call_operand.vmem [shape: bf16[8,128], index: 0, kind: input, shape index: {}]   ;;  %s340_s1 = inlined_call_operand.vmem [shape: bf16[8,128], index: 1, kind: input, shape index: {}]   ;;  %s341_s3 = inlined_call_operand.vmem [shape: f32[8,128], index: 3, kind: output, shape index: {0}]   ;;  %s342_s4 = inlined_call_operand.vmem [shape: f32[8,128], index: 4, kind: output, shape index: {1}]   ;;  %s343_s5 = inlined_call_operand.vmem [shape: f32[8,128], index: 5, kind: output, shape index: {2}]  }
   0x1   :  { %213 = vmatprep.subr.bf16.mxu0 %v267_v0  ;;  %233 = vmatprep.subr.bf16.mxu1 %v267_v0  ;;  %v255_v1 = vld [vmem:[%s338_s2] sm:$0xff]   ;;  %v256_v2 = vld [vmem:[%s338_s2 + $0x8] sm:$0xff]   ;;  %v257_v3 = vld [vmem:[%s338_s2 + $0x10] sm:$0xff]  }
   0x2   :  { %229 = vmatprep.mubr.msk.bf16.mxu0 %vm268_vm0, %v267_v0  ;;  %249 = vmatprep.mubr.msk.bf16.mxu1 %vm268_vm0, %v267_v0  ;;  %v258_v4 = vld [vmem:[%s338_s2 + $0x18] sm:$0xff]   ;;  %v259_v5 = vld [vmem:[%s338_s2 + $0x20] sm:$0xff]   ;;  %v260_v6 = vld [vmem:[%s338_s2 + $0x28] sm:$0xff]  }
   0x3   :  { %214 = vmatpush3.bf16.xpose.msra.mxu0 %v255_v1  ;;  %234 = vmatpush3.bf16.xpose.msra.mxu1 %v255_v1  ;;  %v261_v7 = vld [vmem:[%s338_s2 + $0x30] sm:$0xff]   ;;  %v262_v8 = vld [vmem:[%s338_s2 + $0x38] sm:$0xff]   ;;  %v34_v9 = vld [vmem:[%s339_s0] sm:$0xf] }
   0x4   :  { %215 = vmatprep.subr.bf16.mxu0 %v267_v0  ;;  %235 = vmatprep.subr.bf16.mxu1 %v267_v0  ;;  %v123_v10 = vld [vmem:[%s340_s1] sm:$0xf] }
   0xb   :  { %216 = vmatpush3.bf16.xpose.msra.mxu0 %v256_v2  ;;  %236 = vmatpush3.bf16.xpose.msra.mxu1 %v256_v2 }
   0xc   :  { %217 = vmatprep.subr.bf16.mxu0 %v267_v0  ;;  %237 = vmatprep.subr.bf16.mxu1 %v267_v0 }
  0x13   :  { %218 = vmatpush3.bf16.xpose.msra.mxu0 %v257_v3  ;;  %238 = vmatpush3.bf16.xpose.msra.mxu1 %v257_v3 }
  0x14   :  { %219 = vmatprep.subr.bf16.mxu0 %v267_v0  ;;  %239 = vmatprep.subr.bf16.mxu1 %v267_v0 }
  0x1b   :  { %220 = vmatpush3.bf16.xpose.msra.mxu0 %v258_v4  ;;  %240 = vmatpush3.bf16.xpose.msra.mxu1 %v258_v4 }
  0x1c   :  { %221 = vmatprep.subr.bf16.mxu0 %v267_v0  ;;  %241 = vmatprep.subr.bf16.mxu1 %v267_v0 }
  0x23   :  { %222 = vmatpush3.bf16.xpose.msra.mxu0 %v259_v5  ;;  %242 = vmatpush3.bf16.xpose.msra.mxu1 %v259_v5 }
  0x24   :  { %223 = vmatprep.subr.bf16.mxu0 %v267_v0  ;;  %243 = vmatprep.subr.bf16.mxu1 %v267_v0 }
  0x2b   :  { %224 = vmatpush3.bf16.xpose.msra.mxu0 %v260_v6  ;;  %244 = vmatpush3.bf16.xpose.msra.mxu1 %v260_v6 }
  0x2c   :  { %225 = vmatprep.subr.bf16.mxu0 %v267_v0  ;;  %245 = vmatprep.subr.bf16.mxu1 %v267_v0 }
  0x33   :  { %226 = vmatpush3.bf16.xpose.msra.mxu0 %v261_v7  ;;  %246 = vmatpush3.bf16.xpose.msra.mxu1 %v261_v7 }
  0x34   :  { %227 = vmatprep.subr.bf16.mxu0 %v267_v0  ;;  %247 = vmatprep.subr.bf16.mxu1 %v267_v0 }
  0x3b   :  { %228 = vmatpush3.bf16.xpose.msra.mxu0 %v262_v8  ;;  %248 = vmatpush3.bf16.xpose.msra.mxu1 %v262_v8 }
  0x42   :  { %230 = vmatmul.mubr.bf16.vlgmr.msra.gmra.mrb[0].mxu0 %v34_v9  ;;  %250 = vmatmul.mubr.bf16.vlgmr.msra.gmra.mrb[0].mxu1 %v123_v10 }
 0x115   :  { %v117_v11 = vpop.f32.mrb[0].mxu0  ;;  %v158_v12 = vpop.f32.mrb[0].mxu1 }
 0x116   :  { %164 = vst [vmem:[%s341_s3] sm:$0xff] %v117_v11  ;;  %165 = vst [vmem:[%s342_s4] sm:$0xff] %v158_v12  ;;  %v166_v13 = vadd.f32 %v158_v12, %v117_v11  ;;  %v231_v14 = vpop.f32.mrb[1].mxu0  ;;  %v251_v15 = vpop.f32.mrb[1].mxu1 }
 0x117   :  { %v120_v16 = vpop.f32.mrb[2].mxu0  ;;  %v161_v17 = vpop.f32.mrb[2].mxu1 }
 0x118   :  { %v194_v18 = vmul.f32 -1.442695, %v166_v13  ;;  %v232_v19 = vpop.f32.mrb[3].mxu0  ;;  %v252_v20 = vpop.f32.mrb[3].mxu1 }
 0x11a   :  { %263 = vpow2.f32 %v194_v18 }
 0x124   :  { %v264_v21 = vpop.eup %263 }
 0x125   :  { %v170_v22 = vadd.f32 1.0, %v264_v21 }
 0x127   :  { %265 = vrcp.f32 %v170_v22 }
 0x131   :  { %v266_v23 = vpop.eup %265 }
 0x132   :  { %173 = vst [vmem:[%s343_s5] sm:$0xff] %v266_v23 }

// kernel: hapcl_forward.15
= control target key start
LH: loop header
LB: loop body
LE: loop exit
PB: predicated region body
PF: predicated region fallthrough
CT: control target
= control target key end

     0   :  { %s1149_s12 = smov 0   ;;  %s1151_s13 = smov 0   ;;  %s1339_s0 = inlined_call_operand.vmem [shape: bf16[16,8,128], index: 0, kind: input, shape index: {}]   ;;  %s1340_s1 = inlined_call_operand.vmem [shape: bf16[2,128,384], index: 1, kind: input, shape index: {}]   ;;  %s1341_s2 = inlined_call_operand.vmem [shape: f32[1,384], index: 2, kind: input, shape index: {}]   ;;  %s1342_s3 = inlined_call_operand.vmem [shape: bf16[16,2,8,384], index: 3, kind: output, shape index: {}]  }
   0x1   :  { %s1153_s14 = smov 0   ;;  %s1155_s15 = smov 0  }
   0x2   :  { %s1157_s16 = smov 0   ;;  %s1159_s17 = smov 0  }
   0x3   :  { %s1161_s18 = smov 0  }
   0x4 LB: > { %s25_s19 = sadd.s32 1, %s1118_s16  ;;  %s32_s20 = sadd.s32 1, %s1122_s17  ;;  %s1126_s18 = sphi %s1161_s18, %s13_s18   ;;  %s1122_s17 = sphi %s1159_s17, %s1349_s17   ;;  %s1118_s16 = sphi %s1157_s16, %s1348_s16   ;;  %s1114_s15 = sphi %s1155_s15, %s1347_s15   ;;  %s1110_s14 = sphi %s1153_s14, %s1346_s14   ;;  %s1106_s13 = sphi %s1151_s13, %s1345_s13   ;;  %s1102_s12 = sphi %s1149_s12, %s1344_s12  }
   0x5   : > { %p26_p0 = scmp.ge.s32.totalorder %s25_s19, 2  ;;  %s850_s21 = sadd.s32 4294967295, %s1126_s18  }
   0x6   : > { %p128_p1 = scmp.ne.s32.totalorder %s1106_s13, %s1102_s12  ;;  %p129_p2 = scmp.eq.s32.totalorder %s850_s21, 3 }
   0x7   : > { %s1351_s19 = smov (%p26_p0, %s25_s19), 0  ;;  %s1353_s20 = smov (!%p26_p0, %s32_s20), %s1122_s17 }
   0x8   : > { %s111_s22 = ssub.s32 %s1118_s16, %s1351_s19  ;;  %p34_p3 = scmp.ge.s32.totalorder %s1353_s20, 2 }
   0x9   : > { %p854_p4 = scmp.ge.s32.totalorder %s1126_s18, 1  ;;  %p1195_p5 = por %p129_p2, %p128_p1 }
   0xa   : > { %p176_p6 = scmp.lt.s32.totalorder %s1126_s18, 5  ;;  %s1355_s20 = smov (%p34_p3, %s1353_s20), 0 }
   0xb   : > { %s112_s24 = ssub.s32 %s1122_s17, %s1355_s20  ;;  %s118_s26 = sadd.s32 1, %s1106_s13 }
   0xc   : > { %p177_p7 = pnand %p854_p4, %p176_p6  ;;  %s113_s25 = sor.u32 %s112_s24, %s111_s22 }
   0xd   : > { %p116_p8 = scmp.eq.s32.totalorder %s113_s25, 0  ;;  %p216_p9 = scmp.lt.s32.totalorder (!%p177_p7), %s1114_s15, 1  ;;  %v1128_v0 = vmov (!%p177_p7), 0   ;;  %v265_v29 = vlaneseq (!%p177_p7)  ;;  %v263_v32 = vld [vmem:[%s1341_s2] sm:$0x7] (!%p177_p7) }
   0xe   : > { %180 = sbr.rel (%p177_p7) target bundleno = 311 (0x137), region = 32  ;;  %464 = vmatprep.mubr.bf16.mxu0 (!%p177_p7), %v1128_v0  ;;  %s855_s30 = sshll.u32 (!%p177_p7), %s1110_s14, 3 }
   0xf   : > { %s1206_s27 = scalar_select %p116_p8, %s1106_s13, %s118_s26  }
  0x10   : > { %p208_p10 = scmp.lt.s32.totalorder (!%p177_p7), %s855_s30, 15  ;;  %v266_v30 = vshrl.u32 (!%p177_p7), %v265_v29, 7  ;;  %s204_s22 = sand.u32 (!%p177_p7), 1, %s1102_s12  }
  0x11   : > { %s975_s24 = smul.u32 (!%p177_p7), 96, %s204_s22 }
  0x12   : > { %v267_v31 = vsub.s32 (!%p177_p7), 0, %v266_v30  ;;  %v271_v33 = vsub.s32 (!%p177_p7), 1, %v266_v30  ;;  %v275_v36 = vsub.s32 (!%p177_p7), 2, %v266_v30 }
  0x13   : > { %s1265_s12 = scalar_lea.vmem (!%p177_p7), [#allocation2], %s975_s24 }
  0x14   : > { %v1257_v34 = vrot.slane (!%p177_p7), %v263_v32, %v267_v31  ;;  %v1259_v35 = vrot.slane (!%p177_p7), %v263_v32, %v271_v33  ;;  %v276_v44 = vrot.slane (!%p177_p7), %v263_v32, %v275_v36 }
  0x15   : > { %s217_s28 = scalar_select %p216_p9, %s1114_s15, 1 }
  0x16   : > { %s1357_s30 = smov (!%p208_p10, %s855_s30), 15  ;;  %s977_s25 = smul.u32 (%p1195_p5), 3, %s1114_s15 }
  0x17   : > { %s976_s29 = smul.u32 192, %s217_s28  ;;  %s856_s7 = sshll.u32 %s1357_s30, 2 }
  0x18   : > { %s1232_s10 = scalar_lea.vmem %s1339_s0, %s856_s7  ;;  %s978_s26 = smul.u32 (%p1195_p5), 48, %s1110_s14 }
  0x19   : > { %s1215_s6 = scalar_lea.vmem %s1340_s1, %s976_s29  ;;  %v1065_v16 = vld [vmem:[%s1232_s10] sm:$0xff]   ;;  %v1068_v26 = vld [vmem:[%s1232_s10 + $0x8] sm:$0xff]   ;;  %v1070_v27 = vld [vmem:[%s1232_s10 + $0x10] sm:$0xff]  }
  0x1a   : > { %v1036_v1 = vld [vmem:[%s1215_s6 + $0x4] ss:$12 sps:$4 sm:$0xff]   ;;  %v1038_v2 = vld [vmem:[%s1215_s6] ss:$12 sps:$4 sm:$0xff]   ;;  %v1039_v3 = vld [vmem:[%s1215_s6 + $0x1c] ss:$12 sps:$4 sm:$0xff]   ;;  %967 = vmatprep.mubr.bf16.mxu1 %v1065_v16  ;;  %s702_s23 = sadd.s32 (%p1195_p5), %s978_s26, %s977_s25 }
  0x1b   : > { %432 = vmatprep.subr.bf16.mxu0 %v1036_v1  ;;  %v1041_v4 = vld [vmem:[%s1215_s6 + $0x18] ss:$12 sps:$4 sm:$0xff]   ;;  %v1042_v5 = vld [vmem:[%s1215_s6 + $0x34] ss:$12 sps:$4 sm:$0xff]   ;;  %v1044_v7 = vld [vmem:[%s1215_s6 + $0x30] ss:$12 sps:$4 sm:$0xff]  }
  0x1c   : > { %433 = vmatpush1.bf16.msra.mxu0 %v1038_v2  ;;  %v1048_v6 = vld [vmem:[%s1215_s6 + $0x8] ss:$12 sps:$4 sm:$0xff]   ;;  %v1045_v8 = vld [vmem:[%s1215_s6 + $0x4c] ss:$12 sps:$4 sm:$0xff]   ;;  %v1049_v12 = vld [vmem:[%s1215_s6 + $0x64] ss:$12 sps:$4 sm:$0xff]  }
  0x1d   : > { %434 = vmatprep.subr.bf16.mxu0 %v1039_v3  ;;  %951 = vmatprep.subr.bf16.mxu1 %v1048_v6  ;;  %v1052_v9 = vld [vmem:[%s1215_s6 + $0x20] ss:$12 sps:$4 sm:$0xff]   ;;  %v1056_v10 = vld [vmem:[%s1215_s6 + $0x38] ss:$12 sps:$4 sm:$0xff]   ;;  %v1047_v11 = vld [vmem:[%s1215_s6 + $0x48] ss:$12 sps:$4 sm:$0xff]  }
  0x1e   : > { %952 = vmatpush3.bf16.msra.mxu1 %v1048_v6  ;;  %v1051_v13 = vld [vmem:[%s1215_s6 + $0x60] ss:$12 sps:$4 sm:$0xff]   ;;  %v1060_v14 = vld [vmem:[%s1215_s6 + $0x50] ss:$12 sps:$4 sm:$0xff]   ;;  %v1064_v17 = vld [vmem:[%s1215_s6 + $0x68] ss:$12 sps:$4 sm:$0xff]  }
  0x1f   : > { %953 = vmatprep.subr.bf16.mxu1 %v1052_v9  ;;  %v1053_v15 = vld [vmem:[%s1215_s6 + $0x7c] ss:$12 sps:$4 sm:$0xff]   ;;  %v1055_v18 = vld [vmem:[%s1215_s6 + $0x78] ss:$12 sps:$4 sm:$0xff]   ;;  %v1057_v19 = vld [vmem:[%s1215_s6 + $0x94] ss:$12 sps:$4 sm:$0xff]  }
  0x20   : > { %435 = vmatpush1.bf16.msra.mxu0 %v1041_v4  ;;  %v1066_v20 = vld [vmem:[%s1215_s6 + $0x80] ss:$12 sps:$4 sm:$0xff]   ;;  %v1059_v21 = vld [vmem:[%s1215_s6 + $0x90] ss:$12 sps:$4 sm:$0xff]   ;;  %v1067_v23 = vld [vmem:[%s1215_s6 + $0x98] ss:$12 sps:$4 sm:$0xff]  }
  0x21   : > { %436 = vmatprep.subr.bf16.mxu0 %v1042_v5  ;;  %v1061_v22 = vld [vmem:[%s1215_s6 + $0xac] ss:$12 sps:$4 sm:$0xff]   ;;  %v1063_v24 = vld [vmem:[%s1215_s6 + $0xa8] ss:$12 sps:$4 sm:$0xff]   ;;  %v1069_v25 = vld [vmem:[%s1215_s6 + $0xb0] ss:$12 sps:$4 sm:$0xff]  }
  0x22   : > { %954 = vmatpush3.bf16.msra.mxu1 %v1052_v9  ;;  %v1071_v28 = vld [vmem:[%s1232_s10 + $0x18] sm:$0xff]   ;;  %s904_s28 = sshll.u32 (%p1195_p5), %s702_s23, 2 }
  0x23   : > { %955 = vmatprep.subr.bf16.mxu1 %v1056_v10  ;;  %s704_s29 = scalar_lea.vmem (%p1195_p5), %s1342_s3, %s904_s28 }
  0x24   : > { %437 = vmatpush1.bf16.msra.mxu0 %v1044_v7 }
  0x25   : > { %438 = vmatprep.subr.bf16.mxu0 %v1045_v8 }
  0x26   : > { %956 = vmatpush3.bf16.msra.mxu1 %v1056_v10 }
  0x27   : > { %957 = vmatprep.subr.bf16.mxu1 %v1060_v14 }
  0x28   : > { %439 = vmatpush1.bf16.msra.mxu0 %v1047_v11 }
  0x29   : > { %440 = vmatprep.subr.bf16.mxu0 %v1049_v12 }
  0x2a   : > { %958 = vmatpush3.bf16.msra.mxu1 %v1060_v14 }
  0x2b   : > { %959 = vmatprep.subr.bf16.mxu1 %v1064_v17 }
  0x2c   : > { %441 = vmatpush1.bf16.msra.mxu0 %v1051_v13 }
  0x2d   : > { %442 = vmatprep.subr.bf16.mxu0 %v1053_v15 }
  0x2e   : > { %960 = vmatpush3.bf16.msra.mxu1 %v1064_v17 }
  0x2f   : > { %961 = vmatprep.subr.bf16.mxu1 %v1066_v20 }
  0x30   : > { %443 = vmatpush1.bf16.msra.mxu0 %v1055_v18 }
  0x31   : > { %444 = vmatprep.subr.bf16.mxu0 %v1057_v19 }
  0x32   : > { %962 = vmatpush3.bf16.msra.mxu1 %v1066_v20 }
  0x33   : > { %963 = vmatprep.subr.bf16.mxu1 %v1067_v23 }
  0x34   : > { %445 = vmatpush1.bf16.msra.mxu0 %v1059_v21 }
  0x35   : > { %446 = vmatprep.subr.bf16.mxu0 %v1061_v22 }
  0x36   : > { %964 = vmatpush3.bf16.msra.mxu1 %v1067_v23 }
  0x37   : > { %965 = vmatprep.subr.bf16.mxu1 %v1069_v25 }
  0x38   : > { %447 = vmatpush1.bf16.msra.mxu0 %v1063_v24 }
  0x3a   : > { %966 = vmatpush3.bf16.msra.mxu1 %v1069_v25 }
  0x3b   : > { %465 = vmatmul.mubr.bf16.vlgmr.msra.gmra.mrb[0].mxu0 %v1065_v16 }
  0x3c   : > { %474 = vmatprep.mubr.bf16.mxu0 %v1128_v0 }
  0x3d   : > { %968 = vmatmul.mubr.bf16.vlgmr.msra.gmra.mrb[0].mxu1 %v1068_v26 }
  0x3e   : > { %971 = vmatprep.mubr.bf16.mxu1 %v1070_v27 }
  0x43   : > { %475 = vmatmul.mubr.bf16.gmra.mrb[4].mxu0 %v1068_v26 }
  0x44   : > { %484 = vmatprep.mubr.bf16.mxu0 %v1128_v0 }
  0x45   : > { %972 = vmatmul.mubr.bf16.gmra.mrb[4].mxu1 %v1071_v28 }
  0x4b   : > { %485 = vmatmul.mubr.bf16.gmra.mrb[8].mxu0 %v1070_v27 }
  0x4c   : > { %494 = vmatprep.mubr.bf16.mxu0 %v1128_v0 }
  0x53   : > { %495 = vmatmul.mubr.bf16.gmra.mrb[12].mxu0 %v1071_v28 }
 0x10e   : > { %v466_v37 = vpop.f32.mrb[0].mxu0 }
 0x10f   : > { %v467_v38 = vadd.f32 %v466_v37, %v1257_v34  ;;  %v468_v39 = vpop.f32.mrb[1].mxu0 }
 0x110   : > { %v469_v40 = vadd.f32 %v468_v39, %v1259_v35  ;;  %v470_v41 = vpop.f32.mrb[2].mxu0  ;;  %v969_v48 = vpop.f32.mrb[0].mxu1 }
 0x111   : > { %v471_v42 = vadd.f32 %v470_v41, %v1257_v34  ;;  %v472_v43 = vpop.f32.mrb[3].mxu0  ;;  %v548_v49 = vadd.f32 %v969_v48, %v276_v44  ;;  %v539_v50 = vpop.f32.mrb[1].mxu1 }
 0x112   : > { %v923_v45 = vpack.c.bf16 %v469_v40, %v467_v38  ;;  %v473_v46 = vadd.f32 %v472_v43, %v1259_v35  ;;  %v540_v52 = vadd.f32 %v539_v50, %v276_v44  ;;  %v970_v53 = vpop.f32.mrb[2].mxu1 }
 0x113   : > { %v928_v56 = vpack.c.bf16 %v548_v49, %v548_v49  ;;  %v551_v57 = vadd.f32 %v970_v53, %v276_v44  ;;  %v542_v58 = vpop.f32.mrb[3].mxu1 }
 0x114   : > { %674 = vst [vmem:[%s1265_s12] sm:$0xff] %v923_v45  ;;  %v925_v47 = vpack.c.bf16 %v473_v46, %v471_v42  ;;  %v924_v61 = vpack.c.bf16 %v540_v52, %v540_v52  ;;  %v543_v62 = vadd.f32 %v542_v58, %v276_v44 }
 0x115   : > { %679 = vst [vmem:[%s1265_s12 + $0x20] sm:$0xf] %v928_v56  ;;  %v930_v1 = vpack.c.bf16 %v551_v57, %v551_v57 }
 0x116   : > { %676 = vst [vmem:[%s1265_s12 + $0xc] sm:$0xff] %v925_v47  ;;  %v476_v51 = vpop.f32.mrb[4].mxu0  ;;  %675 = vst [vmem:[%s1265_s12 + $0x8] sm:$0xf] %v924_v61  ;;  %v926_v4 = vpack.c.bf16 %v543_v62, %v543_v62 }
 0x117   : > { %v477_v54 = vadd.f32 %v476_v51, %v1257_v34  ;;  %v478_v55 = vpop.f32.mrb[5].mxu0  ;;  %681 = vst [vmem:[%s1265_s12 + $0x2c] sm:$0xf] %v930_v1 }
 0x118   : > { %v479_v59 = vadd.f32 %v478_v55, %v1259_v35  ;;  %v480_v60 = vpop.f32.mrb[6].mxu0  ;;  %677 = vst [vmem:[%s1265_s12 + $0x14] sm:$0xf] %v926_v4  ;;  %v973_v6 = vpop.f32.mrb[4].mxu1 }
 0x119   : > { %v481_v63 = vadd.f32 %v480_v60, %v1257_v34  ;;  %v482_v0 = vpop.f32.mrb[7].mxu0  ;;  %v564_v7 = vadd.f32 %v973_v6, %v276_v44  ;;  %v555_v8 = vpop.f32.mrb[5].mxu1 }
 0x11a   : > { %v927_v2 = vpack.c.bf16 %v479_v59, %v477_v54  ;;  %v483_v3 = vadd.f32 %v482_v0, %v1259_v35  ;;  %v556_v10 = vadd.f32 %v555_v8, %v276_v44  ;;  %v974_v11 = vpop.f32.mrb[6].mxu1 }
 0x11b   : > { %v936_v14 = vpack.c.bf16 %v564_v7, %v564_v7  ;;  %v567_v15 = vadd.f32 %v974_v11, %v276_v44  ;;  %v558_v16 = vpop.f32.mrb[7].mxu1 }
 0x11c   : > { %678 = vst [vmem:[%s1265_s12 + $0x18] sm:$0xff] %v927_v2  ;;  %v929_v5 = vpack.c.bf16 %v483_v3, %v481_v63  ;;  %v932_v19 = vpack.c.bf16 %v556_v10, %v556_v10  ;;  %v559_v20 = vadd.f32 %v558_v16, %v276_v44  ;;  %v909_v48 = vld [vmem:[%s1265_s12 + $0x20] sm:$0xf] (%p1195_p5) }
 0x11d   : > { %687 = vst [vmem:[%s1265_s12 + $0x50] sm:$0xf] %v936_v14  ;;  %v938_v23 = vpack.c.bf16 %v567_v15, %v567_v15  ;;  %v905_v46 = vld [vmem:[%s1265_s12 + $0x8] sm:$0xf] (%p1195_p5)  ;;  %910 = vst [vmem:[%s704_s29 + $0x38] sm:$0xf] (%p1195_p5), %v909_v48 }
 0x11e   : > { %680 = vst [vmem:[%s1265_s12 + $0x24] sm:$0xff] %v929_v5  ;;  %v486_v9 = vpop.f32.mrb[8].mxu0  ;;  %683 = vst [vmem:[%s1265_s12 + $0x38] sm:$0xf] %v932_v19  ;;  %v934_v26 = vpack.c.bf16 %v559_v20, %v559_v20  ;;  %v911_v49 = vld [vmem:[%s1265_s12 + $0x2c] sm:$0xf] (%p1195_p5) }
 0x11f   : > { %v487_v12 = vadd.f32 %v486_v9, %v1257_v34  ;;  %v488_v13 = vpop.f32.mrb[9].mxu0  ;;  %689 = vst [vmem:[%s1265_s12 + $0x5c] sm:$0xf] %v938_v23  ;;  %v907_v47 = vld [vmem:[%s1265_s12 + $0x14] sm:$0xf] (%p1195_p5) }
 0x120   : > { %v489_v17 = vadd.f32 %v488_v13, %v1259_v35  ;;  %v490_v18 = vpop.f32.mrb[10].mxu0  ;;  %685 = vst [vmem:[%s1265_s12 + $0x44] sm:$0xf] %v934_v26  ;;  %906 = vst [vmem:[%s704_s29 + $0x8] sm:$0xf] (%p1195_p5), %v905_v46 }
 0x121   : > { %v491_v21 = vadd.f32 %v490_v18, %v1257_v34  ;;  %v492_v22 = vpop.f32.mrb[11].mxu0  ;;  %908 = vst [vmem:[%s704_s29 + $0x20] sm:$0xf] (%p1195_p5), %v907_v47  ;;  %912 = vst [vmem:[%s704_s29 + $0x50] sm:$0xf] (%p1195_p5), %v911_v49 }
 0x122   : > { %v931_v24 = vpack.c.bf16 %v489_v17, %v487_v12  ;;  %v493_v25 = vadd.f32 %v492_v22, %v1259_v35 }
 0x123   : > { %v723_v40 = vld [vmem:[%s1265_s12 + $0x18] sm:$0xff] (%p1195_p5) }
 0x124   : > { %682 = vst [vmem:[%s1265_s12 + $0x30] sm:$0xff] %v931_v24  ;;  %v933_v27 = vpack.c.bf16 %v493_v25, %v491_v21  ;;  %v917_v52 = vld [vmem:[%s1265_s12 + $0x50] sm:$0xf] (%p1195_p5)  ;;  %724 = vst [vmem:[%s704_s29 + $0x30] sm:$0xff] (%p1195_p5), %v723_v40 }
 0x125   : > { %v725_v41 = vld [vmem:[%s1265_s12 + $0x24] sm:$0xff] (%p1195_p5)  ;;  %v913_v50 = vld [vmem:[%s1265_s12 + $0x38] sm:$0xf] (%p1195_p5)  ;;  %918 = vst [vmem:[%s704_s29 + $0x98] sm:$0xf] (%p1195_p5), %v917_v52 }
 0x126   : > { %684 = vst [vmem:[%s1265_s12 + $0x3c] sm:$0xff] %v933_v27  ;;  %v496_v28 = vpop.f32.mrb[12].mxu0  ;;  %v919_v53 = vld [vmem:[%s1265_s12 + $0x5c] sm:$0xf] (%p1195_p5)  ;;  %726 = vst [vmem:[%s704_s29 + $0x48] sm:$0xff] (%p1195_p5), %v725_v41 }
 0x127   : > { %v497_v29 = vadd.f32 %v496_v28, %v1257_v34  ;;  %v498_v30 = vpop.f32.mrb[13].mxu0  ;;  %v915_v51 = vld [vmem:[%s1265_s12 + $0x44] sm:$0xf] (%p1195_p5)  ;;  %914 = vst [vmem:[%s704_s29 + $0x68] sm:$0xf] (%p1195_p5), %v913_v50 }
 0x128   : > { %v499_v31 = vadd.f32 %v498_v30, %v1259_v35  ;;  %v500_v32 = vpop.f32.mrb[14].mxu0  ;;  %696 = sbr.rel (!%p1195_p5) target bundleno = 311 (0x137), region = 36  ;;  %916 = vst [vmem:[%s704_s29 + $0x80] sm:$0xf] (%p1195_p5), %v915_v51  ;;  %920 = vst [vmem:[%s704_s29 + $0xb0] sm:$0xf] (%p1195_p5), %v919_v53 }
 0x129   : > { %v501_v33 = vadd.f32 %v500_v32, %v1257_v34  ;;  %v502_v36 = vpop.f32.mrb[15].mxu0  ;;  %v719_v34 = vld [vmem:[%s1265_s12] sm:$0xff] (%p1195_p5) }
 0x12a   : > { %v935_v37 = vpack.c.bf16 %v499_v31, %v497_v29  ;;  %v503_v38 = vadd.f32 %v502_v36, %v1259_v35  ;;  %v721_v35 = vld [vmem:[%s1265_s12 + $0xc] sm:$0xff] (%p1195_p5)  ;;  %720 = vst [vmem:[%s704_s29] sm:$0xff] (%p1195_p5), %v719_v34 }
 0x12b   : > { %v727_v42 = vld [vmem:[%s1265_s12 + $0x30] sm:$0xff] (%p1195_p5)  ;;  %722 = vst [vmem:[%s704_s29 + $0x18] sm:$0xff] (%p1195_p5), %v721_v35 }
 0x12c   : > { %686 = vst [vmem:[%s1265_s12 + $0x48] sm:$0xff] %v935_v37  ;;  %v937_v39 = vpack.c.bf16 %v503_v38, %v501_v33  ;;  %728 = vst [vmem:[%s704_s29 + $0x60] sm:$0xff] (%p1195_p5), %v727_v42 }
 0x12d   : > { %v729_v43 = vld [vmem:[%s1265_s12 + $0x3c] sm:$0xff] (%p1195_p5) }
 0x12e   : > { %688 = vst [vmem:[%s1265_s12 + $0x54] sm:$0xff] %v937_v39  ;;  %730 = vst [vmem:[%s704_s29 + $0x78] sm:$0xff] (%p1195_p5), %v729_v43 }
 0x133   : > { %v731_v44 = vld [vmem:[%s1265_s12 + $0x48] sm:$0xff] }
 0x134   : > { %732 = vst [vmem:[%s704_s29 + $0x90] sm:$0xff] %v731_v44 }
 0x135   : > { %v733_v45 = vld [vmem:[%s1265_s12 + $0x54] sm:$0xff] }
 0x136   : > { %734 = vst [vmem:[%s704_s29 + $0xa8] sm:$0xff] %v733_v45 }
 0x137 PF: > { %s13_s18 = sadd.s32 1, %s1126_s18   ;;  %s1344_s12 = smov %s1106_s13 }
 0x138   : > { %p10_p11 = scmp.ge.s32.totalorder %s13_s18, 6   ;;  %s1345_s13 = smov %s1206_s27 }
 0x139   : > { %s1346_s14 = smov %s1118_s16  ;;  %s1347_s15 = smov %s1122_s17 }
 0x13a   : > { %s1348_s16 = smov %s1351_s19  ;;  %s1349_s17 = smov %s1355_s20 }
 0x13b   :  { %12 = sbr.rel (!%p10_p11) target bundleno = 4 (0x4), region = 97 }

// kernel: hapcl_forward.14
= control target key start
LH: loop header
LB: loop body
LE: loop exit
PB: predicated region body
PF: predicated region fallthrough
CT: control target
= control target key end

     0   :  { %s2080_s15 = smov 0   ;;  %s2082_s16 = smov 0   ;;  %s2741_s0 = inlined_call_operand.vmem [shape: s32[16,1], index: 0, kind: input, shape index: {}]   ;;  %s2742_s1 = inlined_call_operand.vmem [shape: bf16[8,16,384], index: 1, kind: input, shape index: {}]   ;;  %s2743_s2 = inlined_call_operand.vmem [shape: bf16[128,384], index: 2, kind: input, shape index: {}]   ;;  %s2744_s3 = inlined_call_operand.vmem [shape: f32[1,384], index: 3, kind: input, shape index: {}]   ;;  %s2745_s4 = inlined_call_operand.vmem [shape: f32[16,128], index: 4, kind: output, shape index: {}]  }
   0x1   :  { %s2084_s17 = smov 0   ;;  %s2086_s18 = smov 0  }
   0x2   :  { %s2088_s19 = smov 0  }
   0x3 LB: > { %s26_s20 = sadd.s32 1, %s2045_s18  ;;  %p68_p1 = scmp.ne.s32.totalorder %s2037_s16, %s2033_s15  ;;  %s2049_s19 = sphi %s2088_s19, %s14_s19   ;;  %s2045_s18 = sphi %s2086_s18, %s2749_s18   ;;  %s2041_s17 = sphi %s2084_s17, %s2748_s17   ;;  %s2037_s16 = sphi %s2082_s16, %s2747_s16   ;;  %s2033_s15 = sphi %s2080_s15, %s2746_s15  }
   0x4   : > { %p28_p0 = scmp.ge.s32.totalorder %s26_s20, 2  ;;  %p69_p2 = scmp.eq.s32.totalorder %s2049_s19, 0 }
   0x5   : > { %s61_s22 = sadd.s32 1, %s2037_s16  ;;  %p1517_p5 = scmp.ge.s32.totalorder %s2049_s19, 2 }
   0x6   : > { %s2751_s20 = smov (%p28_p0, %s26_s20), 0  ;;  %p70_p3 = por %p69_p2, %p68_p1 }
   0x7   : > { %s57_s21 = ssub.s32 %s2045_s18, %s2751_s20  ;;  %168 = sbr.rel (%p1517_p5) target bundleno = 28 (0x1c), region = 24 }
   0x8   : > { %p59_p4 = scmp.eq.s32.totalorder %s57_s21, 0 }
   0xa   : > { %s2115_s23 = scalar_select %p59_p4, %s2037_s16, %s61_s22  }
   0xe   : > { %178 = sbr.rel (!%p70_p3) target bundleno = 28 (0x1c), region = 32  ;;  %s180_s24 = sand.u32 (%p70_p3), 1, %s2037_s16  }
   0xf   : > { %s1828_s25 = smul.u32 (%p70_p3), 12, %s2045_s18 }
  0x10   : > { %s1827_s26 = smul.u32 (%p70_p3), 96, %s180_s24 }
  0x11   : > { %s2123_s29 = scalar_lea.vmem (%p70_p3), %s2742_s1, %s1828_s25 }
  0x12   : > { %v203_v0 = vld [vmem:[%s2123_s29] sm:$0xff] (%p70_p3)  ;;  %v205_v1 = vld [vmem:[%s2123_s29 + $0x18] sm:$0xff] (%p70_p3)  ;;  %v207_v2 = vld [vmem:[%s2123_s29 + $0x30] sm:$0xff] (%p70_p3)  ;;  %s182_s30 = scalar_lea.vmem (%p70_p3), [#allocation4], %s1827_s26 }
  0x13   : > { %204 = vst [vmem:[%s182_s30] sm:$0xff] (%p70_p3), %v203_v0  ;;  %206 = vst [vmem:[%s182_s30 + $0xc] sm:$0xff] (%p70_p3), %v205_v1  ;;  %v209_v3 = vld [vmem:[%s2123_s29 + $0x48] sm:$0xff] (%p70_p3)  ;;  %v211_v4 = vld [vmem:[%s2123_s29 + $0x60] sm:$0xff] (%p70_p3) }
  0x14   : > { %208 = vst [vmem:[%s182_s30 + $0x18] sm:$0xff] (%p70_p3), %v207_v2  ;;  %v213_v5 = vld [vmem:[%s2123_s29 + $0x78] sm:$0xff] (%p70_p3)  ;;  %210 = vst [vmem:[%s182_s30 + $0x24] sm:$0xff] (%p70_p3), %v209_v3  ;;  %v215_v6 = vld [vmem:[%s2123_s29 + $0x90] sm:$0xff] (%p70_p3) }
  0x15   : > { %212 = vst [vmem:[%s182_s30 + $0x30] sm:$0xff] %v211_v4  ;;  %214 = vst [vmem:[%s182_s30 + $0x3c] sm:$0xff] %v213_v5  ;;  %v217_v7 = vld [vmem:[%s2123_s29 + $0xa8] sm:$0xff]  ;;  %v1521_v9 = vld [vmem:[%s2123_s29 + $0x20] sm:$0xf] }
  0x16   : > { %v1519_v8 = vld [vmem:[%s2123_s29 + $0x8] sm:$0xf]  ;;  %216 = vst [vmem:[%s182_s30 + $0x48] sm:$0xff] %v215_v6  ;;  %218 = vst [vmem:[%s182_s30 + $0x54] sm:$0xff] %v217_v7  ;;  %v1523_v10 = vld [vmem:[%s2123_s29 + $0x38] sm:$0xf] }
  0x17   : > { %1520 = vst [vmem:[%s182_s30 + $0x8] sm:$0xf] %v1519_v8  ;;  %v1525_v11 = vld [vmem:[%s2123_s29 + $0x50] sm:$0xf]  ;;  %1522 = vst [vmem:[%s182_s30 + $0x14] sm:$0xf] %v1521_v9 }
  0x18   : > { %1524 = vst [vmem:[%s182_s30 + $0x20] sm:$0xf] %v1523_v10  ;;  %1526 = vst [vmem:[%s182_s30 + $0x2c] sm:$0xf] %v1525_v11  ;;  %v1527_v12 = vld [vmem:[%s2123_s29 + $0x68] sm:$0xf] }
  0x19   : > { %v1529_v13 = vld [vmem:[%s2123_s29 + $0x80] sm:$0xf]  ;;  %v1531_v14 = vld [vmem:[%s2123_s29 + $0x98] sm:$0xf]  ;;  %1528 = vst [vmem:[%s182_s30 + $0x38] sm:$0xf] %v1527_v12 }
  0x1a   : > { %1530 = vst [vmem:[%s182_s30 + $0x44] sm:$0xf] %v1529_v13  ;;  %1532 = vst [vmem:[%s182_s30 + $0x50] sm:$0xf] %v1531_v14  ;;  %v1533_v15 = vld [vmem:[%s2123_s29 + $0xb0] sm:$0xf] }
  0x1b   : > { %1534 = vst [vmem:[%s182_s30 + $0x5c] sm:$0xf] %v1533_v15 }
  0x1c PF: > { %p1535_p6 = scmp.ge.s32.totalorder %s2049_s19, 1  ;;  %p246_p7 = scmp.lt.s32.totalorder %s2049_s19, 3 }
  0x1e   : > { %p247_p8 = pnand %p1535_p6, %p246_p7 }
  0x1f   : > { %v2146_v16 = vld [vmem:[%s2743_s2 + $0x4] ss:$12 sps:$4 sm:$0xff] (!%p247_p8)   ;;  %v2151_v17 = vld [vmem:[%s2743_s2] ss:$12 sps:$4 sm:$0xff] (!%p247_p8)   ;;  %v2051_v18 = vmov (!%p247_p8), 0.0   ;;  %v2052_v19 = vmov (!%p247_p8), 0   ;;  %v342_v47 = vlaneseq (!%p247_p8) }
  0x20   : > { %250 = sbr.rel (%p247_p8) target bundleno = 2169 (0x879), region = 58  ;;  %1667 = vmatprep.subr.bf16.mxu1 (!%p247_p8), %v2051_v18  ;;  %517 = vmatprep.mubr.bf16.mxu0 (!%p247_p8), %v2052_v19  ;;  %v2159_v20 = vld [vmem:[%s2743_s2 + $0x1c] ss:$12 sps:$4 sm:$0xff] (!%p247_p8)   ;;  %vm2053_vm0 = vmmov (!%p247_p8), 0   ;;  %v2167_v21 = vld [vmem:[%s2743_s2 + $0x18] ss:$12 sps:$4 sm:$0xff] (!%p247_p8)  }
  0x21   : > { %485 = vmatprep.subr.bf16.mxu0 (!%p247_p8), %v2146_v16  ;;  %1683 = vmatprep.mubr.msk.bf16.mxu1 (!%p247_p8), %vm2053_vm0, %v2051_v18  ;;  %p281_p9 = scmp.lt.s32.totalorder (!%p247_p8), %s2041_s17, 1  ;;  %v2175_v22 = vld [vmem:[%s2743_s2 + $0x34] ss:$12 sps:$4 sm:$0xff] (!%p247_p8)   ;;  %v2182_v23 = vld [vmem:[%s2743_s2 + $0x30] ss:$12 sps:$4 sm:$0xff] (!%p247_p8)   ;;  %v2054_v44 = vmov (!%p247_p8), 0.0|0.0  }
  0x22   : > { %486 = vmatpush1.bf16.msra.mxu0 (!%p247_p8), %v2151_v17  ;;  %1874 = vset.pattern.permute.xlu0 (!%p247_p8), %v2052_v19  ;;  %v2191_v24 = vld [vmem:[%s2743_s2 + $0x4c] ss:$12 sps:$4 sm:$0xff] (!%p247_p8)   ;;  %v2196_v25 = vld [vmem:[%s2743_s2 + $0x48] ss:$12 sps:$4 sm:$0xff] (!%p247_p8)   ;;  %v2207_v27 = vld [vmem:[%s2743_s2 + $0x64] ss:$12 sps:$4 sm:$0xff] (!%p247_p8)  }
  0x23   : > { %487 = vmatprep.subr.bf16.mxu0 (!%p247_p8), %v2159_v20  ;;  %1875 = vset.pattern.permute.xlu1 (!%p247_p8), %v2052_v19  ;;  %v2201_v26 = vld [vmem:[%s2743_s2 + $0x8] ss:$12 sps:$4 sm:$0xff] (!%p247_p8)   ;;  %v2215_v28 = vld [vmem:[%s2743_s2 + $0x20] ss:$12 sps:$4 sm:$0xff] (!%p247_p8)   ;;  %v2239_v31 = vld [vmem:[%s2743_s2 + $0x38] ss:$12 sps:$4 sm:$0xff] (!%p247_p8)  }
  0x24   : > { %1668 = vmatpush3.bf16.msra.mxu1 (!%p247_p8), %v2201_v26  ;;  %v2221_v29 = vld [vmem:[%s2743_s2 + $0x60] ss:$12 sps:$4 sm:$0xff] (!%p247_p8)   ;;  %v2227_v30 = vld [vmem:[%s2743_s2 + $0x7c] ss:$12 sps:$4 sm:$0xff] (!%p247_p8)   ;;  %v2246_v33 = vld [vmem:[%s2743_s2 + $0x78] ss:$12 sps:$4 sm:$0xff] (!%p247_p8)  }
  0x25   : > { %1669 = vmatprep.subr.bf16.mxu1 (!%p247_p8), %v2051_v18  ;;  %v2254_v35 = vld [vmem:[%s2743_s2 + $0x94] ss:$12 sps:$4 sm:$0xff] (!%p247_p8)   ;;  %v2260_v36 = vld [vmem:[%s2743_s2 + $0x50] ss:$12 sps:$4 sm:$0xff] (!%p247_p8)   ;;  %v2275_v39 = vld [vmem:[%s2743_s2 + $0xac] ss:$12 sps:$4 sm:$0xff] (!%p247_p8)  }
  0x26   : > { %488 = vmatpush1.bf16.msra.mxu0 (!%p247_p8), %v2167_v21  ;;  %v2269_v38 = vld [vmem:[%s2743_s2 + $0x90] ss:$12 sps:$4 sm:$0xff] (!%p247_p8)   ;;  %v2281_v40 = vld [vmem:[%s2743_s2 + $0x68] ss:$12 sps:$4 sm:$0xff] (!%p247_p8)   ;;  %v2295_v42 = vld [vmem:[%s2743_s2 + $0x80] ss:$12 sps:$4 sm:$0xff] (!%p247_p8)  }
  0x27   : > { %s2753_s17 = smov (!%p281_p9, %s2041_s17), 1  ;;  %489 = vmatprep.subr.bf16.mxu0 %v2175_v22  ;;  %v2288_v41 = vld [vmem:[%s2743_s2 + $0xa8] ss:$12 sps:$4 sm:$0xff]   ;;  %v2303_v43 = vld [vmem:[%s2743_s2 + $0x98] ss:$12 sps:$4 sm:$0xff]   ;;  %s253_s27 = sand.u32 1, %s2033_s15  }
  0x28   : > { %s1536_s6 = sshll.u32 %s2753_s17, 3  ;;  %1670 = vmatpush3.bf16.msra.mxu1 %v2215_v28  ;;  %v2313_v45 = vld [vmem:[%s2743_s2 + $0xb0] ss:$12 sps:$4 sm:$0xff]   ;;  %s1829_s28 = smul.u32 96, %s253_s27  ;;  %v343_v48 = vshrl.u32 %v342_v47, 7 }
  0x29   : > { %s284_s21 = scalar_lea.vmem %s2741_s0, %s1536_s6  ;;  %1671 = vmatprep.subr.bf16.mxu1 %v2051_v18  ;;  %v329_v50 = vld [vmem:[%s2744_s3] sm:$0x7]  ;;  %s289_s24 = scalar_lea.vmem %s2745_s4, %s1536_s6 }
  0x2a   : > { %490 = vmatpush1.bf16.msra.mxu0 %v2182_v23  ;;  %v330_v32 = vld [vmem:[%s284_s21] sm:$0xff]  ;;  %v344_v49 = vsub.s32 0, %v343_v48  ;;  %v348_v51 = vsub.s32 1, %v343_v48  ;;  %s2357_s5 = scalar_lea.vmem [#allocation4], %s1829_s28  ;;  %v352_v9 = vsub.s32 2, %v343_v48 }
  0x2b   : > { %491 = vmatprep.subr.bf16.mxu0 %v2191_v24  ;;  %v2248_v34 = vadd.s32 4294967295, %v330_v32  ;;  %v335_v52 = vld [vmem:[%s2357_s5] sm:$0xff]  ;;  %v2369_v12 = vld [vmem:[%s2357_s5 + $0x8] ss:$12 sps:$4 sm:$0xff]  }
  0x2c   : > { %1672 = vmatpush3.bf16.msra.mxu1 %v2239_v31  ;;  %v2360_v53 = vrot.slane %v329_v50, %v344_v49  ;;  %v2362_v54 = vrot.slane %v329_v50, %v348_v51  ;;  %v337_v55 = vunpack.c.l.bf16 %v335_v52  ;;  %v338_v59 = vunpack.c.h.bf16 %v335_v52 }
  0x2d   : > { %1673 = vmatprep.subr.bf16.mxu1 %v2051_v18  ;;  %vm588_vm1 = vcmp.eq.s32.totalorder %v2248_v34, 0  ;;  %vm706_vm2 = vcmp.eq.s32.totalorder %v2248_v34, 1  ;;  %v2366_v10 = vrot.slane %v329_v50, %v352_v9  ;;  %v339_v15 = vunpack.c.l.bf16 %v2369_v12 }
  0x2e   : > { %492 = vmatpush1.bf16.msra.mxu0 %v2196_v25  ;;  %v589_v37 = vsel %vm588_vm1, 1, %v2052_v19  ;;  %v707_v46 = vsel %vm706_vm2, 1, %v2052_v19  ;;  %vm824_vm3 = vcmp.eq.s32.totalorder %v2248_v34, 2  ;;  %vm942_vm4 = vcmp.eq.s32.totalorder %v2248_v34, 3 }
  0x2f   : > { %493 = vmatprep.subr.bf16.mxu0 %v2207_v27  ;;  %591 = vperm.xlu0 %1874, %v589_v37   ;;  %vm1060_vm5 = vcmp.eq.s32.totalorder %v2248_v34, 4  ;;  %vm1178_vm6 = vcmp.eq.s32.totalorder %v2248_v34, 5  ;;  %vm1296_vm7 = vcmp.eq.s32.totalorder %v2248_v34, 6  ;;  %vm1414_vm8 = vcmp.eq.s32.totalorder %v2248_v34, 7 }
  0x30   : > { %1674 = vmatpush3.bf16.msra.mxu1 %v2260_v36 }
  0x31   : > { %1675 = vmatprep.subr.bf16.mxu1 %v2051_v18 }
  0x32   : > { %494 = vmatpush1.bf16.msra.mxu0 %v2221_v29 }
  0x33   : > { %495 = vmatprep.subr.bf16.mxu0 %v2227_v30  ;;  %709 = vperm.xlu0 %1874, %v707_v46  }
  0x34   : > { %1676 = vmatpush3.bf16.msra.mxu1 %v2281_v40 }
  0x35   : > { %1677 = vmatprep.subr.bf16.mxu1 %v2051_v18 }
  0x36   : > { %496 = vmatpush1.bf16.msra.mxu0 %v2246_v33 }
  0x37   : > { %497 = vmatprep.subr.bf16.mxu0 %v2254_v35 }
  0x38   : > { %1678 = vmatpush3.bf16.msra.mxu1 %v2295_v42 }
  0x39   : > { %1679 = vmatprep.subr.bf16.mxu1 %v2051_v18 }
  0x3a   : > { %498 = vmatpush1.bf16.msra.mxu0 %v2269_v38 }
  0x3b   : > { %499 = vmatprep.subr.bf16.mxu0 %v2275_v39 }
  0x3c   : > { %1680 = vmatpush3.bf16.msra.mxu1 %v2303_v43 }
  0x3d   : > { %1681 = vmatprep.subr.bf16.mxu1 %v2051_v18 }
  0x3e   : > { %500 = vmatpush1.bf16.msra.mxu0 %v2288_v41 }
  0x3f   : > { %602 = vmatprep.subr.bf16.mxu0 %v2146_v16 }
  0x40   : > { %1682 = vmatpush3.bf16.msra.mxu1 %v2313_v45 }
  0x41   : > { %518 = vmatmul.mubr.bf16.vlgmr.msra.gmra.mrb[0].mxu0 %v2054_v44  ;;  %1687 = vmatprep.subr.bf16.mxu1 %v2051_v18 }
  0x42   : > { %603 = vmatpush1.bf16.msra.mxu0 %v2151_v17  ;;  %634 = vmatprep.mubr.bf16.mxu0 %v2052_v19 }
  0x43   : > { %604 = vmatprep.subr.bf16.mxu0 %v2159_v20  ;;  %1684 = vmatmul.mubr.bf16.vlgmr.msra.gmra.mrb[0].mxu1 %v2054_v44 }
  0x44   : > { %1688 = vmatpush3.bf16.msra.mxu1 %v2201_v26  ;;  %1703 = vmatprep.mubr.msk.bf16.mxu1 %vm2053_vm0, %v2051_v18 }
  0x45   : > { %1689 = vmatprep.subr.bf16.mxu1 %v2051_v18 }
  0x46   : > { %605 = vmatpush1.bf16.msra.mxu0 %v2167_v21 }
  0x47   : > { %606 = vmatprep.subr.bf16.mxu0 %v2175_v22 }
  0x48   : > { %1690 = vmatpush3.bf16.msra.mxu1 %v2215_v28 }
  0x49   : > { %1691 = vmatprep.subr.bf16.mxu1 %v2051_v18 }
  0x4a   : > { %607 = vmatpush1.bf16.msra.mxu0 %v2182_v23 }
  0x4b   : > { %608 = vmatprep.subr.bf16.mxu0 %v2191_v24 }
  0x4c   : > { %1692 = vmatpush3.bf16.msra.mxu1 %v2239_v31 }
  0x4d   : > { %1693 = vmatprep.subr.bf16.mxu1 %v2051_v18 }
  0x4e   : > { %609 = vmatpush1.bf16.msra.mxu0 %v2196_v25 }
  0x4f   : > { %610 = vmatprep.subr.bf16.mxu0 %v2207_v27 }
  0x50   : > { %1694 = vmatpush3.bf16.msra.mxu1 %v2260_v36 }
  0x51   : > { %1695 = vmatprep.subr.bf16.mxu1 %v2051_v18 }
  0x52   : > { %611 = vmatpush1.bf16.msra.mxu0 %v2221_v29 }
  0x53   : > { %612 = vmatprep.subr.bf16.mxu0 %v2227_v30 }
  0x54   : > { %1696 = vmatpush3.bf16.msra.mxu1 %v2281_v40 }
  0x55   : > { %1697 = vmatprep.subr.bf16.mxu1 %v2051_v18 }
  0x56   : > { %613 = vmatpush1.bf16.msra.mxu0 %v2246_v33 }
  0x57   : > { %614 = vmatprep.subr.bf16.mxu0 %v2254_v35 }
  0x58   : > { %1698 = vmatpush3.bf16.msra.mxu1 %v2295_v42 }
  0x59   : > { %1699 = vmatprep.subr.bf16.mxu1 %v2051_v18 }
  0x5a   : > { %615 = vmatpush1.bf16.msra.mxu0 %v2269_v38 }
  0x5b   : > { %616 = vmatprep.subr.bf16.mxu0 %v2275_v39 }
  0x5c   : > { %1700 = vmatpush3.bf16.msra.mxu1 %v2303_v43 }
  0x5d   : > { %1701 = vmatprep.subr.bf16.mxu1 %v2051_v18 }
  0x5e   : > { %617 = vmatpush1.bf16.msra.mxu0 %v2288_v41 }
  0x5f   : > { %720 = vmatprep.subr.bf16.mxu0 %v2146_v16 }
  0x60   : > { %1702 = vmatpush3.bf16.msra.mxu1 %v2313_v45 }
  0x61   : > { %1707 = vmatprep.subr.bf16.mxu1 %v2051_v18 }
 0x114   : > { %v519_v56 = vpop.f32.mrb[0].mxu0 }
 0x115   : > { %v520_v57 = vadd.f32 %v519_v56, %v2360_v53  ;;  %v521_v58 = vpop.f32.mrb[1].mxu0  ;;  %v1565_v56 = vld [vmem:[%s2357_s5 + $0xc] sm:$0xff] }
 0x116   : > { %v522_v60 = vadd.f32 %v521_v58, %v2362_v54  ;;  %v523_v61 = vpop.f32.mrb[2].mxu0  ;;  %v560_v2 = vpop.f32.mrb[0].mxu1 }
 0x117   : > { %v566_v62 = vadd.f32 %v520_v57, %v337_v55  ;;  %v524_v63 = vpop.f32.mrb[3].mxu0  ;;  %v1685_v4 = vpop.f32.mrb[1].mxu1  ;;  %v561_v14 = vadd.f32 %v560_v2, %v2366_v10  ;;  %v825_v55 = vsel %vm824_vm3, 1, %v2052_v19  ;;  %v598_v57 = vunpack.c.l.bf16 %v1565_v56 }
 0x118   : > { %v573_v1 = vadd.f32 %v522_v60, %v338_v59  ;;  %v563_v5 = vpop.f32.mrb[2].mxu1  ;;  %827 = vperm.xlu1 %1875, %v825_v55   ;;  %v599_v63 = vunpack.c.h.bf16 %v1565_v56 }
 0x119   : > { %v1563_v0 = vmul.f32 -1.442695, %v566_v62  ;;  %v1686_v6 = vpop.f32.mrb[3].mxu1 }
 0x11a   : > { %v1564_v3 = vmul.f32 -1.442695, %v573_v1 }
 0x11b   : > { %1908 = vpow2.f32 %v1563_v0 }
 0x11c   : > { %1910 = vpow2.f32 %v1564_v3 }
 0x125   : > { %v1909_v7 = vpop.eup %1908 }
 0x126   : > { %v570_v8 = vadd.f32 1.0, %v1909_v7  ;;  %v1911_v11 = vpop.eup %1910 }
 0x127   : > { %v577_v13 = vadd.f32 1.0, %v1911_v11 }
 0x128   : > { %1912 = vrcp.f32 %v570_v8 }
 0x129   : > { %1914 = vrcp.f32 %v577_v13 }
 0x132   : > { %v1913_v32 = vpop.eup %1912 }
 0x133   : > { %v580_v37 = vmul.f32 %v1913_v32, %v561_v14  ;;  %v1915_v46 = vpop.eup %1914 }
 0x134   : > { %v583_v47 = vsub.f32 1.0, %v1915_v46  ;;  %v585_v51 = vmul.f32 0.0, %v1915_v46 }
 0x135   : > { %v581_v44 = vadd.f32 %v580_v37, %v339_v15  ;;  %v600_v15 = vunpack.c.h.bf16 %v2369_v12  ;;  %v943_v12 = vsel %vm942_vm4, 1, %v2052_v19 }
 0x136   : > { %945 = vperm.xlu1 %1875, %v943_v12  }
 0x137   : > { %1916 = vtanh.f32 %v581_v44 }
 0x141   : > { %v1917_v49 = vpop.eup %1916 }
 0x142   : > { %v584_v48 = vmul.f32 %v1917_v49, %v583_v47 }
 0x144   : > { %v2373_v50 = vadd.f32 %v585_v51, %v584_v48 }
 0x146   : > { %v601_v52 = vpack.c.bf16 %v2373_v50, %v2373_v50 }
 0x148   : > { %635 = vmatmul.mubr.bf16.vlgmr.msra.gmra.mrb[4].mxu0 %v601_v52  ;;  %1704 = vmatmul.mubr.bf16.vlgmr.msra.gmra.mrb[4].mxu1 %v601_v52 }
 0x149   : > { %721 = vmatpush1.bf16.msra.mxu0 %v2151_v17  ;;  %1708 = vmatpush3.bf16.msra.mxu1 %v2201_v26 }
 0x14a   : > { %722 = vmatprep.subr.bf16.mxu0 %v2159_v20  ;;  %1709 = vmatprep.subr.bf16.mxu1 %v2051_v18 }
 0x14b   : > { %752 = vmatprep.mubr.bf16.mxu0 %v2052_v19  ;;  %1723 = vmatprep.mubr.msk.bf16.mxu1 %vm2053_vm0, %v2051_v18 }
 0x14d   : > { %723 = vmatpush1.bf16.msra.mxu0 %v2167_v21  ;;  %1710 = vmatpush3.bf16.msra.mxu1 %v2215_v28 }
 0x14e   : > { %724 = vmatprep.subr.bf16.mxu0 %v2175_v22  ;;  %1711 = vmatprep.subr.bf16.mxu1 %v2051_v18 }
 0x151   : > { %725 = vmatpush1.bf16.msra.mxu0 %v2182_v23  ;;  %1712 = vmatpush3.bf16.msra.mxu1 %v2239_v31 }
 0x152   : > { %726 = vmatprep.subr.bf16.mxu0 %v2191_v24  ;;  %1713 = vmatprep.subr.bf16.mxu1 %v2051_v18 }
 0x155   : > { %727 = vmatpush1.bf16.msra.mxu0 %v2196_v25  ;;  %1714 = vmatpush3.bf16.msra.mxu1 %v2260_v36 }
 0x156   : > { %728 = vmatprep.subr.bf16.mxu0 %v2207_v27  ;;  %1715 = vmatprep.subr.bf16.mxu1 %v2051_v18 }
 0x159   : > { %729 = vmatpush1.bf16.msra.mxu0 %v2221_v29  ;;  %1716 = vmatpush3.bf16.msra.mxu1 %v2281_v40 }
 0x15a   : > { %730 = vmatprep.subr.bf16.mxu0 %v2227_v30  ;;  %1717 = vmatprep.subr.bf16.mxu1 %v2051_v18 }
 0x15d   : > { %731 = vmatpush1.bf16.msra.mxu0 %v2246_v33  ;;  %1718 = vmatpush3.bf16.msra.mxu1 %v2295_v42 }
 0x15e   : > { %732 = vmatprep.subr.bf16.mxu0 %v2254_v35  ;;  %1719 = vmatprep.subr.bf16.mxu1 %v2051_v18 }
 0x161   : > { %733 = vmatpush1.bf16.msra.mxu0 %v2269_v38  ;;  %1720 = vmatpush3.bf16.msra.mxu1 %v2303_v43 }
 0x162   : > { %734 = vmatprep.subr.bf16.mxu0 %v2275_v39  ;;  %1721 = vmatprep.subr.bf16.mxu1 %v2051_v18 }
 0x165   : > { %735 = vmatpush1.bf16.msra.mxu0 %v2288_v41  ;;  %1722 = vmatpush3.bf16.msra.mxu1 %v2313_v45 }
 0x166   : > { %838 = vmatprep.subr.bf16.mxu0 %v2146_v16  ;;  %1727 = vmatprep.subr.bf16.mxu1 %v2051_v18 }
 0x21b   : > { %v636_v58 = vpop.f32.mrb[4].mxu0  ;;  %v677_v59 = vpop.f32.mrb[4].mxu1 }
 0x21c   : > { %v637_v60 = vadd.f32 %v636_v58, %v2360_v53  ;;  %v638_v61 = vpop.f32.mrb[5].mxu0  ;;  %v1705_v62 = vpop.f32.mrb[5].mxu1  ;;  %v678_v32 = vadd.f32 %v677_v59, %v2366_v10 }
 0x21d   : > { %v639_v0 = vadd.f32 %v638_v61, %v2362_v54  ;;  %v640_v1 = vpop.f32.mrb[6].mxu0  ;;  %v680_v2 = vpop.f32.mrb[6].mxu1 }
 0x21e   : > { %v683_v3 = vadd.f32 %v637_v60, %v598_v57  ;;  %v641_v4 = vpop.f32.mrb[7].mxu0  ;;  %v1706_v5 = vpop.f32.mrb[7].mxu1  ;;  %v1569_v57 = vld [vmem:[%s2357_s5 + $0x18] sm:$0xff] }
 0x21f   : > { %v690_v7 = vadd.f32 %v639_v0, %v599_v63  ;;  %v716_v58 = vunpack.c.l.bf16 %v1569_v57  ;;  %v717_v0 = vunpack.c.h.bf16 %v1569_v57 }
 0x220   : > { %v1567_v6 = vmul.f32 -1.442695, %v683_v3 }
 0x221   : > { %v1568_v8 = vmul.f32 -1.442695, %v690_v7 }
 0x222   : > { %1918 = vpow2.f32 %v1567_v6 }
 0x223   : > { %1920 = vpow2.f32 %v1568_v8 }
 0x22c   : > { %v1919_v9 = vpop.eup %1918 }
 0x22d   : > { %v687_v11 = vadd.f32 1.0, %v1919_v9  ;;  %v1921_v13 = vpop.eup %1920 }
 0x22e   : > { %v694_v14 = vadd.f32 1.0, %v1921_v13 }
 0x22f   : > { %1922 = vrcp.f32 %v687_v11 }
 0x230   : > { %1924 = vrcp.f32 %v694_v14 }
 0x239   : > { %v1923_v37 = vpop.eup %1922 }
 0x23a   : > { %v697_v44 = vmul.f32 %v1923_v37, %v678_v32  ;;  %v1925_v47 = vpop.eup %1924 }
 0x23b   : > { %v700_v49 = vsub.f32 1.0, %v1925_v47  ;;  %v702_v52 = vmul.f32 %v1925_v47, %v2373_v50 }
 0x23c   : > { %v698_v46 = vadd.f32 %v697_v44, %v600_v15  ;;  %v2465_v15 = vld [vmem:[%s2357_s5 + $0x20] ss:$12 sps:$4 sm:$0xff]  }
 0x23d   : > { %v718_v37 = vunpack.c.l.bf16 %v2465_v15 }
 0x23e   : > { %1926 = vtanh.f32 %v698_v46 }
 0x248   : > { %v1927_v48 = vpop.eup %1926 }
 0x249   : > { %v701_v51 = vmul.f32 %v1927_v48, %v700_v49 }
 0x24b   : > { %v2420_v55 = vadd.f32 %v702_v52, %v701_v51 }
 0x24d   : > { %v719_v56 = vpack.c.bf16 %v2420_v55, %v2420_v55 }
 0x24f   : > { %753 = vmatmul.mubr.bf16.vlgmr.msra.gmra.mrb[8].mxu0 %v719_v56  ;;  %1724 = vmatmul.mubr.bf16.vlgmr.msra.gmra.mrb[8].mxu1 %v719_v56 }
 0x250   : > { %839 = vmatpush1.bf16.msra.mxu0 %v2151_v17  ;;  %1728 = vmatpush3.bf16.msra.mxu1 %v2201_v26 }
 0x251   : > { %840 = vmatprep.subr.bf16.mxu0 %v2159_v20  ;;  %1729 = vmatprep.subr.bf16.mxu1 %v2051_v18 }
 0x252   : > { %870 = vmatprep.mubr.bf16.mxu0 %v2052_v19  ;;  %1743 = vmatprep.mubr.msk.bf16.mxu1 %vm2053_vm0, %v2051_v18 }
 0x254   : > { %841 = vmatpush1.bf16.msra.mxu0 %v2167_v21  ;;  %1730 = vmatpush3.bf16.msra.mxu1 %v2215_v28 }
 0x255   : > { %842 = vmatprep.subr.bf16.mxu0 %v2175_v22  ;;  %1731 = vmatprep.subr.bf16.mxu1 %v2051_v18 }
 0x258   : > { %843 = vmatpush1.bf16.msra.mxu0 %v2182_v23  ;;  %1732 = vmatpush3.bf16.msra.mxu1 %v2239_v31 }
 0x259   : > { %844 = vmatprep.subr.bf16.mxu0 %v2191_v24  ;;  %1733 = vmatprep.subr.bf16.mxu1 %v2051_v18 }
 0x25c   : > { %845 = vmatpush1.bf16.msra.mxu0 %v2196_v25  ;;  %1734 = vmatpush3.bf16.msra.mxu1 %v2260_v36 }
 0x25d   : > { %846 = vmatprep.subr.bf16.mxu0 %v2207_v27  ;;  %1735 = vmatprep.subr.bf16.mxu1 %v2051_v18 }
 0x260   : > { %847 = vmatpush1.bf16.msra.mxu0 %v2221_v29  ;;  %1736 = vmatpush3.bf16.msra.mxu1 %v2281_v40 }
 0x261   : > { %848 = vmatprep.subr.bf16.mxu0 %v2227_v30  ;;  %1737 = vmatprep.subr.bf16.mxu1 %v2051_v18 }
 0x264   : > { %849 = vmatpush1.bf16.msra.mxu0 %v2246_v33  ;;  %1738 = vmatpush3.bf16.msra.mxu1 %v2295_v42 }
 0x265   : > { %850 = vmatprep.subr.bf16.mxu0 %v2254_v35  ;;  %1739 = vmatprep.subr.bf16.mxu1 %v2051_v18 }
 0x268   : > { %851 = vmatpush1.bf16.msra.mxu0 %v2269_v38  ;;  %1740 = vmatpush3.bf16.msra.mxu1 %v2303_v43 }
 0x269   : > { %852 = vmatprep.subr.bf16.mxu0 %v2275_v39  ;;  %1741 = vmatprep.subr.bf16.mxu1 %v2051_v18 }
 0x26c   : > { %853 = vmatpush1.bf16.msra.mxu0 %v2288_v41  ;;  %1742 = vmatpush3.bf16.msra.mxu1 %v2313_v45 }
 0x26d   : > { %956 = vmatprep.subr.bf16.mxu0 %v2146_v16  ;;  %1747 = vmatprep.subr.bf16.mxu1 %v2051_v18 }
 0x322   : > { %v754_v59 = vpop.f32.mrb[8].mxu0  ;;  %v795_v60 = vpop.f32.mrb[8].mxu1 }
 0x323   : > { %v755_v61 = vadd.f32 %v754_v59, %v2360_v53  ;;  %v756_v62 = vpop.f32.mrb[9].mxu0  ;;  %v1725_v63 = vpop.f32.mrb[9].mxu1  ;;  %v796_v44 = vadd.f32 %v795_v60, %v2366_v10  ;;  %v1061_v59 = vsel %vm1060_vm5, 1, %v2052_v19  ;;  %v1573_v60 = vld [vmem:[%s2357_s5 + $0x24] sm:$0xff] }
 0x324   : > { %v757_v1 = vadd.f32 %v756_v62, %v2362_v54  ;;  %v758_v2 = vpop.f32.mrb[10].mxu0  ;;  %v798_v3 = vpop.f32.mrb[10].mxu1  ;;  %1063 = vperm.xlu0 %1874, %v1061_v59  }
 0x325   : > { %v801_v4 = vadd.f32 %v755_v61, %v716_v58  ;;  %v759_v5 = vpop.f32.mrb[11].mxu0  ;;  %v1726_v6 = vpop.f32.mrb[11].mxu1  ;;  %v834_v61 = vunpack.c.l.bf16 %v1573_v60  ;;  %v835_v3 = vunpack.c.h.bf16 %v1573_v60 }
 0x326   : > { %v808_v8 = vadd.f32 %v757_v1, %v717_v0 }
 0x327   : > { %v1571_v7 = vmul.f32 -1.442695, %v801_v4 }
 0x328   : > { %v1572_v9 = vmul.f32 -1.442695, %v808_v8 }
 0x329   : > { %1928 = vpow2.f32 %v1571_v7 }
 0x32a   : > { %1930 = vpow2.f32 %v1572_v9 }
 0x333   : > { %v1929_v11 = vpop.eup %1928 }
 0x334   : > { %v805_v13 = vadd.f32 1.0, %v1929_v11  ;;  %v1931_v14 = vpop.eup %1930 }
 0x335   : > { %v812_v32 = vadd.f32 1.0, %v1931_v14 }
 0x336   : > { %1932 = vrcp.f32 %v805_v13 }
 0x337   : > { %1934 = vrcp.f32 %v812_v32 }
 0x340   : > { %v1933_v46 = vpop.eup %1932 }
 0x341   : > { %v815_v47 = vmul.f32 %v1933_v46, %v796_v44  ;;  %v1935_v48 = vpop.eup %1934 }
 0x342   : > { %v818_v51 = vsub.f32 1.0, %v1935_v48  ;;  %v820_v12 = vmul.f32 %v1935_v48, %v2420_v55 }
 0x343   : > { %v816_v49 = vadd.f32 %v815_v47, %v718_v37  ;;  %v836_v47 = vunpack.c.h.bf16 %v2465_v15  ;;  %v1179_v15 = vsel %vm1178_vm6, 1, %v2052_v19 }
 0x344   : > { %1181 = vperm.xlu1 %1875, %v1179_v15  }
 0x345   : > { %1936 = vtanh.f32 %v816_v49 }
 0x34f   : > { %v1937_v52 = vpop.eup %1936 }
 0x350   : > { %v819_v56 = vmul.f32 %v1937_v52, %v818_v51 }
 0x352   : > { %v2470_v57 = vadd.f32 %v820_v12, %v819_v56 }
 0x354   : > { %v837_v58 = vpack.c.bf16 %v2470_v57, %v2470_v57 }
 0x356   : > { %871 = vmatmul.mubr.bf16.vlgmr.msra.gmra.mrb[12].mxu0 %v837_v58  ;;  %1744 = vmatmul.mubr.bf16.vlgmr.msra.gmra.mrb[12].mxu1 %v837_v58 }
 0x357   : > { %957 = vmatpush1.bf16.msra.mxu0 %v2151_v17  ;;  %1748 = vmatpush3.bf16.msra.mxu1 %v2201_v26 }
 0x358   : > { %958 = vmatprep.subr.bf16.mxu0 %v2159_v20  ;;  %1749 = vmatprep.subr.bf16.mxu1 %v2051_v18 }
 0x359   : > { %988 = vmatprep.mubr.bf16.mxu0 %v2052_v19  ;;  %1763 = vmatprep.mubr.msk.bf16.mxu1 %vm2053_vm0, %v2051_v18 }
 0x35b   : > { %959 = vmatpush1.bf16.msra.mxu0 %v2167_v21  ;;  %1750 = vmatpush3.bf16.msra.mxu1 %v2215_v28 }
 0x35c   : > { %960 = vmatprep.subr.bf16.mxu0 %v2175_v22  ;;  %1751 = vmatprep.subr.bf16.mxu1 %v2051_v18 }
 0x35f   : > { %961 = vmatpush1.bf16.msra.mxu0 %v2182_v23  ;;  %1752 = vmatpush3.bf16.msra.mxu1 %v2239_v31 }
 0x360   : > { %962 = vmatprep.subr.bf16.mxu0 %v2191_v24  ;;  %1753 = vmatprep.subr.bf16.mxu1 %v2051_v18 }
 0x363   : > { %963 = vmatpush1.bf16.msra.mxu0 %v2196_v25  ;;  %1754 = vmatpush3.bf16.msra.mxu1 %v2260_v36 }
 0x364   : > { %964 = vmatprep.subr.bf16.mxu0 %v2207_v27  ;;  %1755 = vmatprep.subr.bf16.mxu1 %v2051_v18 }
 0x367   : > { %965 = vmatpush1.bf16.msra.mxu0 %v2221_v29  ;;  %1756 = vmatpush3.bf16.msra.mxu1 %v2281_v40 }
 0x368   : > { %966 = vmatprep.subr.bf16.mxu0 %v2227_v30  ;;  %1757 = vmatprep.subr.bf16.mxu1 %v2051_v18 }
 0x36b   : > { %967 = vmatpush1.bf16.msra.mxu0 %v2246_v33  ;;  %1758 = vmatpush3.bf16.msra.mxu1 %v2295_v42 }
 0x36c   : > { %968 = vmatprep.subr.bf16.mxu0 %v2254_v35  ;;  %1759 = vmatprep.subr.bf16.mxu1 %v2051_v18 }
 0x36f   : > { %969 = vmatpush1.bf16.msra.mxu0 %v2269_v38  ;;  %1760 = vmatpush3.bf16.msra.mxu1 %v2303_v43 }
 0x370   : > { %970 = vmatprep.subr.bf16.mxu0 %v2275_v39  ;;  %1761 = vmatprep.subr.bf16.mxu1 %v2051_v18 }
 0x373   : > { %971 = vmatpush1.bf16.msra.mxu0 %v2288_v41  ;;  %1762 = vmatpush3.bf16.msra.mxu1 %v2313_v45 }
 0x374   : > { %1074 = vmatprep.subr.bf16.mxu0 %v2146_v16  ;;  %1767 = vmatprep.subr.bf16.mxu1 %v2051_v18 }
 0x429   : > { %v872_v62 = vpop.f32.mrb[12].mxu0  ;;  %v913_v63 = vpop.f32.mrb[12].mxu1 }
 0x42a   : > { %v873_v0 = vadd.f32 %v872_v62, %v2360_v53  ;;  %v874_v1 = vpop.f32.mrb[13].mxu0  ;;  %v1745_v2 = vpop.f32.mrb[13].mxu1  ;;  %v914_v49 = vadd.f32 %v913_v63, %v2366_v10  ;;  %v1577_v63 = vld [vmem:[%s2357_s5 + $0x30] sm:$0xff] }
 0x42b   : > { %v875_v4 = vadd.f32 %v874_v1, %v2362_v54  ;;  %v876_v5 = vpop.f32.mrb[14].mxu0  ;;  %v916_v6 = vpop.f32.mrb[14].mxu1 }
 0x42c   : > { %v919_v7 = vadd.f32 %v873_v0, %v834_v61  ;;  %v877_v8 = vpop.f32.mrb[15].mxu0  ;;  %v1746_v9 = vpop.f32.mrb[15].mxu1  ;;  %v952_v0 = vunpack.c.l.bf16 %v1577_v63  ;;  %v953_v6 = vunpack.c.h.bf16 %v1577_v63 }
 0x42d   : > { %v926_v13 = vadd.f32 %v875_v4, %v835_v3 }
 0x42e   : > { %v1575_v11 = vmul.f32 -1.442695, %v919_v7 }
 0x42f   : > { %v1576_v14 = vmul.f32 -1.442695, %v926_v13 }
 0x430   : > { %1938 = vpow2.f32 %v1575_v11 }
 0x431   : > { %1940 = vpow2.f32 %v1576_v14 }
 0x43a   : > { %v1939_v32 = vpop.eup %1938 }
 0x43b   : > { %v923_v37 = vadd.f32 1.0, %v1939_v32  ;;  %v1941_v44 = vpop.eup %1940 }
 0x43c   : > { %v930_v46 = vadd.f32 1.0, %v1941_v44 }
 0x43d   : > { %1942 = vrcp.f32 %v923_v37 }
 0x43e   : > { %1944 = vrcp.f32 %v930_v46 }
 0x447   : > { %v1943_v48 = vpop.eup %1942 }
 0x448   : > { %v933_v51 = vmul.f32 %v1943_v48, %v914_v49  ;;  %v1945_v56 = vpop.eup %1944  ;;  %v2562_v49 = vld [vmem:[%s2357_s5 + $0x38] ss:$12 sps:$4 sm:$0xff]  }
 0x449   : > { %v936_v12 = vsub.f32 1.0, %v1945_v56  ;;  %v938_v60 = vmul.f32 %v1945_v56, %v2470_v57 }
 0x44a   : > { %v934_v52 = vadd.f32 %v933_v51, %v836_v47  ;;  %v954_v51 = vunpack.c.l.bf16 %v2562_v49 }
 0x44c   : > { %1946 = vtanh.f32 %v934_v52 }
 0x456   : > { %v1947_v58 = vpop.eup %1946 }
 0x457   : > { %v937_v59 = vmul.f32 %v1947_v58, %v936_v12 }
 0x459   : > { %v2517_v61 = vadd.f32 %v938_v60, %v937_v59 }
 0x45b   : > { %v955_v62 = vpack.c.bf16 %v2517_v61, %v2517_v61 }
 0x45d   : > { %989 = vmatmul.mubr.bf16.vlgmr.msra.gmra.mrb[16].mxu0 %v955_v62  ;;  %1764 = vmatmul.mubr.bf16.vlgmr.msra.gmra.mrb[16].mxu1 %v955_v62 }
 0x45e   : > { %1075 = vmatpush1.bf16.msra.mxu0 %v2151_v17  ;;  %1768 = vmatpush3.bf16.msra.mxu1 %v2201_v26 }
 0x45f   : > { %1076 = vmatprep.subr.bf16.mxu0 %v2159_v20  ;;  %1769 = vmatprep.subr.bf16.mxu1 %v2051_v18 }
 0x460   : > { %1106 = vmatprep.mubr.bf16.mxu0 %v2052_v19  ;;  %1783 = vmatprep.mubr.msk.bf16.mxu1 %vm2053_vm0, %v2051_v18 }
 0x462   : > { %1077 = vmatpush1.bf16.msra.mxu0 %v2167_v21  ;;  %1770 = vmatpush3.bf16.msra.mxu1 %v2215_v28 }
 0x463   : > { %1078 = vmatprep.subr.bf16.mxu0 %v2175_v22  ;;  %1771 = vmatprep.subr.bf16.mxu1 %v2051_v18 }
 0x466   : > { %1079 = vmatpush1.bf16.msra.mxu0 %v2182_v23  ;;  %1772 = vmatpush3.bf16.msra.mxu1 %v2239_v31 }
 0x467   : > { %1080 = vmatprep.subr.bf16.mxu0 %v2191_v24  ;;  %1773 = vmatprep.subr.bf16.mxu1 %v2051_v18 }
 0x46a   : > { %1081 = vmatpush1.bf16.msra.mxu0 %v2196_v25  ;;  %1774 = vmatpush3.bf16.msra.mxu1 %v2260_v36 }
 0x46b   : > { %1082 = vmatprep.subr.bf16.mxu0 %v2207_v27  ;;  %1775 = vmatprep.subr.bf16.mxu1 %v2051_v18 }
 0x46e   : > { %1083 = vmatpush1.bf16.msra.mxu0 %v2221_v29  ;;  %1776 = vmatpush3.bf16.msra.mxu1 %v2281_v40 }
 0x46f   : > { %1084 = vmatprep.subr.bf16.mxu0 %v2227_v30  ;;  %1777 = vmatprep.subr.bf16.mxu1 %v2051_v18 }
 0x472   : > { %1085 = vmatpush1.bf16.msra.mxu0 %v2246_v33  ;;  %1778 = vmatpush3.bf16.msra.mxu1 %v2295_v42 }
 0x473   : > { %1086 = vmatprep.subr.bf16.mxu0 %v2254_v35  ;;  %1779 = vmatprep.subr.bf16.mxu1 %v2051_v18 }
 0x476   : > { %1087 = vmatpush1.bf16.msra.mxu0 %v2269_v38  ;;  %1780 = vmatpush3.bf16.msra.mxu1 %v2303_v43 }
 0x477   : > { %1088 = vmatprep.subr.bf16.mxu0 %v2275_v39  ;;  %1781 = vmatprep.subr.bf16.mxu1 %v2051_v18 }
 0x47a   : > { %1089 = vmatpush1.bf16.msra.mxu0 %v2288_v41  ;;  %1782 = vmatpush3.bf16.msra.mxu1 %v2313_v45 }
 0x47b   : > { %1192 = vmatprep.subr.bf16.mxu0 %v2146_v16  ;;  %1787 = vmatprep.subr.bf16.mxu1 %v2051_v18 }
 0x530   : > { %v990_v1 = vpop.f32.mrb[16].mxu0  ;;  %v1031_v2 = vpop.f32.mrb[16].mxu1 }
 0x531   : > { %v991_v3 = vadd.f32 %v990_v1, %v2360_v53  ;;  %v992_v4 = vpop.f32.mrb[17].mxu0  ;;  %v1765_v5 = vpop.f32.mrb[17].mxu1  ;;  %v1032_v52 = vadd.f32 %v1031_v2, %v2366_v10 }
 0x532   : > { %v993_v7 = vadd.f32 %v992_v4, %v2362_v54  ;;  %v994_v16 = vpop.f32.mrb[18].mxu0  ;;  %v1034_v8 = vpop.f32.mrb[18].mxu1 }
 0x533   : > { %v1037_v9 = vadd.f32 %v991_v3, %v952_v0  ;;  %v995_v11 = vpop.f32.mrb[19].mxu0  ;;  %v1766_v13 = vpop.f32.mrb[19].mxu1  ;;  %v1072_v3 = vunpack.c.h.bf16 %v2562_v49  ;;  %v1993_v49 = vld [vmem:[%s2743_s2 + $0x20] ss:$12 sps:$4 sm:$0xff]  }
 0x534   : > { %v1044_v32 = vadd.f32 %v993_v7, %v953_v6 }
 0x535   : > { %v1579_v14 = vmul.f32 -1.442695, %v1037_v9 }
 0x536   : > { %v1580_v37 = vmul.f32 -1.442695, %v1044_v32 }
 0x537   : > { %1948 = vpow2.f32 %v1579_v14 }
 0x538   : > { %1950 = vpow2.f32 %v1580_v37  ;;  %v1989_v37 = vld [vmem:[%s2743_s2] ss:$12 sps:$4 sm:$0xff]  }
 0x541   : > { %v1949_v44 = vpop.eup %1948 }
 0x542   : > { %v1041_v46 = vadd.f32 1.0, %v1949_v44  ;;  %v1951_v47 = vpop.eup %1950  ;;  %v1990_v44 = vld [vmem:[%s2743_s2 + $0x8] ss:$12 sps:$4 sm:$0xff]  }
 0x543   : > { %v1048_v48 = vadd.f32 1.0, %v1951_v47  ;;  %v1992_v47 = vld [vmem:[%s2743_s2 + $0x18] ss:$12 sps:$4 sm:$0xff]  }
 0x544   : > { %1952 = vrcp.f32 %v1041_v46  ;;  %v1991_v46 = vld [vmem:[%s2743_s2 + $0x1c] ss:$12 sps:$4 sm:$0xff]  }
 0x545   : > { %1954 = vrcp.f32 %v1048_v48  ;;  %v1994_v48 = vld [vmem:[%s2743_s2 + $0x34] ss:$12 sps:$4 sm:$0xff]  }
 0x54e   : > { %v1953_v56 = vpop.eup %1952 }
 0x54f   : > { %v1051_v12 = vmul.f32 %v1953_v56, %v1032_v52  ;;  %v1955_v59 = vpop.eup %1954  ;;  %v1996_v52 = vld [vmem:[%s2743_s2 + $0x38] ss:$12 sps:$4 sm:$0xff]  }
 0x550   : > { %v1054_v60 = vsub.f32 1.0, %v1955_v59  ;;  %v1056_v63 = vmul.f32 %v1955_v59, %v2517_v61  ;;  %v1997_v56 = vld [vmem:[%s2743_s2 + $0x4c] ss:$12 sps:$4 sm:$0xff]   ;;  %v2000_v59 = vld [vmem:[%s2743_s2 + $0x64] ss:$12 sps:$4 sm:$0xff]  }
 0x551   : > { %v1052_v58 = vadd.f32 %v1051_v12, %v954_v51  ;;  %v1995_v51 = vld [vmem:[%s2743_s2 + $0x30] ss:$12 sps:$4 sm:$0xff]   ;;  %v1998_v12 = vld [vmem:[%s2743_s2 + $0x48] ss:$12 sps:$4 sm:$0xff]  }
 0x553   : > { %1956 = vtanh.f32 %v1052_v58  ;;  %v1999_v58 = vld [vmem:[%s2743_s2 + $0x50] ss:$12 sps:$4 sm:$0xff]  }
 0x55d   : > { %v1957_v62 = vpop.eup %1956 }
 0x55e   : > { %v1055_v15 = vmul.f32 %v1957_v62, %v1054_v60  ;;  %v2001_v60 = vld [vmem:[%s2743_s2 + $0x60] ss:$12 sps:$4 sm:$0xff]   ;;  %v2002_v62 = vld [vmem:[%s2743_s2 + $0x68] ss:$12 sps:$4 sm:$0xff]  }
 0x560   : > { %v2567_v0 = vadd.f32 %v1056_v63, %v1055_v15  ;;  %v2003_v15 = vld [vmem:[%s2743_s2 + $0x7c] ss:$12 sps:$4 sm:$0xff]   ;;  %v2004_v63 = vld [vmem:[%s2743_s2 + $0x78] ss:$12 sps:$4 sm:$0xff]  }
 0x562   : > { %v1073_v1 = vpack.c.bf16 %v2567_v0, %v2567_v0 }
 0x564   : > { %1107 = vmatmul.mubr.bf16.vlgmr.msra.gmra.mrb[20].mxu0 %v1073_v1  ;;  %1784 = vmatmul.mubr.bf16.vlgmr.msra.gmra.mrb[20].mxu1 %v1073_v1  ;;  %v2005_v1 = vld [vmem:[%s2743_s2 + $0x80] ss:$12 sps:$4 sm:$0xff]  }
 0x565   : > { %1193 = vmatpush1.bf16.msra.mxu0 %v2151_v17  ;;  %1788 = vmatpush3.bf16.msra.mxu1 %v2201_v26  ;;  %v1988_v17 = vld [vmem:[%s2743_s2 + $0x4] ss:$12 sps:$4 sm:$0xff]  }
 0x566   : > { %1194 = vmatprep.subr.bf16.mxu0 %v2159_v20  ;;  %1789 = vmatprep.subr.bf16.mxu1 %v2051_v18  ;;  %v1297_v20 = vsel %vm1296_vm7, 1, %v2052_v19 }
 0x567   : > { %1224 = vmatprep.mubr.bf16.mxu0 %v2052_v19  ;;  %1803 = vmatprep.mubr.msk.bf16.mxu1 %vm2053_vm0, %v2051_v18 }
 0x568   : > { %1299 = vperm.xlu0 %1874, %v1297_v20   ;;  %v2007_v20 = vld [vmem:[%s2743_s2 + $0x90] ss:$12 sps:$4 sm:$0xff]  }
 0x569   : > { %1195 = vmatpush1.bf16.msra.mxu0 %v2167_v21  ;;  %1790 = vmatpush3.bf16.msra.mxu1 %v2215_v28  ;;  %v1581_v21 = vld [vmem:[%s2357_s5 + $0x3c] sm:$0xff] }
 0x56a   : > { %1196 = vmatprep.subr.bf16.mxu0 %v2175_v22  ;;  %1791 = vmatprep.subr.bf16.mxu1 %v2051_v18  ;;  %v1070_v22 = vunpack.c.l.bf16 %v1581_v21  ;;  %v1071_v28 = vunpack.c.h.bf16 %v1581_v21  ;;  %v2008_v21 = vld [vmem:[%s2743_s2 + $0x98] ss:$12 sps:$4 sm:$0xff]  }
 0x56d   : > { %1197 = vmatpush1.bf16.msra.mxu0 %v2182_v23  ;;  %1792 = vmatpush3.bf16.msra.mxu1 %v2239_v31 }
 0x56e   : > { %1198 = vmatprep.subr.bf16.mxu0 %v2191_v24  ;;  %1793 = vmatprep.subr.bf16.mxu1 %v2051_v18 }
 0x571   : > { %1199 = vmatpush1.bf16.msra.mxu0 %v2196_v25  ;;  %1794 = vmatpush3.bf16.msra.mxu1 %v2260_v36 }
 0x572   : > { %1200 = vmatprep.subr.bf16.mxu0 %v2207_v27  ;;  %1795 = vmatprep.subr.bf16.mxu1 %v2051_v18 }
 0x575   : > { %1201 = vmatpush1.bf16.msra.mxu0 %v2221_v29  ;;  %1796 = vmatpush3.bf16.msra.mxu1 %v2281_v40 }
 0x576   : > { %1202 = vmatprep.subr.bf16.mxu0 %v2227_v30  ;;  %1797 = vmatprep.subr.bf16.mxu1 %v2051_v18 }
 0x579   : > { %1203 = vmatpush1.bf16.msra.mxu0 %v2246_v33  ;;  %1798 = vmatpush3.bf16.msra.mxu1 %v2295_v42 }
 0x57a   : > { %1204 = vmatprep.subr.bf16.mxu0 %v2254_v35  ;;  %1799 = vmatprep.subr.bf16.mxu1 %v2051_v18 }
 0x57d   : > { %1205 = vmatpush1.bf16.msra.mxu0 %v2269_v38  ;;  %1800 = vmatpush3.bf16.msra.mxu1 %v2303_v43 }
 0x57e   : > { %1206 = vmatprep.subr.bf16.mxu0 %v2275_v39  ;;  %1801 = vmatprep.subr.bf16.mxu1 %v2051_v18 }
 0x581   : > { %1207 = vmatpush1.bf16.msra.mxu0 %v2288_v41  ;;  %1802 = vmatpush3.bf16.msra.mxu1 %v2313_v45 }
 0x582   : > { %1310 = vmatprep.subr.bf16.mxu0 %v1988_v17  ;;  %1807 = vmatprep.subr.bf16.mxu1 %v2051_v18  ;;  %v2006_v17 = vld [vmem:[%s2743_s2 + $0x94] ss:$12 sps:$4 sm:$0xff]  }
 0x637   : > { %v1108_v23 = vpop.f32.mrb[20].mxu0  ;;  %v1149_v24 = vpop.f32.mrb[20].mxu1 }
 0x638   : > { %v1109_v25 = vadd.f32 %v1108_v23, %v2360_v53  ;;  %v1110_v26 = vpop.f32.mrb[21].mxu0  ;;  %v1785_v27 = vpop.f32.mrb[21].mxu1  ;;  %v1150_v4 = vadd.f32 %v1149_v24, %v2366_v10  ;;  %v2010_v23 = vld [vmem:[%s2743_s2 + $0xa8] ss:$12 sps:$4 sm:$0xff]   ;;  %v1415_v24 = vsel %vm1414_vm8, 1, %v2052_v19 }
 0x639   : > { %v1111_v29 = vadd.f32 %v1110_v26, %v2362_v54  ;;  %v1112_v30 = vpop.f32.mrb[22].mxu0  ;;  %v1152_v31 = vpop.f32.mrb[22].mxu1  ;;  %1417 = vperm.xlu1 %1875, %v1415_v24  }
 0x63a   : > { %v1155_v33 = vadd.f32 %v1109_v25, %v1070_v22  ;;  %v1113_v35 = vpop.f32.mrb[23].mxu0  ;;  %v1786_v36 = vpop.f32.mrb[23].mxu1  ;;  %v2009_v22 = vld [vmem:[%s2743_s2 + $0xac] ss:$12 sps:$4 sm:$0xff]  }
 0x63b   : > { %v1162_v39 = vadd.f32 %v1111_v29, %v1071_v28  ;;  %v1585_v25 = vld [vmem:[%s2357_s5 + $0x48] sm:$0xff] }
 0x63c   : > { %v1583_v38 = vmul.f32 -1.442695, %v1155_v33  ;;  %v1188_v26 = vunpack.c.l.bf16 %v1585_v25  ;;  %v1189_v31 = vunpack.c.h.bf16 %v1585_v25 }
 0x63d   : > { %v1584_v40 = vmul.f32 -1.442695, %v1162_v39 }
 0x63e   : > { %1958 = vpow2.f32 %v1583_v38 }
 0x63f   : > { %1960 = vpow2.f32 %v1584_v40 }
 0x648   : > { %v1959_v41 = vpop.eup %1958 }
 0x649   : > { %v1159_v42 = vadd.f32 1.0, %v1959_v41  ;;  %v1961_v43 = vpop.eup %1960 }
 0x64a   : > { %v1166_v2 = vadd.f32 1.0, %v1961_v43 }
 0x64b   : > { %1962 = vrcp.f32 %v1159_v42 }
 0x64c   : > { %1964 = vrcp.f32 %v1166_v2  ;;  %v1586_v2 = vld [vmem:[%s2357_s5 + $0x50] ss:$12 sps:$4 sm:$0xff]  }
 0x64d   : > { %v1308_v24 = vunpack.c.h.bf16 %v1586_v2 }
 0x655   : > { %v1963_v5 = vpop.eup %1962 }
 0x656   : > { %v1169_v6 = vmul.f32 %v1963_v5, %v1150_v4  ;;  %v1965_v16 = vpop.eup %1964  ;;  %v1190_v4 = vunpack.c.l.bf16 %v1586_v2 }
 0x657   : > { %v1172_v8 = vsub.f32 1.0, %v1965_v16  ;;  %v1174_v13 = vmul.f32 %v1965_v16, %v2567_v0 }
 0x658   : > { %v1170_v7 = vadd.f32 %v1169_v6, %v1072_v3 }
 0x65a   : > { %1966 = vtanh.f32 %v1170_v7 }
 0x664   : > { %v1967_v9 = vpop.eup %1966 }
 0x665   : > { %v1173_v11 = vmul.f32 %v1967_v9, %v1172_v8 }
 0x667   : > { %v2616_v14 = vadd.f32 %v1174_v13, %v1173_v11 }
 0x669   : > { %v1191_v32 = vpack.c.bf16 %v2616_v14, %v2616_v14 }
 0x66b   : > { %1225 = vmatmul.mubr.bf16.vlgmr.msra.gmra.mrb[24].mxu0 %v1191_v32  ;;  %1804 = vmatmul.mubr.bf16.vlgmr.msra.gmra.mrb[24].mxu1 %v1191_v32 }
 0x66c   : > { %1311 = vmatpush1.bf16.msra.mxu0 %v1989_v37  ;;  %1808 = vmatpush3.bf16.msra.mxu1 %v1990_v44 }
 0x66d   : > { %1312 = vmatprep.subr.bf16.mxu0 %v1991_v46  ;;  %1809 = vmatprep.subr.bf16.mxu1 %v2051_v18  ;;  %v1589_v46 = vld [vmem:[%s2357_s5 + $0x54] sm:$0xff] }
 0x66e   : > { %1342 = vmatprep.mubr.bf16.mxu0 %v2052_v19  ;;  %1823 = vmatprep.mubr.msk.bf16.mxu1 %vm2053_vm0, %v2051_v18 }
 0x670   : > { %1313 = vmatpush1.bf16.msra.mxu0 %v1992_v47  ;;  %1810 = vmatpush3.bf16.msra.mxu1 %v1993_v49  ;;  %v1306_v47 = vunpack.c.l.bf16 %v1589_v46 }
 0x671   : > { %1314 = vmatprep.subr.bf16.mxu0 %v1994_v48  ;;  %1811 = vmatprep.subr.bf16.mxu1 %v2051_v18 }
 0x674   : > { %1315 = vmatpush1.bf16.msra.mxu0 %v1995_v51  ;;  %1812 = vmatpush3.bf16.msra.mxu1 %v1996_v52 }
 0x675   : > { %1316 = vmatprep.subr.bf16.mxu0 %v1997_v56  ;;  %1813 = vmatprep.subr.bf16.mxu1 %v2051_v18 }
 0x678   : > { %1317 = vmatpush1.bf16.msra.mxu0 %v1998_v12  ;;  %1814 = vmatpush3.bf16.msra.mxu1 %v1999_v58  ;;  %v1307_v12 = vunpack.c.h.bf16 %v1589_v46 }
 0x679   : > { %1318 = vmatprep.subr.bf16.mxu0 %v2000_v59  ;;  %1815 = vmatprep.subr.bf16.mxu1 %v2051_v18 }
 0x67c   : > { %1319 = vmatpush1.bf16.msra.mxu0 %v2001_v60  ;;  %1816 = vmatpush3.bf16.msra.mxu1 %v2002_v62 }
 0x67d   : > { %1320 = vmatprep.subr.bf16.mxu0 %v2003_v15  ;;  %1817 = vmatprep.subr.bf16.mxu1 %v2051_v18 }
 0x680   : > { %1321 = vmatpush1.bf16.msra.mxu0 %v2004_v63  ;;  %1818 = vmatpush3.bf16.msra.mxu1 %v2005_v1 }
 0x681   : > { %1322 = vmatprep.subr.bf16.mxu0 %v2006_v17  ;;  %1819 = vmatprep.subr.bf16.mxu1 %v2051_v18 }
 0x684   : > { %1323 = vmatpush1.bf16.msra.mxu0 %v2007_v20  ;;  %1820 = vmatpush3.bf16.msra.mxu1 %v2008_v21 }
 0x685   : > { %1324 = vmatprep.subr.bf16.mxu0 %v2009_v22  ;;  %1821 = vmatprep.subr.bf16.mxu1 %v2051_v18 }
 0x688   : > { %1325 = vmatpush1.bf16.msra.mxu0 %v2010_v23  ;;  %1822 = vmatpush3.bf16.msra.mxu1 %v2313_v45 }
 0x73e   : > { %v1226_v27 = vpop.f32.mrb[24].mxu0  ;;  %v1267_v28 = vpop.f32.mrb[24].mxu1 }
 0x73f   : > { %v1227_v29 = vadd.f32 %v1226_v27, %v2360_v53  ;;  %v1228_v30 = vpop.f32.mrb[25].mxu0  ;;  %v1805_v18 = vpop.f32.mrb[25].mxu1  ;;  %v1268_v5 = vadd.f32 %v1267_v28, %v2366_v10 }
 0x740   : > { %v1229_v33 = vadd.f32 %v1228_v30, %v2362_v54  ;;  %v1230_v35 = vpop.f32.mrb[26].mxu0  ;;  %v1270_v36 = vpop.f32.mrb[26].mxu1 }
 0x741   : > { %v1273_v45 = vadd.f32 %v1227_v29, %v1188_v26  ;;  %v1231_v38 = vpop.f32.mrb[27].mxu0  ;;  %v1806_v34 = vpop.f32.mrb[27].mxu1 }
 0x742   : > { %v1280_v19 = vadd.f32 %v1229_v33, %v1189_v31  ;;  %v828_v29 = vpop.permute.xlu1 %827 }
 0x743   : > { %v1587_v39 = vmul.f32 -1.442695, %v1273_v45  ;;  %vm829_vm11 = vcmp.eq.s32.totalorder %v828_v29, 1 }
 0x744   : > { %v1588_v40 = vmul.f32 -1.442695, %v1280_v19 }
 0x745   : > { %1968 = vpow2.f32 %v1587_v39 }
 0x746   : > { %1970 = vpow2.f32 %v1588_v40  ;;  %v946_v18 = vpop.permute.xlu1 %945 }
 0x747   : > { %vm947_vm12 = vcmp.eq.s32.totalorder %v946_v18, 1 }
 0x74a   : > { %v1182_v35 = vpop.permute.xlu1 %1181 }
 0x74b   : > { %vm1183_vm14 = vcmp.eq.s32.totalorder %v1182_v35, 1 }
 0x74e   : > { %v1418_v40 = vpop.permute.xlu1 %1417 }
 0x74f   : > { %v1969_v41 = vpop.eup %1968  ;;  %vm1419_vm0 = vcmp.eq.s32.totalorder %v1418_v40, 1 }
 0x750   : > { %v1277_v42 = vadd.f32 1.0, %v1969_v41  ;;  %v1971_v43 = vpop.eup %1970 }
 0x751   : > { %v1284_v3 = vadd.f32 1.0, %v1971_v43 }
 0x752   : > { %1972 = vrcp.f32 %v1277_v42 }
 0x753   : > { %1974 = vrcp.f32 %v1284_v3 }
 0x75c   : > { %v1973_v6 = vpop.eup %1972 }
 0x75d   : > { %v1287_v7 = vmul.f32 %v1973_v6, %v1268_v5  ;;  %v1975_v8 = vpop.eup %1974 }
 0x75e   : > { %v1290_v9 = vsub.f32 1.0, %v1975_v8  ;;  %v1292_v32 = vmul.f32 %v1975_v8, %v2616_v14 }
 0x75f   : > { %v1288_v16 = vadd.f32 %v1287_v7, %v1190_v4 }
 0x761   : > { %1976 = vtanh.f32 %v1288_v16 }
 0x76b   : > { %v1977_v11 = vpop.eup %1976 }
 0x76c   : > { %v1291_v13 = vmul.f32 %v1977_v11, %v1290_v9 }
 0x76e   : > { %v2705_v37 = vadd.f32 %v1292_v32, %v1291_v13 }
 0x770   : > { %v1309_v44 = vpack.c.bf16 %v2705_v37, %v2705_v37 }
 0x772   : > { %1343 = vmatmul.mubr.bf16.vlgmr.msra.gmra.mrb[28].mxu0 %v1309_v44  ;;  %1824 = vmatmul.mubr.bf16.vlgmr.msra.gmra.mrb[28].mxu1 %v1309_v44 }
 0x845   : > { %v1344_v49 = vpop.f32.mrb[28].mxu0  ;;  %v1385_v48 = vpop.f32.mrb[28].mxu1 }
 0x846   : > { %v1345_v51 = vadd.f32 %v1344_v49, %v2360_v53  ;;  %v1346_v52 = vpop.f32.mrb[29].mxu0  ;;  %v1825_v56 = vpop.f32.mrb[29].mxu1  ;;  %v1386_v25 = vadd.f32 %v1385_v48, %v2366_v10 }
 0x847   : > { %v1347_v58 = vadd.f32 %v1346_v52, %v2362_v54  ;;  %v1348_v59 = vpop.f32.mrb[30].mxu0  ;;  %v1388_v60 = vpop.f32.mrb[30].mxu1 }
 0x848   : > { %v1391_v62 = vadd.f32 %v1345_v51, %v1306_v47  ;;  %v1349_v15 = vpop.f32.mrb[31].mxu0  ;;  %v1826_v63 = vpop.f32.mrb[31].mxu1 }
 0x849   : > { %v1398_v17 = vadd.f32 %v1347_v58, %v1307_v12  ;;  %v592_v54 = vpop.permute.xlu0 %591 }
 0x84a   : > { %v1591_v1 = vmul.f32 -1.442695, %v1391_v62  ;;  %vm593_vm9 = vcmp.eq.s32.totalorder %v592_v54, 1 }
 0x84b   : > { %v1592_v20 = vmul.f32 -1.442695, %v1398_v17  ;;  %v594_v36 = vsel %vm593_vm9, %v2373_v50, 0.0 }
 0x84c   : > { %1978 = vpow2.f32 %v1591_v1 }
 0x84d   : > { %1980 = vpow2.f32 %v1592_v20  ;;  %v710_v30 = vpop.permute.xlu0 %709 }
 0x84e   : > { %vm711_vm10 = vcmp.eq.s32.totalorder %v710_v30, 1 }
 0x84f   : > { %v712_v45 = vsel %vm711_vm10, %v2420_v55, %v594_v36 }
 0x850   : > { %v830_v39 = vsel %vm829_vm11, %v2470_v57, %v712_v45 }
 0x851   : > { %v1064_v31 = vpop.permute.xlu0 %1063  ;;  %v948_v19 = vsel %vm947_vm12, %v2517_v61, %v830_v39 }
 0x852   : > { %vm1065_vm13 = vcmp.eq.s32.totalorder %v1064_v31, 1 }
 0x853   : > { %v1066_v50 = vsel %vm1065_vm13, %v2567_v0, %v948_v19 }
 0x854   : > { %v1184_v43 = vsel %vm1183_vm14, %v2616_v14, %v1066_v50 }
 0x855   : > { %v1300_v10 = vpop.permute.xlu0 %1299 }
 0x856   : > { %v1979_v21 = vpop.eup %1978  ;;  %vm1301_vm15 = vcmp.eq.s32.totalorder %v1300_v10, 1 }
 0x857   : > { %v1395_v22 = vadd.f32 1.0, %v1979_v21  ;;  %v1981_v23 = vpop.eup %1980  ;;  %v1302_v57 = vsel %vm1301_vm15, %v2705_v37, %v1184_v43 }
 0x858   : > { %v1402_v53 = vadd.f32 1.0, %v1981_v23 }
 0x859   : > { %1982 = vrcp.f32 %v1395_v22 }
 0x85a   : > { %1984 = vrcp.f32 %v1402_v53 }
 0x863   : > { %v1983_v26 = vpop.eup %1982 }
 0x864   : > { %v1405_v27 = vmul.f32 %v1983_v26, %v1386_v25  ;;  %v1985_v33 = vpop.eup %1984 }
 0x865   : > { %v1408_v38 = vsub.f32 1.0, %v1985_v33  ;;  %v1410_v42 = vmul.f32 %v1985_v33, %v2705_v37 }
 0x866   : > { %v1406_v28 = vadd.f32 %v1405_v27, %v1308_v24 }
 0x868   : > { %1986 = vtanh.f32 %v1406_v28 }
 0x872   : > { %v1987_v34 = vpop.eup %1986 }
 0x873   : > { %v1409_v41 = vmul.f32 %v1987_v34, %v1408_v38 }
 0x875   : > { %v1411_v55 = vadd.f32 %v1410_v42, %v1409_v41 }
 0x877   : > { %v1420_v2 = vsel %vm1419_vm0, %v1411_v55, %v1302_v57 }
 0x878   : > { %1427 = vst [vmem:[%s289_s24] sm:$0xff] %v1420_v2 }
 0x879 PF: > { %s14_s19 = sadd.s32 1, %s2049_s19   ;;  %s2746_s15 = smov %s2037_s16 }
 0x87a   : > { %p11_p10 = scmp.ge.s32.totalorder %s14_s19, 4   ;;  %s2747_s16 = smov %s2115_s23 }
 0x87b   : > { %s2748_s17 = smov %s2045_s18  ;;  %s2749_s18 = smov %s2751_s20 }
 0x87c   :  { %13 = sbr.rel (!%p11_p10) target bundleno = 3 (0x3), region = 121 }

// kernel: hapcl_forward.16
= control target key start
LH: loop header
LB: loop body
LE: loop exit
PB: predicated region body
PF: predicated region fallthrough
CT: control target
= control target key end

     0   :  { %s2123_s15 = smov 0   ;;  %s2125_s16 = smov 0   ;;  %s2826_s0 = inlined_call_operand.vmem [shape: s32[16,1], index: 0, kind: input, shape index: {}]   ;;  %s2827_s1 = inlined_call_operand.vmem [shape: bf16[16,16,384], index: 1, kind: input, shape index: {}]   ;;  %s2828_s2 = inlined_call_operand.vmem [shape: bf16[128,384], index: 2, kind: input, shape index: {}]   ;;  %s2829_s3 = inlined_call_operand.vmem [shape: f32[1,384], index: 3, kind: input, shape index: {}]   ;;  %s2830_s4 = inlined_call_operand.vmem [shape: f32[16,128], index: 4, kind: output, shape index: {}]  }
   0x1   :  { %s2127_s17 = smov 0   ;;  %s2129_s18 = smov 0  }
   0x2   :  { %s2131_s19 = smov 0   ;;  %s2133_s20 = smov 0  }
   0x3   :  { %s2135_s21 = smov 0  }
   0x4 LB: > { %s23_s22 = sadd.s32 1, %s2084_s19  ;;  %s26_s23 = sadd.s32 1, %s2088_s20  ;;  %s2092_s21 = sphi %s2135_s21, %s14_s21   ;;  %s2088_s20 = sphi %s2133_s20, %s2836_s20   ;;  %s2084_s19 = sphi %s2131_s19, %s2835_s19   ;;  %s2080_s18 = sphi %s2129_s18, %s2834_s18   ;;  %s2076_s17 = sphi %s2127_s17, %s2833_s17   ;;  %s2072_s16 = sphi %s2125_s16, %s2832_s16   ;;  %s2068_s15 = sphi %s2123_s15, %s2831_s15  }
   0x5   : > { %p24_p0 = scmp.ge.s32.totalorder %s23_s22, 2  ;;  %p68_p1 = scmp.ne.s32.totalorder %s2072_s16, %s2068_s15 }
   0x6   : > { %p69_p2 = scmp.eq.s32.totalorder %s2092_s21, 0  ;;  %s61_s27 = sadd.s32 1, %s2072_s16 }
   0x7   : > { %s2838_s22 = smov (%p24_p0, %s23_s22), 0  ;;  %s2840_s23 = smov (!%p24_p0, %s26_s23), %s2088_s20 }
   0x8   : > { %p70_p3 = por %p69_p2, %p68_p1  ;;  %p28_p4 = scmp.ge.s32.totalorder %s2840_s23, 2 }
   0x9   : > { %s56_s24 = ssub.s32 %s2084_s19, %s2838_s22  ;;  %p1521_p6 = scmp.ge.s32.totalorder %s2092_s21, 4 }
   0xa   : > { %s2842_s23 = smov (%p28_p4, %s2840_s23), 0 }
   0xb   : > { %s57_s25 = ssub.s32 %s2088_s20, %s2842_s23  ;;  %168 = sbr.rel (%p1521_p6) target bundleno = 36 (0x24), region = 24 }
   0xc   : > { %s58_s26 = sor.u32 %s57_s25, %s56_s24 }
   0xd   : > { %p59_p5 = scmp.eq.s32.totalorder %s58_s26, 0 }
   0xf   : > { %s2174_s28 = scalar_select %p59_p5, %s2072_s16, %s61_s27  }
  0x12   : > { %178 = sbr.rel (!%p70_p3) target bundleno = 36 (0x24), region = 32  ;;  %s180_s29 = sand.u32 (%p70_p3), 1, %s2072_s16  }
  0x13   : > { %s1837_s30 = smul.u32 (%p70_p3), 3, %s2088_s20 }
  0x14   : > { %s1836_s5 = smul.u32 (%p70_p3), 96, %s180_s29 }
  0x15   : > { %s1838_s6 = smul.u32 (%p70_p3), 48, %s2084_s19 }
  0x16   : > { %s182_s12 = scalar_lea.vmem (%p70_p3), [#allocation4], %s1836_s5 }
  0x17   : > { %s186_s7 = sadd.s32 (%p70_p3), %s1838_s6, %s1837_s30 }
  0x18   : > { %s1524_s8 = sshll.u32 (%p70_p3), %s186_s7, 2 }
  0x19   : > { %s2183_s11 = scalar_lea.vmem %s2827_s1, %s1524_s8 }
  0x1a   : > { %v203_v0 = vld [vmem:[%s2183_s11] sm:$0xff]  ;;  %v205_v1 = vld [vmem:[%s2183_s11 + $0x18] sm:$0xff]  ;;  %v207_v2 = vld [vmem:[%s2183_s11 + $0x30] sm:$0xff] }
  0x1b   : > { %204 = vst [vmem:[%s182_s12] sm:$0xff] %v203_v0  ;;  %206 = vst [vmem:[%s182_s12 + $0xc] sm:$0xff] %v205_v1  ;;  %v209_v3 = vld [vmem:[%s2183_s11 + $0x48] sm:$0xff]  ;;  %v211_v4 = vld [vmem:[%s2183_s11 + $0x60] sm:$0xff] }
  0x1c   : > { %208 = vst [vmem:[%s182_s12 + $0x18] sm:$0xff] %v207_v2  ;;  %v213_v5 = vld [vmem:[%s2183_s11 + $0x78] sm:$0xff]  ;;  %210 = vst [vmem:[%s182_s12 + $0x24] sm:$0xff] %v209_v3  ;;  %v215_v6 = vld [vmem:[%s2183_s11 + $0x90] sm:$0xff] }
  0x1d   : > { %212 = vst [vmem:[%s182_s12 + $0x30] sm:$0xff] %v211_v4  ;;  %214 = vst [vmem:[%s182_s12 + $0x3c] sm:$0xff] %v213_v5  ;;  %v217_v7 = vld [vmem:[%s2183_s11 + $0xa8] sm:$0xff]  ;;  %v1527_v9 = vld [vmem:[%s2183_s11 + $0x20] sm:$0xf] }
  0x1e   : > { %v1525_v8 = vld [vmem:[%s2183_s11 + $0x8] sm:$0xf]  ;;  %216 = vst [vmem:[%s182_s12 + $0x48] sm:$0xff] %v215_v6  ;;  %218 = vst [vmem:[%s182_s12 + $0x54] sm:$0xff] %v217_v7  ;;  %v1529_v10 = vld [vmem:[%s2183_s11 + $0x38] sm:$0xf] }
  0x1f   : > { %1526 = vst [vmem:[%s182_s12 + $0x8] sm:$0xf] %v1525_v8  ;;  %v1531_v11 = vld [vmem:[%s2183_s11 + $0x50] sm:$0xf]  ;;  %1528 = vst [vmem:[%s182_s12 + $0x14] sm:$0xf] %v1527_v9 }
  0x20   : > { %1530 = vst [vmem:[%s182_s12 + $0x20] sm:$0xf] %v1529_v10  ;;  %1532 = vst [vmem:[%s182_s12 + $0x2c] sm:$0xf] %v1531_v11  ;;  %v1533_v12 = vld [vmem:[%s2183_s11 + $0x68] sm:$0xf] }
  0x21   : > { %v1535_v13 = vld [vmem:[%s2183_s11 + $0x80] sm:$0xf]  ;;  %v1537_v14 = vld [vmem:[%s2183_s11 + $0x98] sm:$0xf]  ;;  %1534 = vst [vmem:[%s182_s12 + $0x38] sm:$0xf] %v1533_v12 }
  0x22   : > { %1536 = vst [vmem:[%s182_s12 + $0x44] sm:$0xf] %v1535_v13  ;;  %1538 = vst [vmem:[%s182_s12 + $0x50] sm:$0xf] %v1537_v14  ;;  %v1539_v15 = vld [vmem:[%s2183_s11 + $0xb0] sm:$0xf] }
  0x23   : > { %1540 = vst [vmem:[%s182_s12 + $0x5c] sm:$0xf] %v1539_v15 }
  0x24 PF: > { %p1541_p7 = scmp.ge.s32.totalorder %s2092_s21, 1  ;;  %p246_p8 = scmp.lt.s32.totalorder %s2092_s21, 5 }
  0x26   : > { %p247_p9 = pnand %p1541_p7, %p246_p8 }
  0x27   : > { %s253_s13 = sand.u32 (!%p247_p9), 1, %s2068_s15   ;;  %p281_p10 = scmp.lt.s32.totalorder (!%p247_p9), %s2080_s18, 1 }
  0x28   : > { %250 = sbr.rel (%p247_p9) target bundleno = 2200 (0x898), region = 58  ;;  %p1544_p11 = scmp.ne.s32.totalorder (!%p247_p9), %s2076_s17, 0 }
  0x29   : > { %s1839_s14 = smul.u32 (!%p247_p9), 96, %s253_s13 }
  0x2b   : > { %s2216_s6 = scalar_lea.vmem (!%p247_p9), [#allocation4], %s1839_s14 }
  0x2f   : > { %s2844_s18 = smov (!%p281_p10, %s2080_s18), 1  ;;  %294 = sbr.rel (%p1544_p11) target bundleno = 54 (0x36), region = 66 }
  0x30   : > { %s1542_s24 = sshll.u32 %s2844_s18, 3  ;;  %v2094_v16 = vmov (!%p1544_p11), 0.0  }
  0x31   : > { %s2209_s27 = scalar_lea.vmem %s2826_s0, %s1542_s24  ;;  %s2214_s5 = scalar_lea.vmem %s2830_s4, %s1542_s24  ;;  %295 = vst [vmem:[#allocation2] sm:$0xff] (!%p1544_p11), %v2094_v16  ;;  %296 = vst [vmem:[#allocation3] sm:$0xff] (!%p1544_p11), %v2094_v16 }
  0x36 PF: > { %v2222_v17 = vld [vmem:[%s2828_s2 + $0x4] ss:$12 sps:$4 sm:$0xff]   ;;  %v2227_v18 = vld [vmem:[%s2828_s2] ss:$12 sps:$4 sm:$0xff]   ;;  %v2095_v19 = vmov 0.0   ;;  %v2096_v20 = vmov 0   ;;  %v342_v51 = vlaneseq }
  0x37   : > { %1676 = vmatprep.subr.bf16.mxu1 %v2095_v19  ;;  %517 = vmatprep.mubr.bf16.mxu0 %v2096_v20  ;;  %v2235_v21 = vld [vmem:[%s2828_s2 + $0x1c] ss:$12 sps:$4 sm:$0xff]   ;;  %vm2097_vm0 = vmmov 0   ;;  %v2243_v22 = vld [vmem:[%s2828_s2 + $0x18] ss:$12 sps:$4 sm:$0xff]   ;;  %s2290_s12 = sshll.u32 %s2076_s17, 3 }
  0x38   : > { %485 = vmatprep.subr.bf16.mxu0 %v2222_v17  ;;  %1692 = vmatprep.mubr.msk.bf16.mxu1 %vm2097_vm0, %v2095_v19  ;;  %v2250_v23 = vld [vmem:[%s2828_s2 + $0x34] ss:$12 sps:$4 sm:$0xff]   ;;  %v2257_v24 = vld [vmem:[%s2828_s2 + $0x30] ss:$12 sps:$4 sm:$0xff]   ;;  %v2263_v25 = vld [vmem:[%s2828_s2 + $0x4c] ss:$12 sps:$4 sm:$0xff]   ;;  %v587_v35 = vstv %s2290_s12 }
  0x39   : > { %486 = vmatpush1.bf16.msra.mxu0 %v2227_v18  ;;  %1900 = vset.pattern.permute.xlu0 %v2096_v20  ;;  %v2268_v26 = vld [vmem:[%s2828_s2 + $0x8] ss:$12 sps:$4 sm:$0xff]   ;;  %v2280_v28 = vld [vmem:[%s2828_s2 + $0x64] ss:$12 sps:$4 sm:$0xff]   ;;  %v2286_v29 = vld [vmem:[%s2828_s2 + $0x20] ss:$12 sps:$4 sm:$0xff]  }
  0x3a   : > { %487 = vmatprep.subr.bf16.mxu0 %v2235_v21  ;;  %1901 = vset.pattern.permute.xlu1 %v2096_v20  ;;  %v2274_v27 = vld [vmem:[%s2828_s2 + $0x48] ss:$12 sps:$4 sm:$0xff]   ;;  %v2295_v30 = vld [vmem:[%s2828_s2 + $0x60] ss:$12 sps:$4 sm:$0xff]   ;;  %v2308_v32 = vld [vmem:[%s2828_s2 + $0x38] ss:$12 sps:$4 sm:$0xff]  }
  0x3b   : > { %1677 = vmatpush3.bf16.msra.mxu1 %v2268_v26  ;;  %v2301_v31 = vld [vmem:[%s2828_s2 + $0x7c] ss:$12 sps:$4 sm:$0xff]   ;;  %v2315_v33 = vld [vmem:[%s2828_s2 + $0x78] ss:$12 sps:$4 sm:$0xff]   ;;  %v2323_v36 = vld [vmem:[%s2828_s2 + $0x94] ss:$12 sps:$4 sm:$0xff]  }
  0x3c   : > { %1678 = vmatprep.subr.bf16.mxu1 %v2095_v19  ;;  %v330_v34 = vld [vmem:[%s2209_s27] sm:$0xff]  ;;  %v2329_v37 = vld [vmem:[%s2828_s2 + $0x50] ss:$12 sps:$4 sm:$0xff]   ;;  %v2346_v41 = vld [vmem:[%s2828_s2 + $0xac] ss:$12 sps:$4 sm:$0xff]   ;;  %s704_s9 = sadd.s32 1, %s2290_s12 }
  0x3d   : > { %488 = vmatpush1.bf16.msra.mxu0 %v2243_v22  ;;  %v2331_v38 = vadd.s32 4294967295, %v330_v34  ;;  %v2339_v39 = vld [vmem:[%s2828_s2 + $0x90] ss:$12 sps:$4 sm:$0xff]   ;;  %v2352_v42 = vld [vmem:[%s2828_s2 + $0x68] ss:$12 sps:$4 sm:$0xff]   ;;  %v2361_v44 = vld [vmem:[#allocation2] sm:$0xff]  ;;  %v705_v49 = vstv %s704_s9 }
  0x3e   : > { %489 = vmatprep.subr.bf16.mxu0 %v2250_v23  ;;  %v2359_v43 = vld [vmem:[%s2828_s2 + $0xa8] ss:$12 sps:$4 sm:$0xff]   ;;  %v2368_v45 = vld [vmem:[%s2828_s2 + $0x80] ss:$12 sps:$4 sm:$0xff]   ;;  %v340_v46 = vpack.c.bf16 %v2361_v44, %v2361_v44  ;;  %v2378_v47 = vld [vmem:[%s2828_s2 + $0x98] ss:$12 sps:$4 sm:$0xff]  }
  0x3f   : > { %1679 = vmatpush3.bf16.msra.mxu1 %v2286_v29  ;;  %vm588_vm1 = vcmp.eq.s32.totalorder %v2331_v38, %v587_v35  ;;  %v2388_v48 = vld [vmem:[%s2828_s2 + $0xb0] ss:$12 sps:$4 sm:$0xff]   ;;  %vm706_vm2 = vcmp.eq.s32.totalorder %v2331_v38, %v705_v49  ;;  %v343_v52 = vshrl.u32 %v342_v51, 7  ;;  %v329_v54 = vld [vmem:[%s2829_s3] sm:$0x7]  ;;  %s822_s11 = sadd.s32 2, %s2290_s12 }
  0x40   : > { %1680 = vmatprep.subr.bf16.mxu1 %v2095_v19  ;;  %v589_v40 = vsel %vm588_vm1, 1, %v2096_v20  ;;  %v707_v50 = vsel %vm706_vm2, 1, %v2096_v20  ;;  %v335_v56 = vld [vmem:[%s2216_s6] sm:$0xff]  ;;  %v2442_v16 = vld [vmem:[%s2216_s6 + $0x8] ss:$12 sps:$4 sm:$0xff]   ;;  %s940_s13 = sadd.s32 3, %s2290_s12 }
  0x41   : > { %490 = vmatpush1.bf16.msra.mxu0 %v2257_v24  ;;  %591 = vperm.xlu0 %1900, %v589_v40   ;;  %v344_v53 = vsub.s32 0, %v343_v52  ;;  %v348_v55 = vsub.s32 1, %v343_v52  ;;  %v337_v59 = vunpack.c.l.bf16 %v335_v56  ;;  %v338_v63 = vunpack.c.h.bf16 %v335_v56  ;;  %s1058_s14 = sadd.s32 4, %s2290_s12  ;;  %s1176_s24 = sadd.s32 5, %s2290_s12 }
  0x42   : > { %491 = vmatprep.subr.bf16.mxu0 %v2263_v25  ;;  %v352_v13 = vsub.s32 2, %v343_v52  ;;  %v339_v40 = vunpack.c.l.bf16 %v2442_v16  ;;  %s1294_s29 = sadd.s32 6, %s2290_s12  ;;  %s1412_s15 = sadd.s32 7, %s2290_s12 }
  0x43   : > { %1681 = vmatpush3.bf16.msra.mxu1 %v2308_v32  ;;  %v2433_v57 = vrot.slane %v329_v54, %v344_v53  ;;  %v2435_v58 = vrot.slane %v329_v54, %v348_v55  ;;  %p1601_p12 = scmp.ne.s32.totalorder %s2076_s17, 1 }
  0x44   : > { %1682 = vmatprep.subr.bf16.mxu1 %v2095_v19  ;;  %v2439_v14 = vrot.slane %v329_v54, %v352_v13 }
  0x45   : > { %492 = vmatpush1.bf16.msra.mxu0 %v2274_v27  ;;  %709 = vperm.xlu0 %1900, %v707_v50  }
  0x46   : > { %493 = vmatprep.subr.bf16.mxu0 %v2280_v28 }
  0x47   : > { %1683 = vmatpush3.bf16.msra.mxu1 %v2329_v37 }
  0x48   : > { %1684 = vmatprep.subr.bf16.mxu1 %v2095_v19 }
  0x49   : > { %494 = vmatpush1.bf16.msra.mxu0 %v2295_v30 }
  0x4a   : > { %495 = vmatprep.subr.bf16.mxu0 %v2301_v31 }
  0x4b   : > { %1685 = vmatpush3.bf16.msra.mxu1 %v2352_v42 }
  0x4c   : > { %1686 = vmatprep.subr.bf16.mxu1 %v2095_v19 }
  0x4d   : > { %496 = vmatpush1.bf16.msra.mxu0 %v2315_v33 }
  0x4e   : > { %497 = vmatprep.subr.bf16.mxu0 %v2323_v36 }
  0x4f   : > { %1687 = vmatpush3.bf16.msra.mxu1 %v2368_v45 }
  0x50   : > { %1688 = vmatprep.subr.bf16.mxu1 %v2095_v19 }
  0x51   : > { %498 = vmatpush1.bf16.msra.mxu0 %v2339_v39 }
  0x52   : > { %499 = vmatprep.subr.bf16.mxu0 %v2346_v41 }
  0x53   : > { %1689 = vmatpush3.bf16.msra.mxu1 %v2378_v47 }
  0x54   : > { %1690 = vmatprep.subr.bf16.mxu1 %v2095_v19 }
  0x55   : > { %500 = vmatpush1.bf16.msra.mxu0 %v2359_v43 }
  0x56   : > { %602 = vmatprep.subr.bf16.mxu0 %v2222_v17 }
  0x57   : > { %1691 = vmatpush3.bf16.msra.mxu1 %v2388_v48 }
  0x58   : > { %518 = vmatmul.mubr.bf16.vlgmr.msra.gmra.mrb[0].mxu0 %v340_v46  ;;  %1696 = vmatprep.subr.bf16.mxu1 %v2095_v19 }
  0x59   : > { %603 = vmatpush1.bf16.msra.mxu0 %v2227_v18  ;;  %634 = vmatprep.mubr.bf16.mxu0 %v2096_v20 }
  0x5a   : > { %604 = vmatprep.subr.bf16.mxu0 %v2235_v21  ;;  %1693 = vmatmul.mubr.bf16.vlgmr.msra.gmra.mrb[0].mxu1 %v340_v46 }
  0x5b   : > { %1697 = vmatpush3.bf16.msra.mxu1 %v2268_v26  ;;  %1712 = vmatprep.mubr.msk.bf16.mxu1 %vm2097_vm0, %v2095_v19 }
  0x5c   : > { %1698 = vmatprep.subr.bf16.mxu1 %v2095_v19 }
  0x5d   : > { %605 = vmatpush1.bf16.msra.mxu0 %v2243_v22 }
  0x5e   : > { %606 = vmatprep.subr.bf16.mxu0 %v2250_v23 }
  0x5f   : > { %1699 = vmatpush3.bf16.msra.mxu1 %v2286_v29 }
  0x60   : > { %1700 = vmatprep.subr.bf16.mxu1 %v2095_v19 }
  0x61   : > { %607 = vmatpush1.bf16.msra.mxu0 %v2257_v24 }
  0x62   : > { %608 = vmatprep.subr.bf16.mxu0 %v2263_v25 }
  0x63   : > { %1701 = vmatpush3.bf16.msra.mxu1 %v2308_v32 }
  0x64   : > { %1702 = vmatprep.subr.bf16.mxu1 %v2095_v19 }
  0x65   : > { %609 = vmatpush1.bf16.msra.mxu0 %v2274_v27 }
  0x66   : > { %610 = vmatprep.subr.bf16.mxu0 %v2280_v28 }
  0x67   : > { %1703 = vmatpush3.bf16.msra.mxu1 %v2329_v37 }
  0x68   : > { %1704 = vmatprep.subr.bf16.mxu1 %v2095_v19 }
  0x69   : > { %611 = vmatpush1.bf16.msra.mxu0 %v2295_v30 }
  0x6a   : > { %612 = vmatprep.subr.bf16.mxu0 %v2301_v31 }
  0x6b   : > { %1705 = vmatpush3.bf16.msra.mxu1 %v2352_v42 }
  0x6c   : > { %1706 = vmatprep.subr.bf16.mxu1 %v2095_v19 }
  0x6d   : > { %613 = vmatpush1.bf16.msra.mxu0 %v2315_v33 }
  0x6e   : > { %614 = vmatprep.subr.bf16.mxu0 %v2323_v36 }
  0x6f   : > { %1707 = vmatpush3.bf16.msra.mxu1 %v2368_v45 }
  0x70   : > { %1708 = vmatprep.subr.bf16.mxu1 %v2095_v19 }
  0x71   : > { %615 = vmatpush1.bf16.msra.mxu0 %v2339_v39 }
  0x72   : > { %616 = vmatprep.subr.bf16.mxu0 %v2346_v41 }
  0x73   : > { %1709 = vmatpush3.bf16.msra.mxu1 %v2378_v47 }
  0x74   : > { %1710 = vmatprep.subr.bf16.mxu1 %v2095_v19 }
  0x75   : > { %617 = vmatpush1.bf16.msra.mxu0 %v2359_v43 }
  0x76   : > { %720 = vmatprep.subr.bf16.mxu0 %v2222_v17 }
  0x77   : > { %1711 = vmatpush3.bf16.msra.mxu1 %v2388_v48 }
  0x78   : > { %1716 = vmatprep.subr.bf16.mxu1 %v2095_v19 }
 0x12b   : > { %v519_v60 = vpop.f32.mrb[0].mxu0 }
 0x12c   : > { %v520_v61 = vadd.f32 %v519_v60, %v2433_v57  ;;  %v521_v62 = vpop.f32.mrb[1].mxu0 }
 0x12d   : > { %v522_v0 = vadd.f32 %v521_v62, %v2435_v58  ;;  %v523_v1 = vpop.f32.mrb[2].mxu0  ;;  %v560_v6 = vpop.f32.mrb[0].mxu1 }
 0x12e   : > { %v566_v2 = vadd.f32 %v520_v61, %v337_v59  ;;  %v524_v3 = vpop.f32.mrb[3].mxu0  ;;  %v1694_v8 = vpop.f32.mrb[1].mxu1  ;;  %v561_v35 = vadd.f32 %v560_v6, %v2439_v14  ;;  %v1573_v61 = vld [vmem:[%s2216_s6 + $0xc] sm:$0xff] }
 0x12f   : > { %v573_v5 = vadd.f32 %v522_v0, %v338_v63  ;;  %v563_v9 = vpop.f32.mrb[2].mxu1  ;;  %v598_v62 = vunpack.c.l.bf16 %v1573_v61 }
 0x130   : > { %v1571_v4 = vmul.f32 -1.442695, %v566_v2  ;;  %v1695_v10 = vpop.f32.mrb[3].mxu1 }
 0x131   : > { %v1572_v7 = vmul.f32 -1.442695, %v573_v5 }
 0x132   : > { %1934 = vpow2.f32 %v1571_v4  ;;  %v599_v4 = vunpack.c.h.bf16 %v1573_v61 }
 0x133   : > { %1936 = vpow2.f32 %v1572_v7 }
 0x13c   : > { %v1935_v11 = vpop.eup %1934 }
 0x13d   : > { %v570_v12 = vadd.f32 1.0, %v1935_v11  ;;  %v1937_v15 = vpop.eup %1936 }
 0x13e   : > { %v577_v34 = vadd.f32 1.0, %v1937_v15 }
 0x13f   : > { %1938 = vrcp.f32 %v570_v12 }
 0x140   : > { %1940 = vrcp.f32 %v577_v34 }
 0x149   : > { %v1939_v46 = vpop.eup %1938 }
 0x14a   : > { %v580_v49 = vmul.f32 %v1939_v46, %v561_v35  ;;  %v1941_v51 = vpop.eup %1940  ;;  %v600_v46 = vunpack.c.h.bf16 %v2442_v16  ;;  %v941_v16 = vstv %s940_s13 }
 0x14b   : > { %v583_v53 = vsub.f32 1.0, %v1941_v51  ;;  %v585_v54 = vmul.f32 %v1941_v51, %v2361_v44  ;;  %v823_v44 = vstv %s822_s11  ;;  %vm942_vm4 = vcmp.eq.s32.totalorder %v2331_v38, %v941_v16 }
 0x14c   : > { %v581_v50 = vadd.f32 %v580_v49, %v339_v40  ;;  %vm824_vm3 = vcmp.eq.s32.totalorder %v2331_v38, %v823_v44 }
 0x14d   : > { %v825_v60 = vsel %vm824_vm3, 1, %v2096_v20 }
 0x14e   : > { %1942 = vtanh.f32 %v581_v50  ;;  %827 = vperm.xlu1 %1901, %v825_v60  }
 0x158   : > { %v1943_v55 = vpop.eup %1942 }
 0x159   : > { %v584_v52 = vmul.f32 %v1943_v55, %v583_v53 }
 0x15b   : > { %v2447_v56 = vadd.f32 %v585_v54, %v584_v52 }
 0x15d   : > { %v601_v59 = vpack.c.bf16 %v2447_v56, %v2447_v56 }
 0x15f   : > { %635 = vmatmul.mubr.bf16.vlgmr.msra.gmra.mrb[4].mxu0 %v601_v59  ;;  %1713 = vmatmul.mubr.bf16.vlgmr.msra.gmra.mrb[4].mxu1 %v601_v59 }
 0x160   : > { %721 = vmatpush1.bf16.msra.mxu0 %v2227_v18  ;;  %1717 = vmatpush3.bf16.msra.mxu1 %v2268_v26 }
 0x161   : > { %722 = vmatprep.subr.bf16.mxu0 %v2235_v21  ;;  %1718 = vmatprep.subr.bf16.mxu1 %v2095_v19 }
 0x162   : > { %752 = vmatprep.mubr.bf16.mxu0 %v2096_v20  ;;  %1732 = vmatprep.mubr.msk.bf16.mxu1 %vm2097_vm0, %v2095_v19 }
 0x164   : > { %723 = vmatpush1.bf16.msra.mxu0 %v2243_v22  ;;  %1719 = vmatpush3.bf16.msra.mxu1 %v2286_v29 }
 0x165   : > { %724 = vmatprep.subr.bf16.mxu0 %v2250_v23  ;;  %1720 = vmatprep.subr.bf16.mxu1 %v2095_v19 }
 0x168   : > { %725 = vmatpush1.bf16.msra.mxu0 %v2257_v24  ;;  %1721 = vmatpush3.bf16.msra.mxu1 %v2308_v32 }
 0x169   : > { %726 = vmatprep.subr.bf16.mxu0 %v2263_v25  ;;  %1722 = vmatprep.subr.bf16.mxu1 %v2095_v19 }
 0x16c   : > { %727 = vmatpush1.bf16.msra.mxu0 %v2274_v27  ;;  %1723 = vmatpush3.bf16.msra.mxu1 %v2329_v37 }
 0x16d   : > { %728 = vmatprep.subr.bf16.mxu0 %v2280_v28  ;;  %1724 = vmatprep.subr.bf16.mxu1 %v2095_v19 }
 0x170   : > { %729 = vmatpush1.bf16.msra.mxu0 %v2295_v30  ;;  %1725 = vmatpush3.bf16.msra.mxu1 %v2352_v42 }
 0x171   : > { %730 = vmatprep.subr.bf16.mxu0 %v2301_v31  ;;  %1726 = vmatprep.subr.bf16.mxu1 %v2095_v19 }
 0x174   : > { %731 = vmatpush1.bf16.msra.mxu0 %v2315_v33  ;;  %1727 = vmatpush3.bf16.msra.mxu1 %v2368_v45 }
 0x175   : > { %732 = vmatprep.subr.bf16.mxu0 %v2323_v36  ;;  %1728 = vmatprep.subr.bf16.mxu1 %v2095_v19 }
 0x178   : > { %733 = vmatpush1.bf16.msra.mxu0 %v2339_v39  ;;  %1729 = vmatpush3.bf16.msra.mxu1 %v2378_v47 }
 0x179   : > { %734 = vmatprep.subr.bf16.mxu0 %v2346_v41  ;;  %1730 = vmatprep.subr.bf16.mxu1 %v2095_v19 }
 0x17c   : > { %735 = vmatpush1.bf16.msra.mxu0 %v2359_v43  ;;  %1731 = vmatpush3.bf16.msra.mxu1 %v2388_v48 }
 0x17d   : > { %838 = vmatprep.subr.bf16.mxu0 %v2222_v17  ;;  %1736 = vmatprep.subr.bf16.mxu1 %v2095_v19 }
 0x232   : > { %v636_v63 = vpop.f32.mrb[4].mxu0  ;;  %v677_v0 = vpop.f32.mrb[4].mxu1 }
 0x233   : > { %v637_v1 = vadd.f32 %v636_v63, %v2433_v57  ;;  %v638_v2 = vpop.f32.mrb[5].mxu0  ;;  %v1714_v3 = vpop.f32.mrb[5].mxu1  ;;  %v678_v49 = vadd.f32 %v677_v0, %v2439_v14  ;;  %v1577_v63 = vld [vmem:[%s2216_s6 + $0x18] sm:$0xff] }
 0x234   : > { %v639_v5 = vadd.f32 %v638_v2, %v2435_v58  ;;  %v640_v6 = vpop.f32.mrb[6].mxu0  ;;  %v680_v7 = vpop.f32.mrb[6].mxu1  ;;  %v716_v0 = vunpack.c.l.bf16 %v1577_v63 }
 0x235   : > { %v683_v8 = vadd.f32 %v637_v1, %v598_v62  ;;  %v641_v9 = vpop.f32.mrb[7].mxu0  ;;  %v1715_v10 = vpop.f32.mrb[7].mxu1  ;;  %v943_v62 = vsel %vm942_vm4, 1, %v2096_v20  ;;  %v717_v6 = vunpack.c.h.bf16 %v1577_v63 }
 0x236   : > { %v690_v12 = vadd.f32 %v639_v5, %v599_v4  ;;  %945 = vperm.xlu1 %1901, %v943_v62  }
 0x237   : > { %v1575_v11 = vmul.f32 -1.442695, %v683_v8 }
 0x238   : > { %v1576_v13 = vmul.f32 -1.442695, %v690_v12 }
 0x239   : > { %1944 = vpow2.f32 %v1575_v11 }
 0x23a   : > { %1946 = vpow2.f32 %v1576_v13 }
 0x243   : > { %v1945_v15 = vpop.eup %1944 }
 0x244   : > { %v687_v34 = vadd.f32 1.0, %v1945_v15  ;;  %v1947_v35 = vpop.eup %1946 }
 0x245   : > { %v694_v40 = vadd.f32 1.0, %v1947_v35 }
 0x246   : > { %1948 = vrcp.f32 %v687_v34 }
 0x247   : > { %1950 = vrcp.f32 %v694_v40 }
 0x250   : > { %v1949_v50 = vpop.eup %1948 }
 0x251   : > { %v697_v51 = vmul.f32 %v1949_v50, %v678_v49  ;;  %v1951_v55 = vpop.eup %1950  ;;  %v2541_v49 = vld [vmem:[%s2216_s6 + $0x20] ss:$12 sps:$4 sm:$0xff]  }
 0x252   : > { %v700_v52 = vsub.f32 1.0, %v1951_v55  ;;  %v702_v44 = vmul.f32 %v1951_v55, %v2447_v56 }
 0x253   : > { %v698_v53 = vadd.f32 %v697_v51, %v600_v46  ;;  %v718_v51 = vunpack.c.l.bf16 %v2541_v49 }
 0x255   : > { %1952 = vtanh.f32 %v698_v53 }
 0x25f   : > { %v1953_v54 = vpop.eup %1952 }
 0x260   : > { %v701_v59 = vmul.f32 %v1953_v54, %v700_v52 }
 0x262   : > { %v2495_v60 = vadd.f32 %v702_v44, %v701_v59 }
 0x264   : > { %v719_v61 = vpack.c.bf16 %v2495_v60, %v2495_v60 }
 0x266   : > { %753 = vmatmul.mubr.bf16.vlgmr.msra.gmra.mrb[8].mxu0 %v719_v61  ;;  %1733 = vmatmul.mubr.bf16.vlgmr.msra.gmra.mrb[8].mxu1 %v719_v61 }
 0x267   : > { %839 = vmatpush1.bf16.msra.mxu0 %v2227_v18  ;;  %1737 = vmatpush3.bf16.msra.mxu1 %v2268_v26 }
 0x268   : > { %840 = vmatprep.subr.bf16.mxu0 %v2235_v21  ;;  %1738 = vmatprep.subr.bf16.mxu1 %v2095_v19 }
 0x269   : > { %870 = vmatprep.mubr.bf16.mxu0 %v2096_v20  ;;  %1752 = vmatprep.mubr.msk.bf16.mxu1 %vm2097_vm0, %v2095_v19 }
 0x26b   : > { %841 = vmatpush1.bf16.msra.mxu0 %v2243_v22  ;;  %1739 = vmatpush3.bf16.msra.mxu1 %v2286_v29 }
 0x26c   : > { %842 = vmatprep.subr.bf16.mxu0 %v2250_v23  ;;  %1740 = vmatprep.subr.bf16.mxu1 %v2095_v19 }
 0x26f   : > { %843 = vmatpush1.bf16.msra.mxu0 %v2257_v24  ;;  %1741 = vmatpush3.bf16.msra.mxu1 %v2308_v32 }
 0x270   : > { %844 = vmatprep.subr.bf16.mxu0 %v2263_v25  ;;  %1742 = vmatprep.subr.bf16.mxu1 %v2095_v19 }
 0x273   : > { %845 = vmatpush1.bf16.msra.mxu0 %v2274_v27  ;;  %1743 = vmatpush3.bf16.msra.mxu1 %v2329_v37 }
 0x274   : > { %846 = vmatprep.subr.bf16.mxu0 %v2280_v28  ;;  %1744 = vmatprep.subr.bf16.mxu1 %v2095_v19 }
 0x277   : > { %847 = vmatpush1.bf16.msra.mxu0 %v2295_v30  ;;  %1745 = vmatpush3.bf16.msra.mxu1 %v2352_v42 }
 0x278   : > { %848 = vmatprep.subr.bf16.mxu0 %v2301_v31  ;;  %1746 = vmatprep.subr.bf16.mxu1 %v2095_v19 }
 0x27b   : > { %849 = vmatpush1.bf16.msra.mxu0 %v2315_v33  ;;  %1747 = vmatpush3.bf16.msra.mxu1 %v2368_v45 }
 0x27c   : > { %850 = vmatprep.subr.bf16.mxu0 %v2323_v36  ;;  %1748 = vmatprep.subr.bf16.mxu1 %v2095_v19 }
 0x27f   : > { %851 = vmatpush1.bf16.msra.mxu0 %v2339_v39  ;;  %1749 = vmatpush3.bf16.msra.mxu1 %v2378_v47 }
 0x280   : > { %852 = vmatprep.subr.bf16.mxu0 %v2346_v41  ;;  %1750 = vmatprep.subr.bf16.mxu1 %v2095_v19 }
 0x283   : > { %853 = vmatpush1.bf16.msra.mxu0 %v2359_v43  ;;  %1751 = vmatpush3.bf16.msra.mxu1 %v2388_v48 }
 0x284   : > { %956 = vmatprep.subr.bf16.mxu0 %v2222_v17  ;;  %1756 = vmatprep.subr.bf16.mxu1 %v2095_v19 }
 0x339   : > { %v754_v1 = vpop.f32.mrb[8].mxu0  ;;  %v795_v2 = vpop.f32.mrb[8].mxu1 }
 0x33a   : > { %v755_v3 = vadd.f32 %v754_v1, %v2433_v57  ;;  %v756_v4 = vpop.f32.mrb[9].mxu0  ;;  %v1734_v5 = vpop.f32.mrb[9].mxu1  ;;  %v796_v53 = vadd.f32 %v795_v2, %v2439_v14  ;;  %v1059_v1 = vstv %s1058_s14 }
 0x33b   : > { %v757_v7 = vadd.f32 %v756_v4, %v2435_v58  ;;  %v758_v8 = vpop.f32.mrb[10].mxu0  ;;  %v798_v9 = vpop.f32.mrb[10].mxu1  ;;  %vm1060_vm5 = vcmp.eq.s32.totalorder %v2331_v38, %v1059_v1 }
 0x33c   : > { %v801_v10 = vadd.f32 %v755_v3, %v716_v0  ;;  %v759_v11 = vpop.f32.mrb[11].mxu0  ;;  %v1735_v12 = vpop.f32.mrb[11].mxu1  ;;  %v1061_v2 = vsel %vm1060_vm5, 1, %v2096_v20  ;;  %v1581_v3 = vld [vmem:[%s2216_s6 + $0x24] sm:$0xff] }
 0x33d   : > { %v808_v15 = vadd.f32 %v757_v7, %v717_v6  ;;  %1063 = vperm.xlu0 %1900, %v1061_v2   ;;  %v834_v4 = vunpack.c.l.bf16 %v1581_v3 }
 0x33e   : > { %v1579_v13 = vmul.f32 -1.442695, %v801_v10  ;;  %v835_v10 = vunpack.c.h.bf16 %v1581_v3 }
 0x33f   : > { %v1580_v34 = vmul.f32 -1.442695, %v808_v15 }
 0x340   : > { %1954 = vpow2.f32 %v1579_v13 }
 0x341   : > { %1956 = vpow2.f32 %v1580_v34 }
 0x34a   : > { %v1955_v35 = vpop.eup %1954 }
 0x34b   : > { %v805_v40 = vadd.f32 1.0, %v1955_v35  ;;  %v1957_v46 = vpop.eup %1956 }
 0x34c   : > { %v812_v50 = vadd.f32 1.0, %v1957_v46 }
 0x34d   : > { %1958 = vrcp.f32 %v805_v40 }
 0x34e   : > { %1960 = vrcp.f32 %v812_v50 }
 0x357   : > { %v1959_v55 = vpop.eup %1958 }
 0x358   : > { %v815_v52 = vmul.f32 %v1959_v55, %v796_v53  ;;  %v1961_v59 = vpop.eup %1960 }
 0x359   : > { %v818_v44 = vsub.f32 1.0, %v1961_v59  ;;  %v820_v62 = vmul.f32 %v1961_v59, %v2495_v60 }
 0x35a   : > { %v816_v54 = vadd.f32 %v815_v52, %v718_v51 }
 0x35c   : > { %1962 = vtanh.f32 %v816_v54  ;;  %v836_v54 = vunpack.c.h.bf16 %v2541_v49  ;;  %v1177_v49 = vstv %s1176_s24 }
 0x35d   : > { %vm1178_vm6 = vcmp.eq.s32.totalorder %v2331_v38, %v1177_v49 }
 0x366   : > { %v1963_v61 = vpop.eup %1962 }
 0x367   : > { %v819_v16 = vmul.f32 %v1963_v61, %v818_v44 }
 0x369   : > { %v2546_v63 = vadd.f32 %v820_v62, %v819_v16 }
 0x36b   : > { %v837_v0 = vpack.c.bf16 %v2546_v63, %v2546_v63 }
 0x36d   : > { %871 = vmatmul.mubr.bf16.vlgmr.msra.gmra.mrb[12].mxu0 %v837_v0  ;;  %1753 = vmatmul.mubr.bf16.vlgmr.msra.gmra.mrb[12].mxu1 %v837_v0 }
 0x36e   : > { %957 = vmatpush1.bf16.msra.mxu0 %v2227_v18  ;;  %1757 = vmatpush3.bf16.msra.mxu1 %v2268_v26 }
 0x36f   : > { %958 = vmatprep.subr.bf16.mxu0 %v2235_v21  ;;  %1758 = vmatprep.subr.bf16.mxu1 %v2095_v19 }
 0x370   : > { %988 = vmatprep.mubr.bf16.mxu0 %v2096_v20  ;;  %1772 = vmatprep.mubr.msk.bf16.mxu1 %vm2097_vm0, %v2095_v19 }
 0x372   : > { %959 = vmatpush1.bf16.msra.mxu0 %v2243_v22  ;;  %1759 = vmatpush3.bf16.msra.mxu1 %v2286_v29 }
 0x373   : > { %960 = vmatprep.subr.bf16.mxu0 %v2250_v23  ;;  %1760 = vmatprep.subr.bf16.mxu1 %v2095_v19 }
 0x376   : > { %961 = vmatpush1.bf16.msra.mxu0 %v2257_v24  ;;  %1761 = vmatpush3.bf16.msra.mxu1 %v2308_v32 }
 0x377   : > { %962 = vmatprep.subr.bf16.mxu0 %v2263_v25  ;;  %1762 = vmatprep.subr.bf16.mxu1 %v2095_v19 }
 0x37a   : > { %963 = vmatpush1.bf16.msra.mxu0 %v2274_v27  ;;  %1763 = vmatpush3.bf16.msra.mxu1 %v2329_v37 }
 0x37b   : > { %964 = vmatprep.subr.bf16.mxu0 %v2280_v28  ;;  %1764 = vmatprep.subr.bf16.mxu1 %v2095_v19 }
 0x37e   : > { %965 = vmatpush1.bf16.msra.mxu0 %v2295_v30  ;;  %1765 = vmatpush3.bf16.msra.mxu1 %v2352_v42 }
 0x37f   : > { %966 = vmatprep.subr.bf16.mxu0 %v2301_v31  ;;  %1766 = vmatprep.subr.bf16.mxu1 %v2095_v19 }
 0x382   : > { %967 = vmatpush1.bf16.msra.mxu0 %v2315_v33  ;;  %1767 = vmatpush3.bf16.msra.mxu1 %v2368_v45 }
 0x383   : > { %968 = vmatprep.subr.bf16.mxu0 %v2323_v36  ;;  %1768 = vmatprep.subr.bf16.mxu1 %v2095_v19 }
 0x386   : > { %969 = vmatpush1.bf16.msra.mxu0 %v2339_v39  ;;  %1769 = vmatpush3.bf16.msra.mxu1 %v2378_v47 }
 0x387   : > { %970 = vmatprep.subr.bf16.mxu0 %v2346_v41  ;;  %1770 = vmatprep.subr.bf16.mxu1 %v2095_v19 }
 0x38a   : > { %971 = vmatpush1.bf16.msra.mxu0 %v2359_v43  ;;  %1771 = vmatpush3.bf16.msra.mxu1 %v2388_v48 }
 0x38b   : > { %1074 = vmatprep.subr.bf16.mxu0 %v2222_v17  ;;  %1776 = vmatprep.subr.bf16.mxu1 %v2095_v19 }
 0x440   : > { %v872_v5 = vpop.f32.mrb[12].mxu0  ;;  %v913_v6 = vpop.f32.mrb[12].mxu1 }
 0x441   : > { %v873_v7 = vadd.f32 %v872_v5, %v2433_v57  ;;  %v874_v8 = vpop.f32.mrb[13].mxu0  ;;  %v1754_v9 = vpop.f32.mrb[13].mxu1  ;;  %v914_v59 = vadd.f32 %v913_v6, %v2439_v14  ;;  %v1179_v6 = vsel %vm1178_vm6, 1, %v2096_v20 }
 0x442   : > { %v875_v11 = vadd.f32 %v874_v8, %v2435_v58  ;;  %v876_v12 = vpop.f32.mrb[14].mxu0  ;;  %v916_v13 = vpop.f32.mrb[14].mxu1  ;;  %1181 = vperm.xlu1 %1901, %v1179_v6  }
 0x443   : > { %v919_v15 = vadd.f32 %v873_v7, %v834_v4  ;;  %v877_v34 = vpop.f32.mrb[15].mxu0  ;;  %v1755_v35 = vpop.f32.mrb[15].mxu1  ;;  %v1585_v7 = vld [vmem:[%s2216_s6 + $0x30] sm:$0xff] }
 0x444   : > { %v926_v46 = vadd.f32 %v875_v11, %v835_v10  ;;  %v952_v8 = vunpack.c.l.bf16 %v1585_v7 }
 0x445   : > { %v1583_v40 = vmul.f32 -1.442695, %v919_v15  ;;  %v953_v15 = vunpack.c.h.bf16 %v1585_v7 }
 0x446   : > { %v1584_v50 = vmul.f32 -1.442695, %v926_v46 }
 0x447   : > { %1964 = vpow2.f32 %v1583_v40 }
 0x448   : > { %1966 = vpow2.f32 %v1584_v50 }
 0x451   : > { %v1965_v51 = vpop.eup %1964 }
 0x452   : > { %v923_v53 = vadd.f32 1.0, %v1965_v51  ;;  %v1967_v55 = vpop.eup %1966 }
 0x453   : > { %v930_v52 = vadd.f32 1.0, %v1967_v55 }
 0x454   : > { %1968 = vrcp.f32 %v923_v53 }
 0x455   : > { %1970 = vrcp.f32 %v930_v52 }
 0x45e   : > { %v1969_v44 = vpop.eup %1968 }
 0x45f   : > { %v933_v61 = vmul.f32 %v1969_v44, %v914_v59  ;;  %v1971_v62 = vpop.eup %1970  ;;  %v2640_v44 = vld [vmem:[%s2216_s6 + $0x38] ss:$12 sps:$4 sm:$0xff]  }
 0x460   : > { %v936_v0 = vsub.f32 1.0, %v1971_v62  ;;  %v938_v3 = vmul.f32 %v1971_v62, %v2546_v63 }
 0x461   : > { %v934_v16 = vadd.f32 %v933_v61, %v836_v54 }
 0x463   : > { %1972 = vtanh.f32 %v934_v16  ;;  %v954_v16 = vunpack.c.l.bf16 %v2640_v44 }
 0x46d   : > { %v1973_v1 = vpop.eup %1972 }
 0x46e   : > { %v937_v2 = vmul.f32 %v1973_v1, %v936_v0 }
 0x470   : > { %v2594_v4 = vadd.f32 %v938_v3, %v937_v2 }
 0x472   : > { %v955_v5 = vpack.c.bf16 %v2594_v4, %v2594_v4 }
 0x474   : > { %989 = vmatmul.mubr.bf16.vlgmr.msra.gmra.mrb[16].mxu0 %v955_v5  ;;  %1773 = vmatmul.mubr.bf16.vlgmr.msra.gmra.mrb[16].mxu1 %v955_v5 }
 0x475   : > { %1075 = vmatpush1.bf16.msra.mxu0 %v2227_v18  ;;  %1777 = vmatpush3.bf16.msra.mxu1 %v2268_v26 }
 0x476   : > { %1076 = vmatprep.subr.bf16.mxu0 %v2235_v21  ;;  %1778 = vmatprep.subr.bf16.mxu1 %v2095_v19 }
 0x477   : > { %1106 = vmatprep.mubr.bf16.mxu0 %v2096_v20  ;;  %1792 = vmatprep.mubr.msk.bf16.mxu1 %vm2097_vm0, %v2095_v19 }
 0x479   : > { %1077 = vmatpush1.bf16.msra.mxu0 %v2243_v22  ;;  %1779 = vmatpush3.bf16.msra.mxu1 %v2286_v29 }
 0x47a   : > { %1078 = vmatprep.subr.bf16.mxu0 %v2250_v23  ;;  %1780 = vmatprep.subr.bf16.mxu1 %v2095_v19 }
 0x47d   : > { %1079 = vmatpush1.bf16.msra.mxu0 %v2257_v24  ;;  %1781 = vmatpush3.bf16.msra.mxu1 %v2308_v32 }
 0x47e   : > { %1080 = vmatprep.subr.bf16.mxu0 %v2263_v25  ;;  %1782 = vmatprep.subr.bf16.mxu1 %v2095_v19 }
 0x481   : > { %1081 = vmatpush1.bf16.msra.mxu0 %v2274_v27  ;;  %1783 = vmatpush3.bf16.msra.mxu1 %v2329_v37 }
 0x482   : > { %1082 = vmatprep.subr.bf16.mxu0 %v2280_v28  ;;  %1784 = vmatprep.subr.bf16.mxu1 %v2095_v19 }
 0x485   : > { %1083 = vmatpush1.bf16.msra.mxu0 %v2295_v30  ;;  %1785 = vmatpush3.bf16.msra.mxu1 %v2352_v42 }
 0x486   : > { %1084 = vmatprep.subr.bf16.mxu0 %v2301_v31  ;;  %1786 = vmatprep.subr.bf16.mxu1 %v2095_v19 }
 0x489   : > { %1085 = vmatpush1.bf16.msra.mxu0 %v2315_v33  ;;  %1787 = vmatpush3.bf16.msra.mxu1 %v2368_v45 }
 0x48a   : > { %1086 = vmatprep.subr.bf16.mxu0 %v2323_v36  ;;  %1788 = vmatprep.subr.bf16.mxu1 %v2095_v19 }
 0x48d   : > { %1087 = vmatpush1.bf16.msra.mxu0 %v2339_v39  ;;  %1789 = vmatpush3.bf16.msra.mxu1 %v2378_v47 }
 0x48e   : > { %1088 = vmatprep.subr.bf16.mxu0 %v2346_v41  ;;  %1790 = vmatprep.subr.bf16.mxu1 %v2095_v19 }
 0x491   : > { %1089 = vmatpush1.bf16.msra.mxu0 %v2359_v43  ;;  %1791 = vmatpush3.bf16.msra.mxu1 %v2388_v48 }
 0x492   : > { %1192 = vmatprep.subr.bf16.mxu0 %v2222_v17  ;;  %1796 = vmatprep.subr.bf16.mxu1 %v2095_v19 }
 0x547   : > { %v990_v9 = vpop.f32.mrb[16].mxu0  ;;  %v1031_v10 = vpop.f32.mrb[16].mxu1 }
 0x548   : > { %v991_v11 = vadd.f32 %v990_v9, %v2433_v57  ;;  %v992_v12 = vpop.f32.mrb[17].mxu0  ;;  %v1774_v13 = vpop.f32.mrb[17].mxu1  ;;  %v1032_v62 = vadd.f32 %v1031_v10, %v2439_v14 }
 0x549   : > { %v993_v17 = vadd.f32 %v992_v12, %v2435_v58  ;;  %v994_v34 = vpop.f32.mrb[18].mxu0  ;;  %v1034_v35 = vpop.f32.mrb[18].mxu1 }
 0x54a   : > { %v1037_v40 = vadd.f32 %v991_v11, %v952_v8  ;;  %v995_v46 = vpop.f32.mrb[19].mxu0  ;;  %v1775_v50 = vpop.f32.mrb[19].mxu1  ;;  %v1072_v11 = vunpack.c.h.bf16 %v2640_v44  ;;  %v2019_v44 = vld [vmem:[%s2828_s2 + $0x20] ss:$12 sps:$4 sm:$0xff]  }
 0x54b   : > { %v1044_v53 = vadd.f32 %v993_v17, %v953_v15 }
 0x54c   : > { %v1587_v51 = vmul.f32 -1.442695, %v1037_v40 }
 0x54d   : > { %v1588_v55 = vmul.f32 -1.442695, %v1044_v53 }
 0x54e   : > { %1974 = vpow2.f32 %v1587_v51 }
 0x54f   : > { %1976 = vpow2.f32 %v1588_v55  ;;  %v2015_v55 = vld [vmem:[%s2828_s2] ss:$12 sps:$4 sm:$0xff]  }
 0x558   : > { %v1975_v52 = vpop.eup %1974 }
 0x559   : > { %v1041_v54 = vadd.f32 1.0, %v1975_v52  ;;  %v1977_v59 = vpop.eup %1976  ;;  %v2016_v52 = vld [vmem:[%s2828_s2 + $0x8] ss:$12 sps:$4 sm:$0xff]  }
 0x55a   : > { %v1048_v61 = vadd.f32 1.0, %v1977_v59  ;;  %v2018_v59 = vld [vmem:[%s2828_s2 + $0x18] ss:$12 sps:$4 sm:$0xff]  }
 0x55b   : > { %1978 = vrcp.f32 %v1041_v54  ;;  %v2017_v54 = vld [vmem:[%s2828_s2 + $0x1c] ss:$12 sps:$4 sm:$0xff]  }
 0x55c   : > { %1980 = vrcp.f32 %v1048_v61  ;;  %v2020_v61 = vld [vmem:[%s2828_s2 + $0x34] ss:$12 sps:$4 sm:$0xff]  }
 0x565   : > { %v1979_v0 = vpop.eup %1978 }
 0x566   : > { %v1051_v1 = vmul.f32 %v1979_v0, %v1032_v62  ;;  %v1981_v3 = vpop.eup %1980  ;;  %v2022_v62 = vld [vmem:[%s2828_s2 + $0x38] ss:$12 sps:$4 sm:$0xff]  }
 0x567   : > { %v1054_v5 = vsub.f32 1.0, %v1981_v3  ;;  %v1056_v7 = vmul.f32 %v1981_v3, %v2594_v4  ;;  %v2023_v0 = vld [vmem:[%s2828_s2 + $0x4c] ss:$12 sps:$4 sm:$0xff]   ;;  %v2026_v3 = vld [vmem:[%s2828_s2 + $0x64] ss:$12 sps:$4 sm:$0xff]  }
 0x568   : > { %v1052_v2 = vadd.f32 %v1051_v1, %v954_v16  ;;  %v2021_v16 = vld [vmem:[%s2828_s2 + $0x30] ss:$12 sps:$4 sm:$0xff]   ;;  %v2024_v1 = vld [vmem:[%s2828_s2 + $0x48] ss:$12 sps:$4 sm:$0xff]  }
 0x56a   : > { %1982 = vtanh.f32 %v1052_v2  ;;  %v2025_v2 = vld [vmem:[%s2828_s2 + $0x50] ss:$12 sps:$4 sm:$0xff]  }
 0x574   : > { %v1983_v49 = vpop.eup %1982 }
 0x575   : > { %v1055_v6 = vmul.f32 %v1983_v49, %v1054_v5  ;;  %v2027_v5 = vld [vmem:[%s2828_s2 + $0x60] ss:$12 sps:$4 sm:$0xff]   ;;  %v2028_v49 = vld [vmem:[%s2828_s2 + $0x68] ss:$12 sps:$4 sm:$0xff]  }
 0x577   : > { %v2645_v8 = vadd.f32 %v1056_v7, %v1055_v6  ;;  %v2029_v6 = vld [vmem:[%s2828_s2 + $0x7c] ss:$12 sps:$4 sm:$0xff]   ;;  %v2030_v7 = vld [vmem:[%s2828_s2 + $0x78] ss:$12 sps:$4 sm:$0xff]  }
 0x579   : > { %v1073_v9 = vpack.c.bf16 %v2645_v8, %v2645_v8 }
 0x57b   : > { %1107 = vmatmul.mubr.bf16.vlgmr.msra.gmra.mrb[20].mxu0 %v1073_v9  ;;  %1793 = vmatmul.mubr.bf16.vlgmr.msra.gmra.mrb[20].mxu1 %v1073_v9  ;;  %v2031_v9 = vld [vmem:[%s2828_s2 + $0x80] ss:$12 sps:$4 sm:$0xff]  }
 0x57c   : > { %1193 = vmatpush1.bf16.msra.mxu0 %v2227_v18  ;;  %1797 = vmatpush3.bf16.msra.mxu1 %v2268_v26  ;;  %v2014_v18 = vld [vmem:[%s2828_s2 + $0x4] ss:$12 sps:$4 sm:$0xff]  }
 0x57d   : > { %1194 = vmatprep.subr.bf16.mxu0 %v2235_v21  ;;  %1798 = vmatprep.subr.bf16.mxu1 %v2095_v19  ;;  %v1295_v21 = vstv %s1294_s29 }
 0x57e   : > { %1224 = vmatprep.mubr.bf16.mxu0 %v2096_v20  ;;  %1812 = vmatprep.mubr.msk.bf16.mxu1 %vm2097_vm0, %v2095_v19  ;;  %vm1296_vm7 = vcmp.eq.s32.totalorder %v2331_v38, %v1295_v21  ;;  %v2033_v21 = vld [vmem:[%s2828_s2 + $0x90] ss:$12 sps:$4 sm:$0xff]  }
 0x580   : > { %1195 = vmatpush1.bf16.msra.mxu0 %v2243_v22  ;;  %1799 = vmatpush3.bf16.msra.mxu1 %v2286_v29  ;;  %v1297_v22 = vsel %vm1296_vm7, 1, %v2096_v20 }
 0x581   : > { %1196 = vmatprep.subr.bf16.mxu0 %v2250_v23  ;;  %1800 = vmatprep.subr.bf16.mxu1 %v2095_v19  ;;  %v1589_v23 = vld [vmem:[%s2216_s6 + $0x3c] sm:$0xff] }
 0x582   : > { %1299 = vperm.xlu0 %1900, %v1297_v22   ;;  %v2034_v22 = vld [vmem:[%s2828_s2 + $0x98] ss:$12 sps:$4 sm:$0xff]  }
 0x584   : > { %1197 = vmatpush1.bf16.msra.mxu0 %v2257_v24  ;;  %1801 = vmatpush3.bf16.msra.mxu1 %v2308_v32  ;;  %v1070_v24 = vunpack.c.l.bf16 %v1589_v23 }
 0x585   : > { %1198 = vmatprep.subr.bf16.mxu0 %v2263_v25  ;;  %1802 = vmatprep.subr.bf16.mxu1 %v2095_v19 }
 0x588   : > { %1199 = vmatpush1.bf16.msra.mxu0 %v2274_v27  ;;  %1803 = vmatpush3.bf16.msra.mxu1 %v2329_v37 }
 0x589   : > { %1200 = vmatprep.subr.bf16.mxu0 %v2280_v28  ;;  %1804 = vmatprep.subr.bf16.mxu1 %v2095_v19 }
 0x58c   : > { %1201 = vmatpush1.bf16.msra.mxu0 %v2295_v30  ;;  %1805 = vmatpush3.bf16.msra.mxu1 %v2352_v42  ;;  %v1071_v30 = vunpack.c.h.bf16 %v1589_v23  ;;  %v2035_v23 = vld [vmem:[%s2828_s2 + $0xac] ss:$12 sps:$4 sm:$0xff]  }
 0x58d   : > { %1202 = vmatprep.subr.bf16.mxu0 %v2301_v31  ;;  %1806 = vmatprep.subr.bf16.mxu1 %v2095_v19 }
 0x590   : > { %1203 = vmatpush1.bf16.msra.mxu0 %v2315_v33  ;;  %1807 = vmatpush3.bf16.msra.mxu1 %v2368_v45 }
 0x591   : > { %1204 = vmatprep.subr.bf16.mxu0 %v2323_v36  ;;  %1808 = vmatprep.subr.bf16.mxu1 %v2095_v19 }
 0x594   : > { %1205 = vmatpush1.bf16.msra.mxu0 %v2339_v39  ;;  %1809 = vmatpush3.bf16.msra.mxu1 %v2378_v47 }
 0x595   : > { %1206 = vmatprep.subr.bf16.mxu0 %v2346_v41  ;;  %1810 = vmatprep.subr.bf16.mxu1 %v2095_v19 }
 0x598   : > { %1207 = vmatpush1.bf16.msra.mxu0 %v2359_v43  ;;  %1811 = vmatpush3.bf16.msra.mxu1 %v2388_v48 }
 0x599   : > { %1310 = vmatprep.subr.bf16.mxu0 %v2014_v18  ;;  %1816 = vmatprep.subr.bf16.mxu1 %v2095_v19  ;;  %v2032_v18 = vld [vmem:[%s2828_s2 + $0x94] ss:$12 sps:$4 sm:$0xff]  }
 0x64e   : > { %v1108_v25 = vpop.f32.mrb[20].mxu0  ;;  %v1149_v26 = vpop.f32.mrb[20].mxu1 }
 0x64f   : > { %v1109_v27 = vadd.f32 %v1108_v25, %v2433_v57  ;;  %v1110_v28 = vpop.f32.mrb[21].mxu0  ;;  %v1794_v29 = vpop.f32.mrb[21].mxu1  ;;  %v1150_v12 = vadd.f32 %v1149_v26, %v2439_v14  ;;  %v2037_v25 = vld [vmem:[%s2828_s2 + $0xb0] ss:$12 sps:$4 sm:$0xff]   ;;  %v1413_v26 = vstv %s1412_s15 }
 0x650   : > { %v1111_v31 = vadd.f32 %v1110_v28, %v2435_v58  ;;  %v1112_v32 = vpop.f32.mrb[22].mxu0  ;;  %v1152_v33 = vpop.f32.mrb[22].mxu1  ;;  %vm1414_vm8 = vcmp.eq.s32.totalorder %v2331_v38, %v1413_v26  ;;  %v1593_v28 = vld [vmem:[%s2216_s6 + $0x48] sm:$0xff] }
 0x651   : > { %v1155_v36 = vadd.f32 %v1109_v27, %v1070_v24  ;;  %v1113_v37 = vpop.f32.mrb[23].mxu0  ;;  %v1795_v39 = vpop.f32.mrb[23].mxu1  ;;  %v2036_v24 = vld [vmem:[%s2828_s2 + $0xa8] ss:$12 sps:$4 sm:$0xff]   ;;  %v1415_v27 = vsel %vm1414_vm8, 1, %v2096_v20  ;;  %v1188_v29 = vunpack.c.l.bf16 %v1593_v28 }
 0x652   : > { %v1162_v42 = vadd.f32 %v1111_v31, %v1071_v30  ;;  %1417 = vperm.xlu1 %1901, %v1415_v27  }
 0x653   : > { %v1591_v41 = vmul.f32 -1.442695, %v1155_v36  ;;  %v1189_v36 = vunpack.c.h.bf16 %v1593_v28 }
 0x654   : > { %v1592_v43 = vmul.f32 -1.442695, %v1162_v42 }
 0x655   : > { %1984 = vpow2.f32 %v1591_v41 }
 0x656   : > { %1986 = vpow2.f32 %v1592_v43 }
 0x65f   : > { %v1985_v45 = vpop.eup %1984 }
 0x660   : > { %v1159_v47 = vadd.f32 1.0, %v1985_v45  ;;  %v1987_v48 = vpop.eup %1986 }
 0x661   : > { %v1166_v10 = vadd.f32 1.0, %v1987_v48 }
 0x662   : > { %1988 = vrcp.f32 %v1159_v47 }
 0x663   : > { %1990 = vrcp.f32 %v1166_v10 }
 0x66c   : > { %v1989_v13 = vpop.eup %1988 }
 0x66d   : > { %v1169_v15 = vmul.f32 %v1989_v13, %v1150_v12  ;;  %v1991_v34 = vpop.eup %1990  ;;  %v1594_v12 = vld [vmem:[%s2216_s6 + $0x50] ss:$12 sps:$4 sm:$0xff]  }
 0x66e   : > { %v1172_v35 = vsub.f32 1.0, %v1991_v34  ;;  %v1174_v50 = vmul.f32 %v1991_v34, %v2645_v8  ;;  %v1308_v27 = vunpack.c.h.bf16 %v1594_v12 }
 0x66f   : > { %v1170_v17 = vadd.f32 %v1169_v15, %v1072_v11  ;;  %v1190_v15 = vunpack.c.l.bf16 %v1594_v12 }
 0x671   : > { %1992 = vtanh.f32 %v1170_v17 }
 0x67b   : > { %v1993_v40 = vpop.eup %1992 }
 0x67c   : > { %v1173_v46 = vmul.f32 %v1993_v40, %v1172_v35 }
 0x67e   : > { %v2695_v51 = vadd.f32 %v1174_v50, %v1173_v46 }
 0x680   : > { %v1191_v53 = vpack.c.bf16 %v2695_v51, %v2695_v51 }
 0x682   : > { %1225 = vmatmul.mubr.bf16.vlgmr.msra.gmra.mrb[24].mxu0 %v1191_v53  ;;  %1813 = vmatmul.mubr.bf16.vlgmr.msra.gmra.mrb[24].mxu1 %v1191_v53 }
 0x683   : > { %1311 = vmatpush1.bf16.msra.mxu0 %v2015_v55  ;;  %1817 = vmatpush3.bf16.msra.mxu1 %v2016_v52 }
 0x684   : > { %1312 = vmatprep.subr.bf16.mxu0 %v2017_v54  ;;  %1818 = vmatprep.subr.bf16.mxu1 %v2095_v19 }
 0x685   : > { %1342 = vmatprep.mubr.bf16.mxu0 %v2096_v20  ;;  %1832 = vmatprep.mubr.msk.bf16.mxu1 %vm2097_vm0, %v2095_v19 }
 0x687   : > { %1313 = vmatpush1.bf16.msra.mxu0 %v2018_v59  ;;  %1819 = vmatpush3.bf16.msra.mxu1 %v2019_v44  ;;  %v1597_v44 = vld [vmem:[%s2216_s6 + $0x54] sm:$0xff] }
 0x688   : > { %1314 = vmatprep.subr.bf16.mxu0 %v2020_v61  ;;  %1820 = vmatprep.subr.bf16.mxu1 %v2095_v19  ;;  %v1306_v61 = vunpack.c.l.bf16 %v1597_v44 }
 0x68b   : > { %1315 = vmatpush1.bf16.msra.mxu0 %v2021_v16  ;;  %1821 = vmatpush3.bf16.msra.mxu1 %v2022_v62 }
 0x68c   : > { %1316 = vmatprep.subr.bf16.mxu0 %v2023_v0  ;;  %1822 = vmatprep.subr.bf16.mxu1 %v2095_v19 }
 0x68f   : > { %1317 = vmatpush1.bf16.msra.mxu0 %v2024_v1  ;;  %1823 = vmatpush3.bf16.msra.mxu1 %v2025_v2 }
 0x690   : > { %1318 = vmatprep.subr.bf16.mxu0 %v2026_v3  ;;  %1824 = vmatprep.subr.bf16.mxu1 %v2095_v19  ;;  %v1307_v3 = vunpack.c.h.bf16 %v1597_v44 }
 0x693   : > { %1319 = vmatpush1.bf16.msra.mxu0 %v2027_v5  ;;  %1825 = vmatpush3.bf16.msra.mxu1 %v2028_v49 }
 0x694   : > { %1320 = vmatprep.subr.bf16.mxu0 %v2029_v6  ;;  %1826 = vmatprep.subr.bf16.mxu1 %v2095_v19 }
 0x697   : > { %1321 = vmatpush1.bf16.msra.mxu0 %v2030_v7  ;;  %1827 = vmatpush3.bf16.msra.mxu1 %v2031_v9 }
 0x698   : > { %1322 = vmatprep.subr.bf16.mxu0 %v2032_v18  ;;  %1828 = vmatprep.subr.bf16.mxu1 %v2095_v19 }
 0x69b   : > { %1323 = vmatpush1.bf16.msra.mxu0 %v2033_v21  ;;  %1829 = vmatpush3.bf16.msra.mxu1 %v2034_v22 }
 0x69c   : > { %1324 = vmatprep.subr.bf16.mxu0 %v2035_v23  ;;  %1830 = vmatprep.subr.bf16.mxu1 %v2095_v19 }
 0x69f   : > { %1325 = vmatpush1.bf16.msra.mxu0 %v2036_v24  ;;  %1831 = vmatpush3.bf16.msra.mxu1 %v2037_v25 }
 0x755   : > { %v1226_v19 = vpop.f32.mrb[24].mxu0  ;;  %v1267_v30 = vpop.f32.mrb[24].mxu1 }
 0x756   : > { %v1227_v31 = vadd.f32 %v1226_v19, %v2433_v57  ;;  %v1228_v32 = vpop.f32.mrb[25].mxu0  ;;  %v1814_v33 = vpop.f32.mrb[25].mxu1  ;;  %v1268_v17 = vadd.f32 %v1267_v30, %v2439_v14 }
 0x757   : > { %v1229_v37 = vadd.f32 %v1228_v32, %v2435_v58  ;;  %v1230_v39 = vpop.f32.mrb[26].mxu0  ;;  %v1270_v41 = vpop.f32.mrb[26].mxu1 }
 0x758   : > { %v1273_v42 = vadd.f32 %v1227_v31, %v1188_v29  ;;  %v1231_v43 = vpop.f32.mrb[27].mxu0  ;;  %v1815_v38 = vpop.f32.mrb[27].mxu1 }
 0x759   : > { %v1280_v20 = vadd.f32 %v1229_v37, %v1189_v36  ;;  %v828_v31 = vpop.permute.xlu1 %827  ;;  %v334_v37 = vld [vmem:[#allocation3] sm:$0xff] }
 0x75a   : > { %v1595_v45 = vmul.f32 -1.442695, %v1273_v42  ;;  %vm829_vm11 = vcmp.eq.s32.totalorder %v828_v31, 1 }
 0x75b   : > { %v1596_v47 = vmul.f32 -1.442695, %v1280_v20 }
 0x75c   : > { %1994 = vpow2.f32 %v1595_v45 }
 0x75d   : > { %1996 = vpow2.f32 %v1596_v47  ;;  %v946_v33 = vpop.permute.xlu1 %945 }
 0x75e   : > { %vm947_vm12 = vcmp.eq.s32.totalorder %v946_v33, 1 }
 0x761   : > { %v1182_v41 = vpop.permute.xlu1 %1181 }
 0x762   : > { %vm1183_vm14 = vcmp.eq.s32.totalorder %v1182_v41, 1 }
 0x766   : > { %v1995_v48 = vpop.eup %1994 }
 0x767   : > { %v1277_v10 = vadd.f32 1.0, %v1995_v48  ;;  %v1997_v11 = vpop.eup %1996  ;;  %v1418_v48 = vpop.permute.xlu1 %1417 }
 0x768   : > { %v1284_v13 = vadd.f32 1.0, %v1997_v11  ;;  %vm1419_vm0 = vcmp.eq.s32.totalorder %v1418_v48, 1 }
 0x769   : > { %1998 = vrcp.f32 %v1277_v10 }
 0x76a   : > { %2000 = vrcp.f32 %v1284_v13 }
 0x773   : > { %v1999_v34 = vpop.eup %1998 }
 0x774   : > { %v1287_v35 = vmul.f32 %v1999_v34, %v1268_v17  ;;  %v2001_v46 = vpop.eup %2000 }
 0x775   : > { %v1290_v50 = vsub.f32 1.0, %v2001_v46  ;;  %v1292_v52 = vmul.f32 %v2001_v46, %v2695_v51 }
 0x776   : > { %v1288_v40 = vadd.f32 %v1287_v35, %v1190_v15 }
 0x778   : > { %2002 = vtanh.f32 %v1288_v40 }
 0x782   : > { %v2003_v53 = vpop.eup %2002 }
 0x783   : > { %v1291_v55 = vmul.f32 %v2003_v53, %v1290_v50 }
 0x785   : > { %v2787_v54 = vadd.f32 %v1292_v52, %v1291_v55 }
 0x787   : > { %v1309_v59 = vpack.c.bf16 %v2787_v54, %v2787_v54 }
 0x789   : > { %1343 = vmatmul.mubr.bf16.vlgmr.msra.gmra.mrb[28].mxu0 %v1309_v59  ;;  %1833 = vmatmul.mubr.bf16.vlgmr.msra.gmra.mrb[28].mxu1 %v1309_v59 }
 0x85c   : > { %v1344_v16 = vpop.f32.mrb[28].mxu0  ;;  %v1385_v62 = vpop.f32.mrb[28].mxu1 }
 0x85d   : > { %v1345_v0 = vadd.f32 %v1344_v16, %v2433_v57  ;;  %v1346_v1 = vpop.f32.mrb[29].mxu0  ;;  %v1834_v2 = vpop.f32.mrb[29].mxu1  ;;  %v1386_v28 = vadd.f32 %v1385_v62, %v2439_v14 }
 0x85e   : > { %v1347_v5 = vadd.f32 %v1346_v1, %v2435_v58  ;;  %v1348_v49 = vpop.f32.mrb[30].mxu0  ;;  %v1388_v6 = vpop.f32.mrb[30].mxu1 }
 0x85f   : > { %v1391_v7 = vadd.f32 %v1345_v0, %v1306_v61  ;;  %v1349_v9 = vpop.f32.mrb[31].mxu0  ;;  %v1835_v18 = vpop.f32.mrb[31].mxu1 }
 0x860   : > { %v1398_v22 = vadd.f32 %v1347_v5, %v1307_v3  ;;  %v592_v58 = vpop.permute.xlu0 %591 }
 0x861   : > { %v1599_v21 = vmul.f32 -1.442695, %v1391_v7  ;;  %vm593_vm9 = vcmp.eq.s32.totalorder %v592_v58, 1 }
 0x862   : > { %v1600_v23 = vmul.f32 -1.442695, %v1398_v22  ;;  %v594_v42 = vsel %vm593_vm9, %v2447_v56, %v334_v37 }
 0x863   : > { %2004 = vpow2.f32 %v1599_v21 }
 0x864   : > { %2006 = vpow2.f32 %v1600_v23  ;;  %v710_v32 = vpop.permute.xlu0 %709 }
 0x865   : > { %vm711_vm10 = vcmp.eq.s32.totalorder %v710_v32, 1 }
 0x866   : > { %v712_v43 = vsel %vm711_vm10, %v2495_v60, %v594_v42 }
 0x867   : > { %v830_v20 = vsel %vm829_vm11, %v2546_v63, %v712_v43 }
 0x868   : > { %v1064_v36 = vpop.permute.xlu0 %1063  ;;  %v948_v47 = vsel %vm947_vm12, %v2594_v4, %v830_v20 }
 0x869   : > { %vm1065_vm13 = vcmp.eq.s32.totalorder %v1064_v36, 1 }
 0x86a   : > { %v1066_v12 = vsel %vm1065_vm13, %v2645_v8, %v948_v47 }
 0x86b   : > { %v1184_v56 = vsel %vm1183_vm14, %v2695_v51, %v1066_v12 }
 0x86c   : > { %v1300_v14 = vpop.permute.xlu0 %1299 }
 0x86d   : > { %v2005_v24 = vpop.eup %2004  ;;  %vm1301_vm15 = vcmp.eq.s32.totalorder %v1300_v14, 1 }
 0x86e   : > { %v1395_v25 = vadd.f32 1.0, %v2005_v24  ;;  %v2007_v26 = vpop.eup %2006  ;;  %v1302_v60 = vsel %vm1301_vm15, %v2787_v54, %v1184_v56 }
 0x86f   : > { %v1402_v57 = vadd.f32 1.0, %v2007_v26 }
 0x870   : > { %2008 = vrcp.f32 %v1395_v25 }
 0x871   : > { %2010 = vrcp.f32 %v1402_v57 }
 0x87a   : > { %v2009_v29 = vpop.eup %2008 }
 0x87b   : > { %v1405_v19 = vmul.f32 %v2009_v29, %v1386_v28  ;;  %v2011_v39 = vpop.eup %2010 }
 0x87c   : > { %v1408_v38 = vsub.f32 1.0, %v2011_v39  ;;  %v1410_v11 = vmul.f32 %v2011_v39, %v2787_v54 }
 0x87d   : > { %v1406_v30 = vadd.f32 %v1405_v19, %v1308_v27 }
 0x87f   : > { %2012 = vtanh.f32 %v1406_v30 }
 0x889   : > { %v2013_v45 = vpop.eup %2012  ;;  %1426 = sbr.rel (%p1601_p12) target bundleno = 2200 (0x898), region = 70 }
 0x88a   : > { %v1409_v10 = vmul.f32 %v2013_v45, %v1408_v38 }
 0x88c   : > { %v1411_v13 = vadd.f32 %v1410_v11, %v1409_v10 }
 0x88e   : > { %v1420_v15 = vsel %vm1419_vm0, %v1411_v13, %v1302_v60  ;;  %1421 = vst [vmem:[#allocation2] sm:$0xff] %v1411_v13 }
 0x88f   : > { %1422 = vst [vmem:[#allocation3] sm:$0xff] %v1420_v15 }
 0x896   : > { %v1427_v63 = vld [vmem:[#allocation3] sm:$0xff] }
 0x897   : > { %1428 = vst [vmem:[%s2214_s5] sm:$0xff] %v1427_v63 }
 0x898 PF: > { %s14_s21 = sadd.s32 1, %s2092_s21   ;;  %s2831_s15 = smov %s2072_s16 }
 0x899   : > { %p11_p13 = scmp.ge.s32.totalorder %s14_s21, 6   ;;  %s2832_s16 = smov %s2174_s28 }
 0x89a   : > { %s2833_s17 = smov %s2084_s19  ;;  %s2834_s18 = smov %s2088_s20 }
 0x89b   : > { %s2835_s19 = smov %s2838_s22  ;;  %s2836_s20 = smov %s2842_s23 }
 0x89c   :  { %13 = sbr.rel (!%p11_p13) target bundleno = 4 (0x4), region = 121 }

</bundles_post_ra>
